<compile_context>
chip_gen: v5e
topology: v5e:2x2
jax: 0.10.0
libtpu: 0.0.40
codegen_flags: <defaults>
</compile_context>

<pallas_src>
import math
import functools

import jax
import jax.numpy as jnp
from jax.experimental import pallas as pl
from jax.experimental.pallas import tpu as pltpu


def _round_up(x, m):
    return ((x + m - 1) // m) * m


# ----------------------------------------------------------------------------
# Pallas kernel: K*K shifted MXU matmuls + scale + bias epilogue
# ----------------------------------------------------------------------------
def _equal_conv2d_kernel(xa_ref, xb_ref, w_ref, b_ref, o_ref, *,
                         scale, w_pad, ksize, tm):
    # xa_ref : (tm, C_in)        row-tile i   of the flattened padded NHWC input
    # xb_ref : (tm, C_in)        row-tile i+1 (halo for the shifted reads)
    # w_ref  : (K*K, C_in, tn)   unscaled weight, (kh, kw)-major
    # b_ref  : (1, tn)           f32 bias (zero-padded channels)
    # o_ref  : (tm, tn)
    xcat = jnp.concatenate([xa_ref[...], xb_ref[...]], axis=0)   # (2*tm, C_in)

    acc = None
    for kh in range(ksize):
        for kw in range(ksize):
            off = kh * w_pad + kw                 # static shift into the halo'd tile
            xs = xcat[off:off + tm, :]            # (tm, C_in)
            d = jnp.dot(xs, w_ref[kh * ksize + kw],
                        preferred_element_type=jnp.float32)
            acc = d if acc is None else acc + d

    # Equalized-lr scale fused into the epilogue (CK/tm times cheaper than
    # rescaling the weight tile every grid step; mathematically identical in f32).
    o_ref[...] = (acc * scale + b_ref[...]).astype(o_ref.dtype)


# ----------------------------------------------------------------------------
# Wrapper
# ----------------------------------------------------------------------------
def equal_conv2d(x_nchw, weight, bias=None, *, stride=1, padding=0, lr_mul=1.0,
                 tm=512, tn=None, compute_dtype=None):
    """EqualConv2d forward:  F.conv2d(x, weight * scale, bias, stride, padding).

    x_nchw : (N, C_in, H, W)
    weight : (C_out, C_in, K, K)  (unscaled, as stored in the module)
    bias   : (C_out,) or None
    compute_dtype : dtype fed to the MXU (e.g. jnp.bfloat16 on v6e/v7x);
                    None keeps the input dtype.  Accumulation is always f32.
    """
    N, C_in, H, W = x_nchw.shape
    C_out, C_in_w, K, K2 = weight.shape
    assert C_in_w == C_in and K == K2
    s = int(stride)

    scale = 1.0 / math.sqrt(C_in * K * K) * lr_mul
    out_dtype = x_nchw.dtype
    cdt = out_dtype if compute_dtype is None else compute_dtype

    H_out = (H + 2 * padding - K) // s + 1
    W_out = (W + 2 * padding - K) // s + 1
    H_p, W_p = H + 2 * padding, W + 2 * padding

    # ---- activation: NCHW -> NHWC, spatial zero-pad, flatten (N, Hp, Wp) ----
    x = jnp.transpose(x_nchw, (0, 2, 3, 1)).astype(cdt)          # (N, H, W, C_in)
    if padding:
        x = jnp.pad(x, ((0, 0), (padding, padding), (padding, padding), (0, 0)))
    x_flat = x.reshape(N * H_p * W_p, C_in)

    # ---- tiling ----
    KK = K * K
    max_off = (K - 1) * (W_p + 1)              # largest in-kernel row shift
    tm = _round_up(max(int(tm), max_off, 128), 128)

    M_valid = N * H_p * W_p
    nb = (M_valid + tm - 1) // tm              # output row-tiles
    rows_needed = (nb + 1) * tm                # +1 tile: halo for the last block
    x_flat = jnp.pad(x_flat, ((0, rows_needed - M_valid), (0, 0)))

    # Lane-dense output channels (pad to a multiple of 128, tile with tn).
    C_out_p = _round_up(C_out, 128)
    if tn is None:
        tn = min(C_out_p, 512)
        while C_out_p % tn != 0:
            tn -= 128
    ncb = C_out_p // tn

    # ---- parameters: (C_out, C_in, K, K) -> (K*K, C_in, C_out_p), bias f32 ----
    w_r = jnp.transpose(weight, (2, 3, 1, 0)).reshape(KK, C_in, C_out)
    w_r = jnp.pad(w_r, ((0, 0), (0, 0), (0, C_out_p - C_out))).astype(cdt)
    b = bias if bias is not None else jnp.zeros((C_out,), dtype=out_dtype)
    b_r = jnp.pad(jnp.asarray(b, jnp.float32), (0, C_out_p - C_out)).reshape(1, C_out_p)

    kernel = functools.partial(_equal_conv2d_kernel,
                               scale=scale, w_pad=W_p, ksize=K, tm=tm)

    # ---- explicit VMEM budget (double-buffered inputs/outputs + f32 acc) ----
    in_isz = jnp.dtype(cdt).itemsize
    out_isz = jnp.dtype(out_dtype).itemsize
    need = (4 * tm * C_in * in_isz            # 2 halo'd x tiles, double-buffered
            + 2 * KK * C_in * tn * in_isz     # weight tile
            + 2 * 1 * tn * 4                  # bias tile
            + 2 * tm * tn * out_isz           # output tile
            + 2 * tm * tn * 4                 # f32 accumulator head-room
            + (4 << 20))
    vmem_limit = int(min(max(need, 32 << 20), 64 << 20))

    out_flat = pl.pallas_call(
        kernel,
        out_shape=jax.ShapeDtypeStruct((nb * tm, C_out_p), out_dtype),
        grid=(ncb, nb),                                        # (c_out tiles, row tiles)
        in_specs=[
            pl.BlockSpec((tm, C_in), lambda j, i: (i, 0)),       # x row-tile i
            pl.BlockSpec((tm, C_in), lambda j, i: (i + 1, 0)),   # x row-tile i+1 (halo)
            pl.BlockSpec((KK, C_in, tn), lambda j, i: (0, 0, j)),  # weight (resident over i)
            pl.BlockSpec((1, tn), lambda j, i: (0, j)),          # bias
        ],
        out_specs=pl.BlockSpec((tm, tn), lambda j, i: (i, j)),
        compiler_params=pltpu.CompilerParams(
            dimension_semantics=("parallel", "parallel"),
            vmem_limit_bytes=vmem_limit),
    )(x_flat, x_flat, w_r, b_r)

    # ---- un-flatten: drop garbage rows/cols, apply stride, back to NCHW ----
    out = out_flat[:M_valid].reshape(N, H_p, W_p, C_out_p)
    out = out[:, ::s, ::s, :][:, :H_out, :W_out, :C_out]
    # TODO(synk): skip this transpose (return NHWC) when the consumer accepts channels-last.
    return jnp.transpose(out, (0, 3, 1, 2))


if __name__ == "__main__":
    # Deterministic parameter init mirroring the module __init__:
    #   weight ~ randn(out_channel, in_channel, K, K); bias = zeros(out_channel)
    in_channel, out_channel, kernel_size = 4, 8, 3
    stride, padding, lr_mul = 1, 1, 1.0

    key = jax.random.PRNGKey(0)
    kx, kw = jax.random.split(key)

    x = jax.random.normal(kx, (2, in_channel, 16, 16), dtype=jnp.float32)
    weight = jax.random.normal(
        kw, (out_channel, in_channel, kernel_size, kernel_size), dtype=jnp.float32)
    bias = jnp.zeros((out_channel,), dtype=jnp.float32)

    # Reference (same semantics as F.conv2d(input, weight * scale, bias)).
    scale = 1.0 / math.sqrt(in_channel * kernel_size ** 2) * lr_mul
    ref = jax.lax.conv_general_dilated(
        x, weight * scale,
        window_strides=(stride, stride),
        padding=[(padding, padding), (padding, padding)],
        dimension_numbers=("NCHW", "OIHW", "NCHW"),
    ) + bias.reshape(1, -1, 1, 1)

    # f32 compute path (exact semantics).
    out = equal_conv2d(x, weight, bias, stride=stride, padding=padding, lr_mul=lr_mul)
    out = jax.block_until_ready(out)
    assert out.shape == ref.shape == (2, out_channel, 16, 16)
    assert jnp.allclose(out, ref, atol=1e-4, rtol=1e-4)

    # bf16 MXU path (v6e/v7x recommendation) — looser tolerance.
    out_bf16 = equal_conv2d(x, weight, bias, stride=stride, padding=padding,
                            lr_mul=lr_mul, compute_dtype=jnp.bfloat16)
    out_bf16 = jax.block_until_ready(out_bf16)
    assert jnp.allclose(out_bf16, ref, atol=1e-1, rtol=1e-1)

    print("KERNEL_OK")
</pallas_src>

<mosaic_0001>
module attributes {stable_mosaic.version = 11 : i64} {
  func.func @_equal_conv2d_kernel(%arg0: i32, %arg1: i32, %arg2: memref<512x4xf32, #tpu.memory_space<vmem>>, %arg3: memref<512x4xf32, #tpu.memory_space<vmem>>, %arg4: memref<9x4x128xf32, #tpu.memory_space<vmem>>, %arg5: memref<1x128xf32, #tpu.memory_space<vmem>>, %arg6: memref<512x128xf32, #tpu.memory_space<vmem>>) attributes {dimension_semantics = [#tpu.dimension_semantics<parallel>, #tpu.dimension_semantics<parallel>], iteration_bounds = array<i64: 1, 2>, scalar_prefetch = 0 : i64, scratch_operands = 0 : i64, tpu.core_type = #tpu.core_type<tc>, window_params = [{transform_indices = @transform_0, window_bounds = array<i64: 512, 4>}, {transform_indices = @transform_1, window_bounds = array<i64: 512, 4>}, {transform_indices = @transform_2, window_bounds = array<i64: 9, 4, 128>}, {transform_indices = @transform_3, window_bounds = array<i64: 1, 128>}, {transform_indices = @transform_4, window_bounds = array<i64: 512, 128>}]} {
    %c0 = arith.constant 0 : index
    %c0_0 = arith.constant 0 : index
    %0 = vector.load %arg2[%c0, %c0_0] : memref<512x4xf32, #tpu.memory_space<vmem>>, vector<512x4xf32>
    %c0_1 = arith.constant 0 : index
    %c0_2 = arith.constant 0 : index
    %1 = vector.load %arg3[%c0_1, %c0_2] : memref<512x4xf32, #tpu.memory_space<vmem>>, vector<512x4xf32>
    %2 = tpu.concatenate %0, %1 in 0 : vector<512x4xf32>, vector<512x4xf32> -> vector<1024x4xf32>
    %3 = vector.extract_strided_slice %2 {offsets = [0, 0], sizes = [512, 4], strides = [1, 1]} : vector<1024x4xf32> to vector<512x4xf32>
    %c0_3 = arith.constant 0 : index
    %c0_4 = arith.constant 0 : index
    %c0_5 = arith.constant 0 : index
    %4 = vector.load %arg4[%c0_3, %c0_4, %c0_5] : memref<9x4x128xf32, #tpu.memory_space<vmem>>, vector<1x4x128xf32>
    %5 = vector.shape_cast %4 : vector<1x4x128xf32> to vector<4x128xf32>
    %cst = arith.constant dense<0.000000e+00> : vector<512x128xf32>
    %6 = tpu.matmul %3, %5, %cst {dimension_numbers = #tpu.dot_dimension_numbers<[1], [0], [0], [1], [0, 0, 1, 1], [], []>} : vector<512x4xf32>, vector<4x128xf32>, vector<512x128xf32> -> vector<512x128xf32>
    %7 = vector.extract_strided_slice %2 {offsets = [1, 0], sizes = [512, 4], strides = [1, 1]} : vector<1024x4xf32> to vector<512x4xf32>
    %c1 = arith.constant 1 : index
    %c0_6 = arith.constant 0 : index
    %c0_7 = arith.constant 0 : index
    %8 = vector.load %arg4[%c1, %c0_6, %c0_7] : memref<9x4x128xf32, #tpu.memory_space<vmem>>, vector<1x4x128xf32>
    %9 = vector.shape_cast %8 : vector<1x4x128xf32> to vector<4x128xf32>
    %cst_8 = arith.constant dense<0.000000e+00> : vector<512x128xf32>
    %10 = tpu.matmul %7, %9, %cst_8 {dimension_numbers = #tpu.dot_dimension_numbers<[1], [0], [0], [1], [0, 0, 1, 1], [], []>} : vector<512x4xf32>, vector<4x128xf32>, vector<512x128xf32> -> vector<512x128xf32>
    %11 = arith.addf %6, %10 : vector<512x128xf32>
    %12 = vector.extract_strided_slice %2 {offsets = [2, 0], sizes = [512, 4], strides = [1, 1]} : vector<1024x4xf32> to vector<512x4xf32>
    %c2 = arith.constant 2 : index
    %c0_9 = arith.constant 0 : index
    %c0_10 = arith.constant 0 : index
    %13 = vector.load %arg4[%c2, %c0_9, %c0_10] : memref<9x4x128xf32, #tpu.memory_space<vmem>>, vector<1x4x128xf32>
    %14 = vector.shape_cast %13 : vector<1x4x128xf32> to vector<4x128xf32>
    %cst_11 = arith.constant dense<0.000000e+00> : vector<512x128xf32>
    %15 = tpu.matmul %12, %14, %cst_11 {dimension_numbers = #tpu.dot_dimension_numbers<[1], [0], [0], [1], [0, 0, 1, 1], [], []>} : vector<512x4xf32>, vector<4x128xf32>, vector<512x128xf32> -> vector<512x128xf32>
    %16 = arith.addf %11, %15 : vector<512x128xf32>
    %17 = vector.extract_strided_slice %2 {offsets = [18, 0], sizes = [512, 4], strides = [1, 1]} : vector<1024x4xf32> to vector<512x4xf32>
    %c3 = arith.constant 3 : index
    %c0_12 = arith.constant 0 : index
    %c0_13 = arith.constant 0 : index
    %18 = vector.load %arg4[%c3, %c0_12, %c0_13] : memref<9x4x128xf32, #tpu.memory_space<vmem>>, vector<1x4x128xf32>
    %19 = vector.shape_cast %18 : vector<1x4x128xf32> to vector<4x128xf32>
    %cst_14 = arith.constant dense<0.000000e+00> : vector<512x128xf32>
    %20 = tpu.matmul %17, %19, %cst_14 {dimension_numbers = #tpu.dot_dimension_numbers<[1], [0], [0], [1], [0, 0, 1, 1], [], []>} : vector<512x4xf32>, vector<4x128xf32>, vector<512x128xf32> -> vector<512x128xf32>
    %21 = arith.addf %16, %20 : vector<512x128xf32>
    %22 = vector.extract_strided_slice %2 {offsets = [19, 0], sizes = [512, 4], strides = [1, 1]} : vector<1024x4xf32> to vector<512x4xf32>
    %c4 = arith.constant 4 : index
    %c0_15 = arith.constant 0 : index
    %c0_16 = arith.constant 0 : index
    %23 = vector.load %arg4[%c4, %c0_15, %c0_16] : memref<9x4x128xf32, #tpu.memory_space<vmem>>, vector<1x4x128xf32>
    %24 = vector.shape_cast %23 : vector<1x4x128xf32> to vector<4x128xf32>
    %cst_17 = arith.constant dense<0.000000e+00> : vector<512x128xf32>
    %25 = tpu.matmul %22, %24, %cst_17 {dimension_numbers = #tpu.dot_dimension_numbers<[1], [0], [0], [1], [0, 0, 1, 1], [], []>} : vector<512x4xf32>, vector<4x128xf32>, vector<512x128xf32> -> vector<512x128xf32>
    %26 = arith.addf %21, %25 : vector<512x128xf32>
    %27 = vector.extract_strided_slice %2 {offsets = [20, 0], sizes = [512, 4], strides = [1, 1]} : vector<1024x4xf32> to vector<512x4xf32>
    %c5 = arith.constant 5 : index
    %c0_18 = arith.constant 0 : index
    %c0_19 = arith.constant 0 : index
    %28 = vector.load %arg4[%c5, %c0_18, %c0_19] : memref<9x4x128xf32, #tpu.memory_space<vmem>>, vector<1x4x128xf32>
    %29 = vector.shape_cast %28 : vector<1x4x128xf32> to vector<4x128xf32>
    %cst_20 = arith.constant dense<0.000000e+00> : vector<512x128xf32>
    %30 = tpu.matmul %27, %29, %cst_20 {dimension_numbers = #tpu.dot_dimension_numbers<[1], [0], [0], [1], [0, 0, 1, 1], [], []>} : vector<512x4xf32>, vector<4x128xf32>, vector<512x128xf32> -> vector<512x128xf32>
    %31 = arith.addf %26, %30 : vector<512x128xf32>
    %32 = vector.extract_strided_slice %2 {offsets = [36, 0], sizes = [512, 4], strides = [1, 1]} : vector<1024x4xf32> to vector<512x4xf32>
    %c6 = arith.constant 6 : index
    %c0_21 = arith.constant 0 : index
    %c0_22 = arith.constant 0 : index
    %33 = vector.load %arg4[%c6, %c0_21, %c0_22] : memref<9x4x128xf32, #tpu.memory_space<vmem>>, vector<1x4x128xf32>
    %34 = vector.shape_cast %33 : vector<1x4x128xf32> to vector<4x128xf32>
    %cst_23 = arith.constant dense<0.000000e+00> : vector<512x128xf32>
    %35 = tpu.matmul %32, %34, %cst_23 {dimension_numbers = #tpu.dot_dimension_numbers<[1], [0], [0], [1], [0, 0, 1, 1], [], []>} : vector<512x4xf32>, vector<4x128xf32>, vector<512x128xf32> -> vector<512x128xf32>
    %36 = arith.addf %31, %35 : vector<512x128xf32>
    %37 = vector.extract_strided_slice %2 {offsets = [37, 0], sizes = [512, 4], strides = [1, 1]} : vector<1024x4xf32> to vector<512x4xf32>
    %c7 = arith.constant 7 : index
    %c0_24 = arith.constant 0 : index
    %c0_25 = arith.constant 0 : index
    %38 = vector.load %arg4[%c7, %c0_24, %c0_25] : memref<9x4x128xf32, #tpu.memory_space<vmem>>, vector<1x4x128xf32>
    %39 = vector.shape_cast %38 : vector<1x4x128xf32> to vector<4x128xf32>
    %cst_26 = arith.constant dense<0.000000e+00> : vector<512x128xf32>
    %40 = tpu.matmul %37, %39, %cst_26 {dimension_numbers = #tpu.dot_dimension_numbers<[1], [0], [0], [1], [0, 0, 1, 1], [], []>} : vector<512x4xf32>, vector<4x128xf32>, vector<512x128xf32> -> vector<512x128xf32>
    %41 = arith.addf %36, %40 : vector<512x128xf32>
    %42 = vector.extract_strided_slice %2 {offsets = [38, 0], sizes = [512, 4], strides = [1, 1]} : vector<1024x4xf32> to vector<512x4xf32>
    %c8 = arith.constant 8 : index
    %c0_27 = arith.constant 0 : index
    %c0_28 = arith.constant 0 : index
    %43 = vector.load %arg4[%c8, %c0_27, %c0_28] : memref<9x4x128xf32, #tpu.memory_space<vmem>>, vector<1x4x128xf32>
    %44 = vector.shape_cast %43 : vector<1x4x128xf32> to vector<4x128xf32>
    %cst_29 = arith.constant dense<0.000000e+00> : vector<512x128xf32>
    %45 = tpu.matmul %42, %44, %cst_29 {dimension_numbers = #tpu.dot_dimension_numbers<[1], [0], [0], [1], [0, 0, 1, 1], [], []>} : vector<512x4xf32>, vector<4x128xf32>, vector<512x128xf32> -> vector<512x128xf32>
    %46 = arith.addf %41, %45 : vector<512x128xf32>
    %cst_30 = arith.constant 0.166666672 : f32
    %47 = vector.broadcast %cst_30 : f32 to vector<512x128xf32>
    %48 = arith.mulf %46, %47 : vector<512x128xf32>
    %c0_31 = arith.constant 0 : index
    %c0_32 = arith.constant 0 : index
    %49 = vector.load %arg5[%c0_31, %c0_32] : memref<1x128xf32, #tpu.memory_space<vmem>>, vector<1x128xf32>
    %50 = vector.broadcast %49 : vector<1x128xf32> to vector<512x128xf32>
    %51 = arith.addf %48, %50 : vector<512x128xf32>
    %c0_33 = arith.constant 0 : index
    %c0_34 = arith.constant 0 : index
    %52 = vector.load %arg6[%c0_33, %c0_34] : memref<512x128xf32, #tpu.memory_space<vmem>>, vector<512x128xf32>
    tpu.vector_store %arg6[%c0_33, %c0_34], %51 {strides = array<i32>} : memref<512x128xf32, #tpu.memory_space<vmem>>, vector<512x128xf32>,
    return
  }
  func.func @transform_0(%arg0: i32, %arg1: i32) -> (i32, i32) {
    %c0_i32 = arith.constant 0 : i32
    %c0_i32_0 = arith.constant 0 : i32
    return %arg1, %c0_i32 : i32, i32
  }
  func.func @transform_1(%arg0: i32, %arg1: i32) -> (i32, i32) {
    %c1_i32 = arith.constant 1 : i32
    %0 = arith.addi %arg1, %c1_i32 : i32
    %c0_i32 = arith.constant 0 : i32
    %c0_i32_0 = arith.constant 0 : i32
    return %0, %c0_i32 : i32, i32
  }
  func.func @transform_2(%arg0: i32, %arg1: i32) -> (i32, i32, i32) {
    %c0_i32 = arith.constant 0 : i32
    %c0_i32_0 = arith.constant 0 : i32
    %c0_i32_1 = arith.constant 0 : i32
    return %c0_i32, %c0_i32_0, %arg0 : i32, i32, i32
  }
  func.func @transform_3(%arg0: i32, %arg1: i32) -> (i32, i32) {
    %c0_i32 = arith.constant 0 : i32
    %c0_i32_0 = arith.constant 0 : i32
    return %c0_i32, %arg0 : i32, i32
  }
  func.func @transform_4(%arg0: i32, %arg1: i32) -> (i32, i32) {
    %c0_i32 = arith.constant 0 : i32
    return %arg1, %arg0 : i32, i32
  }
}

</mosaic_0001>

<bundles_post_ra>
// kernel: tpu_custom_call.1
= control target key start
LH: loop header
LB: loop body
LE: loop exit
PB: predicated region body
PF: predicated region fallthrough
CT: control target
= control target key end

     0   :  { %9 = vsyncpa [#allocation3], 0  ;;  %s7718_s0 = inlined_call_operand.vmem [shape: f32[1536,4], index: 0, kind: input, shape index: {}]   ;;  %s7719_s1 = inlined_call_operand.vmem [shape: f32[1536,4], index: 1, kind: input, shape index: {}]   ;;  %s7720_s2 = inlined_call_operand.vmem [shape: f32[9,4,128], index: 2, kind: input, shape index: {}]   ;;  %s7721_s3 = inlined_call_operand.vmem [shape: f32[1,128], index: 3, kind: input, shape index: {}]   ;;  %s7722_s4 = inlined_call_operand.hbm [shape: f32[1024,128], index: 4, kind: output, shape index: {}]  }
   0x1   :  { %11 = vsyncpa [#allocation3 + $0x1], 0  ;;  %s5682_s15 = smov 0   ;;  %s5684_s16 = smov 0  }
   0x2   :  { %s5686_s17 = smov 0   ;;  %s5688_s18 = smov 0  }
   0x3   :  { %s5690_s19 = smov 0   ;;  %s5692_s20 = smov 0  }
   0x4 LB: > { %s4801_s21 = sadd.s32 4294967295, %s5653_s20   ;;  %s4802_s22 = sadd.s32 4294967294, %s5653_s20   ;;  %s5653_s20 = sphi %s5692_s20, %s17_s20   ;;  %s5649_s19 = sphi %s5690_s19, %s7842_s19   ;;  %s5645_s18 = sphi %s5688_s18, %s7841_s18   ;;  %s5641_s17 = sphi %s5686_s17, %s7840_s17   ;;  %s5637_s16 = sphi %s5684_s16, %s7839_s16   ;;  %s5633_s15 = sphi %s5682_s15, %s7838_s15  }
   0x5   : > { %s26_s23 = sadd.s32 1, %s5649_s19  ;;  %s144_s24 = sadd.s32 1, %s5641_s17 }
   0x6   : > { %p27_p0 = scmp.ge.s32.totalorder %s26_s23, 2  ;;  %p154_p1 = scmp.ne.s32.totalorder %s5641_s17, %s5637_s16 }
   0x7   : > { %p155_p2 = scmp.eq.s32.totalorder %s4801_s21, 1  ;;  %p160_p3 = scmp.ne.s32.totalorder %s5637_s16, %s5633_s15 }
   0x8   : > { %s7844_s23 = smov (%p27_p0, %s26_s23), 0  ;;  %p161_p5 = scmp.eq.s32.totalorder %s4802_s22, 1 }
   0x9   : > { %p5722_p4 = por %p155_p2, %p154_p1  ;;  %s139_s26 = ssub.s32 %s5649_s19, %s7844_s23 }
   0xa   : > { %p4807_p6 = scmp.ge.s32.totalorder %s5653_s20, 1  ;;  %p142_p7 = scmp.eq.s32.totalorder %s139_s26, 0 }
   0xb   : > { %p5729_p8 = por %p161_p5, %p160_p3  ;;  %p212_p9 = scmp.lt.s32.totalorder %s5653_s20, 3 }
   0xc   : > { %s5735_s28 = scalar_select %p142_p7, %s5641_s17, %s144_s24  }
   0xd   : > { %p213_p10 = pnand %p4807_p6, %p212_p9 }
   0xf   : > { %216 = sbr.rel (%p213_p10) target bundleno = 1322 (0x52a), region = 36 }
  0x14   : > { %v4813_v0 = vld [vmem:[%s7720_s2 + $0x4] sm:$0xf]  ;;  %vm669_vm0 = vcmask 1043456   ;;  %s5741_s5 = sshll.u32 %s5645_s18, 6  ;;  %v4944_v1 = vld [vmem:[%s7720_s2 + $0x8] sm:$0xf] }
  0x15   : > { %5414 = vmatpush.msk.msra.mxu1 %vm669_vm0, %v4813_v0  ;;  %5415 = vmatpush.msk.msra.mxu2 %vm669_vm0, %v4813_v0  ;;  %p252_p11 = scmp.lt.s32.totalorder %s5741_s5, 191  ;;  %v5010_v2 = vld [vmem:[%s7720_s2 + $0xc] sm:$0xf]  ;;  %v342_v3 = vld [vmem:[%s7720_s2] sm:$0xf]  ;;  %vm410_vm1 = vcmask 1046528  }
  0x16   : > { %5416 = vmatpush.msk.msra.mxu3 %vm669_vm0, %v4813_v0  ;;  %v5076_v4 = vld [vmem:[%s7720_s2 + $0x10] sm:$0xf]  ;;  %4814 = vmatpush.msk.msra.mxu0 %vm669_vm0, %v4813_v0  ;;  %vm540_vm2 = vcmask 31744   ;;  %s5412_s29 = sadd.s32 64, %s5741_s5  ;;  %vm1224_vm3 = vcmask 1045504   ;;  %vm2048_vm4 = vcmask 1044480  }
  0x17   : > { %4945 = vmatpush.msk.msrb.mxu2 %vm669_vm0, %v4944_v1  ;;  %s253_s14 = scalar_select %p252_p11, %s5741_s5, 191  ;;  %4879 = vmatpush.msk.msrb.mxu1 %vm669_vm0, %v342_v3  ;;  %vm3407_vm5 = vcmask 1042432   ;;  %vm3943_vm6 = vcmask 1041408  }
  0x18   : > { %5011 = vmatpush.msk.msrb.mxu3 %vm669_vm0, %v5010_v2  ;;  %5077 = vmatpush.msk.msrb.mxu0 %vm669_vm0, %v5076_v4  ;;  %p6029_p12 = scmp.lt.s32.totalorder %s5412_s29, 191  ;;  %s248_s24 = sand.u32 1, %s5637_s16  }
  0x19   : > { %s4810_s21 = sshll.u32 %s253_s14, 3  ;;  %s5413_s10 = sshll.u32 %s5645_s18, 9 }
  0x1a   : > { %s5768_s26 = scalar_lea.vmem %s7718_s0, %s4810_s21  ;;  %s7846_s29 = smov (!%p6029_p12, %s5412_s29), 191 }
  0x1b   : > { %v5771_v5 = vld [vmem:[%s5768_s26 + $0x80] sm:$0xff]  ;;  %v5774_v6 = vld [vmem:[%s5768_s26 + $0x88] sm:$0xff]  ;;  %v5789_v17 = vld [vmem:[%s5768_s26 + $0x90] sm:$0xff]  ;;  %s4812_s11 = sshll.u32 %s7846_s29, 3  ;;  %s4808_s29 = sshll.u32 %s248_s24, 9 }
  0x1c   : > { %v5777_v7 = vld [vmem:[%s5768_s26 + $0x100] sm:$0xff]  ;;  %v442_v8 = vrot.slane %v5771_v5, 1  ;;  %v444_v9 = vrot.slane %v5774_v6, 1  ;;  %v306_v10 = vld [vmem:[%s5768_s26 + $0x108] sm:$0xff]  ;;  %v307_v20 = vld [vmem:[%s5768_s26 + $0x110] sm:$0xff]  ;;  %v446_v27 = vrot.slane %v5789_v17, 1  ;;  %s6080_s22 = scalar_lea.vmem %s7719_s1, %s4812_s11  ;;  %s4686_s13 = scalar_lea.hbm %s7722_s4, %s5413_s10 }
  0x1d   : > { %v474_v11 = vrot.slane %v5777_v7, 1  ;;  %v5784_v12 = vld [vmem:[%s5768_s26 + $0x180] sm:$0xff]  ;;  %v322_v13 = vld [vmem:[%s5768_s26 + $0x188] sm:$0xff]  ;;  %v476_v14 = vrot.slane %v306_v10, 1  ;;  %v323_v23 = vld [vmem:[%s5768_s26 + $0x190] sm:$0xff]  ;;  %v478_v29 = vrot.slane %v307_v20, 1 }
  0x1e   : > { %v506_v15 = vrot.slane %v5784_v12, 1  ;;  %v508_v16 = vrot.slane %v322_v13, 1  ;;  %v5792_v18 = vld [vmem:[%s5768_s26] sm:$0xff]  ;;  %v445_v19 = vsel %vm410_vm1, %v442_v8, %v444_v9  ;;  %v5799_v21 = vld [vmem:[%s5768_s26 + $0x8] sm:$0xff]  ;;  %v5815_v28 = vld [vmem:[%s5768_s26 + $0x10] sm:$0xff]  ;;  %v510_v31 = vrot.slane %v323_v23, 1 }
  0x1f   : > { %v411_v22 = vrot.slane %v5792_v18, 1  ;;  %4831 = vmatmul.msk.f32.vlgmr.msra.gmra.mxu1 %vm540_vm2, %v445_v19  ;;  %v477_v24 = vsel %vm410_vm1, %v474_v11, %v476_v14  ;;  %v412_v26 = vrot.slane %v5799_v21, 1  ;;  %v414_v32 = vrot.slane %v5815_v28, 1  ;;  %v5824_v36 = vld [vmem:[%s5768_s26 + $0x98] sm:$0xff]  ;;  %v5842_v48 = vld [vmem:[%s5768_s26 + $0xa0] sm:$0xff]  ;;  %v5860_v60 = vld [vmem:[%s5768_s26 + $0xa8] sm:$0xff] }
  0x20   : > { %v509_v25 = vsel %vm410_vm1, %v506_v15, %v508_v16  ;;  %4847 = vmatmul.msk.f32.vlgmr.msra.gmra.mxu2 %vm540_vm2, %v477_v24  ;;  %v447_v33 = vsel %vm410_vm1, %v444_v9, %v446_v27  ;;  %v479_v34 = vsel %vm410_vm1, %v476_v14, %v478_v29  ;;  %v511_v35 = vsel %vm410_vm1, %v508_v16, %v510_v31  ;;  %v308_v37 = vld [vmem:[%s5768_s26 + $0x118] sm:$0xff]  ;;  %v309_v49 = vld [vmem:[%s5768_s26 + $0x120] sm:$0xff]  ;;  %v310_v61 = vld [vmem:[%s5768_s26 + $0x128] sm:$0xff]  ;;  %s7113_s6 = scalar_lea.vmem [#allocation2], %s4808_s29  ;;  %s4689_s21 = sshll.u32 %s4686_s13, 4  ;;  %s4690_s21 = int_to_ptr.hbm [resolvable:$true] %s4689_s21 }
  0x21   : > { %4863 = vmatmul.msk.f32.vlgmr.msra.gmra.mxu3 %vm540_vm2, %v509_v25  ;;  %v413_v30 = vsel %vm410_vm1, %v411_v22, %v412_v26  ;;  %v324_v38 = vld [vmem:[%s5768_s26 + $0x198] sm:$0xff]  ;;  %v415_v39 = vsel %vm410_vm1, %v412_v26, %v414_v32  ;;  %v448_v40 = vrot.slane %v5824_v36, 1  ;;  %v480_v42 = vrot.slane %v308_v37, 1  ;;  %v325_v50 = vld [vmem:[%s5768_s26 + $0x1a0] sm:$0xff]  ;;  %v326_v62 = vld [vmem:[%s5768_s26 + $0x1a8] sm:$0xff]  ;;  %s4687_s14 = sshll.u32 %s7113_s6, 4  ;;  %s4688_s14 = int_to_ptr.vmem [resolvable:$true] %s4687_s14 }
  0x22   : > { %4815 = vmatmul.msk.f32.vlgmr.msra.gmra.mxu0 %vm540_vm2, %v413_v30  ;;  %v5834_v41 = vld [vmem:[%s5768_s26 + $0x18] sm:$0xff]  ;;  %v512_v43 = vrot.slane %v324_v38, 1  ;;  %v450_v52 = vrot.slane %v5842_v48, 1  ;;  %v5852_v53 = vld [vmem:[%s5768_s26 + $0x20] sm:$0xff]  ;;  %v482_v54 = vrot.slane %v309_v49, 1  ;;  %v514_v55 = vrot.slane %v325_v50, 1 }
  0x23   : > { %v416_v44 = vrot.slane %v5834_v41, 1  ;;  %v449_v45 = vsel %vm410_vm1, %v446_v27, %v448_v40  ;;  %v481_v46 = vsel %vm410_vm1, %v478_v29, %v480_v42  ;;  %v418_v56 = vrot.slane %v5852_v53, 1  ;;  %v5870_v1 = vld [vmem:[%s5768_s26 + $0x28] sm:$0xff]  ;;  %v5878_v14 = vld [vmem:[%s5768_s26 + $0xb0] sm:$0xff]  ;;  %v5906_v37 = vld [vmem:[%s5768_s26 + $0x38] sm:$0xff]  ;;  %s4674_s18 = scalar_lea.sflag [#allocation3], %s248_s24 }
  0x24   : > { %v513_v47 = vsel %vm410_vm1, %v510_v31, %v512_v43  ;;  %v451_v57 = vsel %vm410_vm1, %v448_v40, %v450_v52  ;;  %v483_v58 = vsel %vm410_vm1, %v480_v42, %v482_v54  ;;  %v515_v59 = vsel %vm410_vm1, %v512_v43, %v514_v55  ;;  %v311_v16 = vld [vmem:[%s5768_s26 + $0x130] sm:$0xff]  ;;  %v5896_v31 = vld [vmem:[%s5768_s26 + $0xb8] sm:$0xff]  ;;  %s5595_s7 = scalar_lea.hbm %s7722_s4, 1024 }
  0x25   : > { %v417_v51 = vsel %vm410_vm1, %v414_v32, %v416_v44  ;;  %v419_v63 = vsel %vm410_vm1, %v416_v44, %v418_v56  ;;  %v452_v0 = vrot.slane %v5860_v60, 1  ;;  %v484_v2 = vrot.slane %v310_v61, 1  ;;  %v327_v19 = vld [vmem:[%s5768_s26 + $0x1b0] sm:$0xff]  ;;  %v312_v32 = vld [vmem:[%s5768_s26 + $0x138] sm:$0xff]  ;;  %v314_v61 = vld [vmem:[%s5768_s26 + $0x148] sm:$0xff] }
  0x26   : > { %v516_v3 = vrot.slane %v326_v62, 1  ;;  %v420_v4 = vrot.slane %v5870_v1, 1  ;;  %v454_v22 = vrot.slane %v5878_v14, 1  ;;  %v5888_v23 = vld [vmem:[%s5768_s26 + $0x30] sm:$0xff]  ;;  %v486_v24 = vrot.slane %v311_v16, 1  ;;  %v330_v62 = vld [vmem:[%s5768_s26 + $0x1c8] sm:$0xff] }
  0x27   : > { %4832 = vmatmul.msk.f32.gmra.mxu1 %vm540_vm2, %v447_v33  ;;  %v453_v9 = vsel %vm410_vm1, %v450_v52, %v452_v0  ;;  %v485_v10 = vsel %vm410_vm1, %v482_v54, %v484_v2  ;;  %v518_v25 = vrot.slane %v327_v19, 1  ;;  %v422_v26 = vrot.slane %v5888_v23, 1  ;;  %v328_v33 = vld [vmem:[%s5768_s26 + $0x1b8] sm:$0xff]  ;;  %v5950_v19 = vld [vmem:[%s5768_s26 + $0xd0] sm:$0xff] }
  0x28   : > { %4848 = vmatmul.msk.f32.gmra.mxu2 %vm540_vm2, %v479_v34  ;;  %v517_v13 = vsel %vm410_vm1, %v514_v55, %v516_v3  ;;  %v421_v20 = vsel %vm410_vm1, %v418_v56, %v420_v4  ;;  %v455_v27 = vsel %vm410_vm1, %v452_v0, %v454_v22  ;;  %v487_v29 = vsel %vm410_vm1, %v484_v2, %v486_v24  ;;  %v5942_v2 = vld [vmem:[%s5768_s26 + $0x48] sm:$0xff] }
  0x29   : > { %4864 = vmatmul.msk.f32.gmra.mxu3 %vm540_vm2, %v511_v35  ;;  %v519_v30 = vsel %vm410_vm1, %v516_v3, %v518_v25  ;;  %v423_v34 = vsel %vm410_vm1, %v420_v4, %v422_v26  ;;  %v456_v35 = vrot.slane %v5896_v31, 1  ;;  %v488_v38 = vrot.slane %v312_v32, 1 }
  0x2a   : > { %4816 = vmatmul.msk.f32.gmra.mxu0 %vm540_vm2, %v415_v39  ;;  %v520_v39 = vrot.slane %v328_v33, 1  ;;  %v424_v40 = vrot.slane %v5906_v37, 1  ;;  %v492_v3 = vrot.slane %v314_v61, 1  ;;  %v524_v4 = vrot.slane %v330_v62, 1  ;;  %v5996_v61 = vld [vmem:[%s5768_s26 + $0x60] sm:$0xff] }
  0x2b   : > { %v457_v42 = vsel %vm410_vm1, %v454_v22, %v456_v35  ;;  %v489_v43 = vsel %vm410_vm1, %v486_v24, %v488_v38  ;;  %v331_v22 = vld [vmem:[%s5768_s26 + $0x1d0] sm:$0xff]  ;;  %v1225_v7 = vrot.slane %v5792_v18, 2  ;;  %v1228_v12 = vrot.slane %v5815_v28, 2 }
  0x2c   : > { %v521_v44 = vsel %vm410_vm1, %v518_v25, %v520_v39  ;;  %v425_v49 = vsel %vm410_vm1, %v422_v26, %v424_v40  ;;  %v462_v25 = vrot.slane %v5950_v19, 1  ;;  %v5960_v26 = vld [vmem:[%s5768_s26 + $0x50] sm:$0xff] }
  0x2f   : > { %4833 = vmatmul.msk.f32.gmra.mxu1 %vm540_vm2, %v449_v45  ;;  %v5914_v45 = vld [vmem:[%s5768_s26 + $0xc0] sm:$0xff] }
  0x30   : > { %4849 = vmatmul.msk.f32.gmra.mxu2 %vm540_vm2, %v481_v46  ;;  %v313_v46 = vld [vmem:[%s5768_s26 + $0x140] sm:$0xff]  ;;  %v458_v50 = vrot.slane %v5914_v45, 1 }
  0x31   : > { %4865 = vmatmul.msk.f32.gmra.mxu3 %vm540_vm2, %v513_v47  ;;  %v329_v47 = vld [vmem:[%s5768_s26 + $0x1c0] sm:$0xff]  ;;  %v490_v52 = vrot.slane %v313_v46, 1 }
  0x32   : > { %4817 = vmatmul.msk.f32.gmra.mxu0 %vm540_vm2, %v417_v51  ;;  %v5924_v51 = vld [vmem:[%s5768_s26 + $0x40] sm:$0xff]  ;;  %v522_v54 = vrot.slane %v329_v47, 1  ;;  %v459_v56 = vsel %vm410_vm1, %v456_v35, %v458_v50  ;;  %v5968_v35 = vld [vmem:[%s5768_s26 + $0xd8] sm:$0xff] }
  0x33   : > { %v426_v55 = vrot.slane %v5924_v51, 1 }
  0x34   : > { %v525_v16 = vsel %vm410_vm1, %v522_v54, %v524_v4 }
  0x37   : > { %4834 = vmatmul.msk.f32.gmra.mxu1 %vm540_vm2, %v451_v57  ;;  %v491_v57 = vsel %vm410_vm1, %v488_v38, %v490_v52  ;;  %v316_v38 = vld [vmem:[%s5768_s26 + $0x158] sm:$0xff] }
  0x38   : > { %4850 = vmatmul.msk.f32.gmra.mxu2 %vm540_vm2, %v483_v58  ;;  %v523_v58 = vsel %vm410_vm1, %v520_v39, %v522_v54  ;;  %v332_v39 = vld [vmem:[%s5768_s26 + $0x1d8] sm:$0xff]  ;;  %v5986_v54 = vld [vmem:[%s5768_s26 + $0xe0] sm:$0xff] }
  0x39   : > { %4866 = vmatmul.msk.f32.gmra.mxu3 %vm540_vm2, %v515_v59  ;;  %v5932_v59 = vld [vmem:[%s5768_s26 + $0xc8] sm:$0xff]  ;;  %v528_v46 = vrot.slane %v332_v39, 1  ;;  %v335_v39 = vld [vmem:[%s5768_s26 + $0x1f0] sm:$0xff] }
  0x3a   : > { %4818 = vmatmul.msk.f32.gmra.mxu0 %vm540_vm2, %v419_v63  ;;  %v427_v63 = vsel %vm410_vm1, %v424_v40, %v426_v55  ;;  %v460_v0 = vrot.slane %v5932_v59, 1 }
  0x3c   : > { %v463_v32 = vsel %vm410_vm1, %v460_v0, %v462_v25 }
  0x3f   : > { %4835 = vmatmul.msk.f32.gmra.mxu1 %vm540_vm2, %v453_v9  ;;  %v428_v9 = vrot.slane %v5942_v2, 1 }
  0x40   : > { %4851 = vmatmul.msk.f32.gmra.mxu2 %vm540_vm2, %v485_v10  ;;  %v461_v10 = vsel %vm410_vm1, %v458_v50, %v460_v0  ;;  %v434_v0 = vrot.slane %v5996_v61, 1 }
  0x41   : > { %4867 = vmatmul.msk.f32.gmra.mxu3 %vm540_vm2, %v517_v13  ;;  %v493_v13 = vsel %vm410_vm1, %v490_v52, %v492_v3  ;;  %v429_v24 = vsel %vm410_vm1, %v426_v55, %v428_v9  ;;  %v317_v55 = vld [vmem:[%s5768_s26 + $0x160] sm:$0xff] }
  0x42   : > { %4819 = vmatmul.msk.f32.gmra.mxu0 %vm540_vm2, %v421_v20  ;;  %v315_v20 = vld [vmem:[%s5768_s26 + $0x150] sm:$0xff]  ;;  %v498_v62 = vrot.slane %v317_v55, 1 }
  0x43   : > { %v5142_v55 = vld [vmem:[%s7720_s2 + $0x14] sm:$0xf] }
  0x44   : > { %5143 = vmatpush.msk.msra.mxu1 %vm669_vm0, %v5142_v55 }
  0x47   : > { %4836 = vmatmul.msk.f32.gmra.mxu1 %vm540_vm2, %v455_v27  ;;  %v494_v27 = vrot.slane %v315_v20, 1 }
  0x48   : > { %4852 = vmatmul.msk.f32.gmra.mxu2 %vm540_vm2, %v487_v29  ;;  %v526_v29 = vrot.slane %v331_v22, 1 }
  0x49   : > { %4868 = vmatmul.msk.f32.gmra.mxu3 %vm540_vm2, %v519_v30  ;;  %v430_v30 = vrot.slane %v5960_v26, 1  ;;  %v495_v33 = vsel %vm410_vm1, %v492_v3, %v494_v27 }
  0x4a   : > { %4820 = vmatmul.msk.f32.gmra.mxu0 %vm540_vm2, %v423_v34  ;;  %v527_v34 = vsel %vm410_vm1, %v524_v4, %v526_v29  ;;  %v529_v52 = vsel %vm410_vm1, %v526_v29, %v528_v46 }
  0x4b   : > { %v431_v40 = vsel %vm410_vm1, %v428_v9, %v430_v30 }
  0x4f   : > { %4837 = vmatmul.msk.f32.gmra.mxu1 %vm540_vm2, %v457_v42  ;;  %v464_v42 = vrot.slane %v5968_v35, 1 }
  0x50   : > { %4853 = vmatmul.msk.f32.gmra.mxu2 %vm540_vm2, %v489_v43  ;;  %v5978_v43 = vld [vmem:[%s5768_s26 + $0x58] sm:$0xff] }
  0x51   : > { %4869 = vmatmul.msk.f32.gmra.mxu3 %vm540_vm2, %v521_v44  ;;  %v496_v44 = vrot.slane %v316_v38, 1  ;;  %v432_v47 = vrot.slane %v5978_v43, 1  ;;  %v319_v38 = vld [vmem:[%s5768_s26 + $0x170] sm:$0xff] }
  0x52   : > { %4821 = vmatmul.msk.f32.gmra.mxu0 %vm540_vm2, %v425_v49  ;;  %v465_v49 = vsel %vm410_vm1, %v462_v25, %v464_v42 }
  0x53   : > { %v497_v50 = vsel %vm410_vm1, %v494_v27, %v496_v44  ;;  %v499_v4 = vsel %vm410_vm1, %v496_v44, %v498_v62  ;;  %v435_v20 = vsel %vm410_vm1, %v432_v47, %v434_v0  ;;  %v6037_v44 = vld [vmem:[%s5768_s26 + $0x70] sm:$0xff] }
  0x57   : > { %4838 = vmatmul.msk.f32.gmra.mxu1 %vm540_vm2, %v459_v56  ;;  %v333_v56 = vld [vmem:[%s5768_s26 + $0x1e0] sm:$0xff] }
  0x58   : > { %4854 = vmatmul.msk.f32.gmra.mxu2 %vm540_vm2, %v491_v57  ;;  %v433_v57 = vsel %vm410_vm1, %v430_v30, %v432_v47  ;;  %v5274_v47 = vld [vmem:[%s7720_s2 + $0x1c] sm:$0xf] }
  0x59   : > { %4870 = vmatmul.msk.f32.gmra.mxu3 %vm540_vm2, %v523_v58  ;;  %v466_v58 = vrot.slane %v5986_v54, 1 }
  0x5a   : > { %4822 = vmatmul.msk.f32.gmra.mxu0 %vm540_vm2, %v427_v63  ;;  %v530_v63 = vrot.slane %v333_v56, 1  ;;  %5275 = vmatpush.msk.msra.mxu3 %vm669_vm0, %v5274_v47  ;;  %v2050_v47 = vrot.slane %v5834_v41, 3 }
  0x5b   : > { %v467_v3 = vsel %vm410_vm1, %v464_v42, %v466_v58 }
  0x5c   : > { %v531_v9 = vsel %vm410_vm1, %v528_v46, %v530_v63  ;;  %v5208_v46 = vld [vmem:[%s7720_s2 + $0x18] sm:$0xf] }
  0x5d   : > { %5209 = vmatpush.msk.msra.mxu2 %vm669_vm0, %v5208_v46  ;;  %v2049_v46 = vrot.slane %v5815_v28, 3 }
  0x5f   : > { %4839 = vmatmul.msk.f32.gmra.mxu1 %vm540_vm2, %v461_v10  ;;  %v6004_v10 = vld [vmem:[%s5768_s26 + $0xe8] sm:$0xff]  ;;  %v2051_v55 = vsel %vm2048_vm4, %v2049_v46, %v2050_v47  ;;  %v2058_v46 = vrot.slane %v5906_v37, 3 }
  0x60   : > { %4855 = vmatmul.msk.f32.gmra.mxu2 %vm540_vm2, %v493_v13  ;;  %v318_v13 = vld [vmem:[%s5768_s26 + $0x168] sm:$0xff]  ;;  %v468_v22 = vrot.slane %v6004_v10, 1 }
  0x61   : > { %4871 = vmatmul.msk.f32.gmra.mxu3 %vm540_vm2, %v525_v16  ;;  %v334_v16 = vld [vmem:[%s5768_s26 + $0x1e8] sm:$0xff]  ;;  %v500_v25 = vrot.slane %v318_v13, 1  ;;  %v5340_v13 = vld [vmem:[%s7720_s2 + $0x20] sm:$0xf] }
  0x62   : > { %4823 = vmatmul.msk.f32.gmra.mxu0 %vm540_vm2, %v429_v24  ;;  %v6014_v24 = vld [vmem:[%s5768_s26 + $0x68] sm:$0xff]  ;;  %v532_v27 = vrot.slane %v334_v16, 1  ;;  %v469_v30 = vsel %vm410_vm1, %v466_v58, %v468_v22 }
  0x63   : > { %v436_v29 = vrot.slane %v6014_v24, 1  ;;  %5341 = vmatpush.msk.msra.mxu0 %vm669_vm0, %v5340_v13 }
  0x67   : > { %4840 = vmatmul.msk.f32.gmra.mxu1 %vm540_vm2, %v463_v32  ;;  %v501_v32 = vsel %vm410_vm1, %v498_v62, %v500_v25  ;;  %v6059_v62 = vld [vmem:[%s5768_s26 + $0xf8] sm:$0xff] }
  0x68   : > { %4856 = vmatmul.msk.f32.gmra.mxu2 %vm540_vm2, %v495_v33  ;;  %v533_v33 = vsel %vm410_vm1, %v530_v63, %v532_v27  ;;  %v320_v63 = vld [vmem:[%s5768_s26 + $0x178] sm:$0xff] }
  0x69   : > { %4872 = vmatmul.msk.f32.gmra.mxu3 %vm540_vm2, %v527_v34  ;;  %v6023_v34 = vld [vmem:[%s5768_s26 + $0xf0] sm:$0xff]  ;;  %v504_v16 = vrot.slane %v320_v63, 1  ;;  %v2052_v63 = vrot.slane %v5852_v53, 3 }
  0x6a   : > { %4824 = vmatmul.msk.f32.gmra.mxu0 %vm540_vm2, %v431_v40  ;;  %v437_v40 = vsel %vm410_vm1, %v434_v0, %v436_v29  ;;  %v470_v42 = vrot.slane %v6023_v34, 1  ;;  %v336_v0 = vld [vmem:[%s5768_s26 + $0x1f8] sm:$0xff] }
  0x6b   : > { %v2053_v13 = vsel %vm2048_vm4, %v2050_v47, %v2052_v63 }
  0x6c   : > { %v471_v56 = vsel %vm410_vm1, %v468_v22, %v470_v42 }
  0x6f   : > { %4841 = vmatmul.msk.f32.gmra.mxu1 %vm540_vm2, %v465_v49  ;;  %v502_v49 = vrot.slane %v319_v38, 1 }
  0x70   : > { %4857 = vmatmul.msk.f32.gmra.mxu2 %vm540_vm2, %v497_v50  ;;  %v534_v50 = vrot.slane %v335_v39, 1  ;;  %v507_v39 = vsel %vm410_vm1, %v504_v16, %v506_v15  ;;  %v1230_v15 = vrot.slane %v5834_v41, 2 }
  0x71   : > { %4873 = vmatmul.msk.f32.gmra.mxu3 %vm540_vm2, %v529_v52  ;;  %v438_v52 = vrot.slane %v6037_v44, 1 }
  0x72   : > { %4825 = vmatmul.msk.f32.gmra.mxu0 %vm540_vm2, %v433_v57  ;;  %v503_v57 = vsel %vm410_vm1, %v500_v25, %v502_v49  ;;  %v535_v58 = vsel %vm410_vm1, %v532_v27, %v534_v50  ;;  %v505_v27 = vsel %vm410_vm1, %v502_v49, %v504_v16  ;;  %v1234_v16 = vrot.slane %v5870_v1, 2 }
  0x77   : > { %4842 = vmatmul.msk.f32.gmra.mxu1 %vm540_vm2, %v467_v3  ;;  %v439_v3 = vsel %vm410_vm1, %v436_v29, %v438_v52 }
  0x78   : > { %4858 = vmatmul.msk.f32.gmra.mxu2 %vm540_vm2, %v499_v4  ;;  %v472_v4 = vrot.slane %v6059_v62, 1 }
  0x79   : > { %4874 = vmatmul.msk.f32.gmra.mxu3 %vm540_vm2, %v531_v9  ;;  %v6069_v9 = vld [vmem:[%s5768_s26 + $0x78] sm:$0xff] }
  0x7a   : > { %4826 = vmatmul.msk.f32.gmra.mxu0 %vm540_vm2, %v435_v20  ;;  %v536_v20 = vrot.slane %v336_v0, 1  ;;  %v440_v22 = vrot.slane %v6069_v9, 1  ;;  %v473_v25 = vsel %vm410_vm1, %v470_v42, %v472_v4  ;;  %v475_v38 = vsel %vm410_vm1, %v472_v4, %v474_v11 }
  0x7b   : > { %v1226_v11 = vrot.slane %v5799_v21, 2 }
  0x7c   : > { %v537_v29 = vsel %vm410_vm1, %v534_v50, %v536_v20  ;;  %v443_v42 = vsel %vm410_vm1, %v440_v22, %v442_v8  ;;  %v1231_v50 = vsel %vm1224_vm3, %v1228_v12, %v1230_v15 }
  0x7d   : > { %v1227_v49 = vsel %vm1224_vm3, %v1225_v7, %v1226_v11 }
  0x7f   : > { %4843 = vmatmul.msk.f32.gmra.mxu1 %vm540_vm2, %v469_v30  ;;  %v337_v30 = vld [vmem:[%s6080_s22] sm:$0xff] }
  0x80   : > { %4859 = vmatmul.msk.f32.gmra.mxu2 %vm540_vm2, %v501_v32  ;;  %v441_v32 = vsel %vm410_vm1, %v438_v52, %v440_v22 }
  0x81   : > { %4875 = vmatmul.msk.f32.gmra.mxu3 %vm540_vm2, %v533_v33  ;;  %v538_v33 = vrot.slane %v337_v30, 1 }
  0x82   : > { %4827 = vmatmul.msk.f32.gmra.mxu0 %vm540_vm2, %v437_v40 }
  0x83   : > { %v539_v40 = vsel %vm410_vm1, %v536_v20, %v538_v33 }
  0x87   : > { %4844 = vmatmul.msk.f32.gmra.mxu1 %vm540_vm2, %v471_v56  ;;  %v1232_v56 = vrot.slane %v5852_v53, 2 }
  0x88   : > { %4860 = vmatmul.msk.f32.gmra.mxu2 %vm540_vm2, %v503_v57 }
  0x89   : > { %4876 = vmatmul.msk.f32.gmra.mxu3 %vm540_vm2, %v535_v58 }
  0x8a   : > { %4828 = vmatmul.msk.f32.gmra.mxu0 %vm540_vm2, %v439_v3  ;;  %v1233_v3 = vsel %vm1224_vm3, %v1230_v15, %v1232_v56 }
  0x8f   : > { %4845 = vmatmul.msk.f32.gmra.mxu1 %vm540_vm2, %v473_v25  ;;  %v2054_v25 = vrot.slane %v5870_v1, 3 }
  0x90   : > { %4861 = vmatmul.msk.f32.gmra.mxu2 %vm540_vm2, %v505_v27 }
  0x91   : > { %4877 = vmatmul.msk.f32.gmra.mxu3 %vm540_vm2, %v537_v29  ;;  %v2055_v30 = vsel %vm2048_vm4, %v2052_v63, %v2054_v25 }
  0x92   : > { %4829 = vmatmul.msk.f32.gmra.mxu0 %vm540_vm2, %v441_v32  ;;  %v1236_v32 = vrot.slane %v5888_v23, 2 }
  0x97   : > { %4846 = vmatmul.msk.f32.gmra.mxu1 %vm540_vm2, %v475_v38 }
  0x98   : > { %4862 = vmatmul.msk.f32.gmra.mxu2 %vm540_vm2, %v507_v39  ;;  %v2056_v39 = vrot.slane %v5888_v23, 3 }
  0x99   : > { %4878 = vmatmul.msk.f32.gmra.mxu3 %vm540_vm2, %v539_v40 }
  0x9a   : > { %4830 = vmatmul.msk.f32.gmra.mxu0 %vm540_vm2, %v443_v42  ;;  %v2057_v7 = vsel %vm2048_vm4, %v2054_v25, %v2056_v39  ;;  %v1242_v25 = vrot.slane %v5942_v2, 2 }
  0x9c   : > { %v6111_v8 = vpop.f32.mrf.mxu1 }
  0x9f   : > { %4880 = vmatmul.msk.f32.vlgmr.msrb.gmra.mxu1 %vm540_vm2, %v5792_v18  ;;  %v6117_v52 = vpop.f32.mrf.mxu0  ;;  %v1229_v18 = vsel %vm1224_vm3, %v1226_v11, %v1228_v12  ;;  %v1238_v11 = vrot.slane %v5906_v37, 2 }
  0xa0   : > { %4946 = vmatmul.msk.f32.vlgmr.msrb.gmra.mxu2 %vm540_vm2, %v1227_v49 }
  0xa1   : > { %5012 = vmatmul.msk.f32.vlgmr.msrb.gmra.mxu3 %vm540_vm2, %v1231_v50 }
  0xa2   : > { %5078 = vmatmul.msk.f32.vlgmr.msrb.gmra.mxu0 %vm540_vm2, %v2051_v55  ;;  %v1240_v55 = vrot.slane %v5924_v51, 2 }
  0xa3   : > { %v6124_v57 = vpop.f32.mrf.mxu2 }
  0xa4   : > { %7726 = vst [vmem:[#allocation5_spill] sm:$0xff] %v6124_v57  ;;  %v6126_v58 = vpop.f32.mrf.mxu3  ;;  %v6129_v0 = vpop.f32.mrf.mxu1 }
  0xa5   : > { %7727 = vst [vmem:[#allocation6_spill] sm:$0xff] %v6126_v58 }
  0xa7   : > { %4881 = vmatmul.msk.f32.gmra.mxu1 %vm540_vm2, %v5799_v21  ;;  %v6135_v4 = vpop.f32.mrf.mxu0  ;;  %v1235_v21 = vsel %vm1224_vm3, %v1232_v56, %v1234_v16 }
  0xa8   : > { %4947 = vmatmul.msk.f32.gmra.mxu2 %vm540_vm2, %v1229_v18  ;;  %v2060_v18 = vrot.slane %v5924_v51, 3 }
  0xa9   : > { %5013 = vmatmul.msk.f32.gmra.mxu3 %vm540_vm2, %v1233_v3 }
  0xaa   : > { %5079 = vmatmul.msk.f32.gmra.mxu0 %vm540_vm2, %v2053_v13 }
  0xab   : > { %v6142_v20 = vpop.f32.mrf.mxu2 }
  0xac   : > { %7728 = vst [vmem:[#allocation7_spill] sm:$0xff] %v6142_v20  ;;  %v6144_v22 = vpop.f32.mrf.mxu3  ;;  %v6147_v27 = vpop.f32.mrf.mxu1 }
  0xad   : > { %7729 = vst [vmem:[#allocation8_spill] sm:$0xff] %v6144_v22 }
  0xaf   : > { %4882 = vmatmul.msk.f32.gmra.mxu1 %vm540_vm2, %v5815_v28  ;;  %v6152_v29 = vpop.f32.mrf.mxu0  ;;  %v1237_v28 = vsel %vm1224_vm3, %v1234_v16, %v1236_v32  ;;  %v2061_v16 = vsel %vm2048_vm4, %v2058_v46, %v2060_v18 }
  0xb0   : > { %4948 = vmatmul.msk.f32.gmra.mxu2 %vm540_vm2, %v1231_v50  ;;  %v2059_v50 = vsel %vm2048_vm4, %v2056_v39, %v2058_v46 }
  0xb1   : > { %5014 = vmatmul.msk.f32.gmra.mxu3 %vm540_vm2, %v1235_v21 }
  0xb2   : > { %5080 = vmatmul.msk.f32.gmra.mxu0 %vm540_vm2, %v2055_v30 }
  0xb3   : > { %v6159_v33 = vpop.f32.mrf.mxu2 }
  0xb4   : > { %7730 = vst [vmem:[#allocation9_spill] sm:$0xff] %v6159_v33  ;;  %v6161_v38 = vpop.f32.mrf.mxu3  ;;  %v6164_v40 = vpop.f32.mrf.mxu1 }
  0xb5   : > { %7731 = vst [vmem:[#allocation10_spill] sm:$0xff] %v6161_v38 }
  0xb7   : > { %4883 = vmatmul.msk.f32.gmra.mxu1 %vm540_vm2, %v5834_v41  ;;  %v6169_v42 = vpop.f32.mrf.mxu0  ;;  %v1239_v41 = vsel %vm1224_vm3, %v1236_v32, %v1238_v11  ;;  %v2062_v32 = vrot.slane %v5942_v2, 3 }
  0xb8   : > { %4949 = vmatmul.msk.f32.gmra.mxu2 %vm540_vm2, %v1233_v3 }
  0xb9   : > { %5015 = vmatmul.msk.f32.gmra.mxu3 %vm540_vm2, %v1237_v28 }
  0xba   : > { %5081 = vmatmul.msk.f32.gmra.mxu0 %vm540_vm2, %v2057_v7  ;;  %v2063_v7 = vsel %vm2048_vm4, %v2060_v18, %v2062_v32 }
  0xbb   : > { %v6176_v12 = vpop.f32.mrf.mxu2 }
  0xbc   : > { %7732 = vst [vmem:[#allocation11_spill] sm:$0xff] %v6176_v12  ;;  %v6178_v15 = vpop.f32.mrf.mxu3  ;;  %v6181_v47 = vpop.f32.mrf.mxu1 }
  0xbd   : > { %7733 = vst [vmem:[#allocation12_spill] sm:$0xff] %v6178_v15 }
  0xbf   : > { %4884 = vmatmul.msk.f32.gmra.mxu1 %vm540_vm2, %v5852_v53  ;;  %v6186_v49 = vpop.f32.mrf.mxu0  ;;  %v1241_v53 = vsel %vm1224_vm3, %v1238_v11, %v1240_v55  ;;  %v1244_v11 = vrot.slane %v5960_v26, 2 }
  0xc0   : > { %4950 = vmatmul.msk.f32.gmra.mxu2 %vm540_vm2, %v1235_v21 }
  0xc1   : > { %5016 = vmatmul.msk.f32.gmra.mxu3 %vm540_vm2, %v1239_v41 }
  0xc2   : > { %5082 = vmatmul.msk.f32.gmra.mxu0 %vm540_vm2, %v2059_v50 }
  0xc3   : > { %v6193_v56 = vpop.f32.mrf.mxu2 }
  0xc4   : > { %7734 = vst [vmem:[#allocation13_spill] sm:$0xff] %v6193_v56  ;;  %v6195_v63 = vpop.f32.mrf.mxu3  ;;  %v6198_v3 = vpop.f32.mrf.mxu1 }
  0xc5   : > { %7735 = vst [vmem:[#allocation14_spill] sm:$0xff] %v6195_v63 }
  0xc7   : > { %4885 = vmatmul.msk.f32.gmra.mxu1 %vm540_vm2, %v5870_v1  ;;  %v6203_v13 = vpop.f32.mrf.mxu0  ;;  %v1243_v1 = vsel %vm1224_vm3, %v1240_v55, %v1242_v25  ;;  %v2064_v55 = vrot.slane %v5960_v26, 3 }
  0xc8   : > { %4951 = vmatmul.msk.f32.gmra.mxu2 %vm540_vm2, %v1237_v28 }
  0xc9   : > { %5017 = vmatmul.msk.f32.gmra.mxu3 %vm540_vm2, %v1241_v53  ;;  %v2065_v18 = vsel %vm2048_vm4, %v2062_v32, %v2064_v55 }
  0xca   : > { %5083 = vmatmul.msk.f32.gmra.mxu0 %vm540_vm2, %v2061_v16 }
  0xcb   : > { %v6210_v21 = vpop.f32.mrf.mxu2 }
  0xcc   : > { %7736 = vst [vmem:[#allocation15_spill] sm:$0xff] %v6210_v21  ;;  %v6212_v30 = vpop.f32.mrf.mxu3  ;;  %v6215_v39 = vpop.f32.mrf.mxu1 }
  0xcd   : > { %7737 = vst [vmem:[#allocation16_spill] sm:$0xff] %v6212_v30 }
  0xcf   : > { %4886 = vmatmul.msk.f32.gmra.mxu1 %vm540_vm2, %v5888_v23  ;;  %v6220_v28 = vpop.f32.mrf.mxu0  ;;  %v1245_v23 = vsel %vm1224_vm3, %v1242_v25, %v1244_v11  ;;  %v2066_v25 = vrot.slane %v5978_v43, 3 }
  0xd0   : > { %4952 = vmatmul.msk.f32.gmra.mxu2 %vm540_vm2, %v1239_v41 }
  0xd1   : > { %5018 = vmatmul.msk.f32.gmra.mxu3 %vm540_vm2, %v1243_v1  ;;  %v2067_v32 = vsel %vm2048_vm4, %v2064_v55, %v2066_v25 }
  0xd2   : > { %5084 = vmatmul.msk.f32.gmra.mxu0 %vm540_vm2, %v2063_v7  ;;  %v1246_v7 = vrot.slane %v5978_v43, 2 }
  0xd3   : > { %v6227_v46 = vpop.f32.mrf.mxu2 }
  0xd4   : > { %7738 = vst [vmem:[#allocation17_spill] sm:$0xff] %v6227_v46  ;;  %v6229_v50 = vpop.f32.mrf.mxu3  ;;  %v6232_v16 = vpop.f32.mrf.mxu1 }
  0xd5   : > { %7739 = vst [vmem:[#allocation18_spill] sm:$0xff] %v6229_v50 }
  0xd7   : > { %4887 = vmatmul.msk.f32.gmra.mxu1 %vm540_vm2, %v5906_v37  ;;  %v6237_v41 = vpop.f32.mrf.mxu0  ;;  %v1247_v37 = vsel %vm1224_vm3, %v1244_v11, %v1246_v7  ;;  %v2068_v11 = vrot.slane %v5996_v61, 3 }
  0xd8   : > { %4953 = vmatmul.msk.f32.gmra.mxu2 %vm540_vm2, %v1241_v53 }
  0xd9   : > { %5019 = vmatmul.msk.f32.gmra.mxu3 %vm540_vm2, %v1245_v23  ;;  %v2069_v55 = vsel %vm2048_vm4, %v2066_v25, %v2068_v11 }
  0xda   : > { %5085 = vmatmul.msk.f32.gmra.mxu0 %vm540_vm2, %v2065_v18  ;;  %v1248_v18 = vrot.slane %v5996_v61, 2 }
  0xdb   : > { %v6244_v50 = vpop.f32.mrf.mxu2 }
  0xdc   : > { %7740 = vst [vmem:[#allocation19_spill] sm:$0xff] %v6244_v50  ;;  %v6246_v30 = vpop.f32.mrf.mxu3  ;;  %v6249_v63 = vpop.f32.mrf.mxu1 }
  0xdd   : > { %7741 = vst [vmem:[#allocation20_spill] sm:$0xff] %v6246_v30 }
  0xdf   : > { %4888 = vmatmul.msk.f32.gmra.mxu1 %vm540_vm2, %v5924_v51  ;;  %v6254_v53 = vpop.f32.mrf.mxu0  ;;  %v1249_v51 = vsel %vm1224_vm3, %v1246_v7, %v1248_v18  ;;  %v2070_v7 = vrot.slane %v6014_v24, 3 }
  0xe0   : > { %4954 = vmatmul.msk.f32.gmra.mxu2 %vm540_vm2, %v1243_v1 }
  0xe1   : > { %5020 = vmatmul.msk.f32.gmra.mxu3 %vm540_vm2, %v1247_v37  ;;  %v2071_v25 = vsel %vm2048_vm4, %v2068_v11, %v2070_v7 }
  0xe2   : > { %5086 = vmatmul.msk.f32.gmra.mxu0 %vm540_vm2, %v2067_v32  ;;  %v1250_v32 = vrot.slane %v6014_v24, 2 }
  0xe3   : > { %v6261_v30 = vpop.f32.mrf.mxu2 }
  0xe4   : > { %7742 = vst [vmem:[#allocation21_spill] sm:$0xff] %v6261_v30  ;;  %v6263_v15 = vpop.f32.mrf.mxu3  ;;  %v6266_v38 = vpop.f32.mrf.mxu1 }
  0xe5   : > { %7743 = vst [vmem:[#allocation22_spill] sm:$0xff] %v6263_v15 }
  0xe7   : > { %4889 = vmatmul.msk.f32.gmra.mxu1 %vm540_vm2, %v5942_v2  ;;  %v6271_v1 = vpop.f32.mrf.mxu0  ;;  %v1251_v2 = vsel %vm1224_vm3, %v1248_v18, %v1250_v32  ;;  %v2072_v18 = vrot.slane %v6037_v44, 3 }
  0xe8   : > { %4955 = vmatmul.msk.f32.gmra.mxu2 %vm540_vm2, %v1245_v23 }
  0xe9   : > { %5021 = vmatmul.msk.f32.gmra.mxu3 %vm540_vm2, %v1249_v51  ;;  %v2073_v11 = vsel %vm2048_vm4, %v2070_v7, %v2072_v18 }
  0xea   : > { %5087 = vmatmul.msk.f32.gmra.mxu0 %vm540_vm2, %v2069_v55  ;;  %v1252_v55 = vrot.slane %v6037_v44, 2 }
  0xeb   : > { %v6278_v15 = vpop.f32.mrf.mxu2 }
  0xec   : > { %7744 = vst [vmem:[#allocation23_spill] sm:$0xff] %v6278_v15  ;;  %v6280_v22 = vpop.f32.mrf.mxu3  ;;  %v6283_v58 = vpop.f32.mrf.mxu1 }
  0xed   : > { %7745 = vst [vmem:[#allocation24_spill] sm:$0xff] %v6280_v22 }
  0xef   : > { %4890 = vmatmul.msk.f32.gmra.mxu1 %vm540_vm2, %v5960_v26  ;;  %v6288_v23 = vpop.f32.mrf.mxu0  ;;  %v1253_v26 = vsel %vm1224_vm3, %v1250_v32, %v1252_v55  ;;  %v2074_v32 = vrot.slane %v6069_v9, 3 }
  0xf0   : > { %4956 = vmatmul.msk.f32.gmra.mxu2 %vm540_vm2, %v1247_v37 }
  0xf1   : > { %5022 = vmatmul.msk.f32.gmra.mxu3 %vm540_vm2, %v1251_v2  ;;  %v2075_v7 = vsel %vm2048_vm4, %v2072_v18, %v2074_v32 }
  0xf2   : > { %5088 = vmatmul.msk.f32.gmra.mxu0 %vm540_vm2, %v2071_v25  ;;  %v1254_v25 = vrot.slane %v6069_v9, 2 }
  0xf3   : > { %v6295_v22 = vpop.f32.mrf.mxu2 }
  0xf4   : > { %7746 = vst [vmem:[#allocation25_spill] sm:$0xff] %v6295_v22  ;;  %v6297_v15 = vpop.f32.mrf.mxu3  ;;  %v6300_v30 = vpop.f32.mrf.mxu1 }
  0xf5   : > { %7747 = vst [vmem:[#allocation26_spill] sm:$0xff] %v6297_v15 }
  0xf7   : > { %4891 = vmatmul.msk.f32.gmra.mxu1 %vm540_vm2, %v5978_v43  ;;  %v6305_v37 = vpop.f32.mrf.mxu0  ;;  %v1255_v43 = vsel %vm1224_vm3, %v1252_v55, %v1254_v25  ;;  %v2076_v55 = vrot.slane %v5771_v5, 3 }
  0xf8   : > { %4957 = vmatmul.msk.f32.gmra.mxu2 %vm540_vm2, %v1249_v51 }
  0xf9   : > { %5023 = vmatmul.msk.f32.gmra.mxu3 %vm540_vm2, %v1253_v26  ;;  %v2077_v18 = vsel %vm2048_vm4, %v2074_v32, %v2076_v55 }
  0xfa   : > { %5089 = vmatmul.msk.f32.gmra.mxu0 %vm540_vm2, %v2073_v11  ;;  %v1256_v11 = vrot.slane %v5771_v5, 2 }
  0xfb   : > { %v6312_v15 = vpop.f32.mrf.mxu2 }
  0xfc   : > { %7748 = vst [vmem:[#allocation27_spill] sm:$0xff] %v6312_v15  ;;  %v6314_v22 = vpop.f32.mrf.mxu3  ;;  %v6317_v50 = vpop.f32.mrf.mxu1 }
  0xfd   : > { %7749 = vst [vmem:[#allocation28_spill] sm:$0xff] %v6314_v22 }
  0xff   : > { %4892 = vmatmul.msk.f32.gmra.mxu1 %vm540_vm2, %v5996_v61  ;;  %v6322_v51 = vpop.f32.mrf.mxu0  ;;  %v1257_v61 = vsel %vm1224_vm3, %v1254_v25, %v1256_v11  ;;  %v2078_v25 = vrot.slane %v5774_v6, 3 }
 0x100   : > { %4958 = vmatmul.msk.f32.gmra.mxu2 %vm540_vm2, %v1251_v2 }
 0x101   : > { %5024 = vmatmul.msk.f32.gmra.mxu3 %vm540_vm2, %v1255_v43  ;;  %v2079_v32 = vsel %vm2048_vm4, %v2076_v55, %v2078_v25 }
 0x102   : > { %5090 = vmatmul.msk.f32.gmra.mxu0 %vm540_vm2, %v2075_v7  ;;  %v1258_v7 = vrot.slane %v5774_v6, 2 }
 0x103   : > { %v6329_v22 = vpop.f32.mrf.mxu2 }
 0x104   : > { %7750 = vst [vmem:[#allocation29_spill] sm:$0xff] %v6329_v22  ;;  %v6331_v15 = vpop.f32.mrf.mxu3  ;;  %v6334_v46 = vpop.f32.mrf.mxu1 }
 0x105   : > { %7751 = vst [vmem:[#allocation30_spill] sm:$0xff] %v6331_v15 }
 0x107   : > { %4893 = vmatmul.msk.f32.gmra.mxu1 %vm540_vm2, %v6014_v24  ;;  %v6339_v2 = vpop.f32.mrf.mxu0  ;;  %v1259_v24 = vsel %vm1224_vm3, %v1256_v11, %v1258_v7  ;;  %v2080_v11 = vrot.slane %v5789_v17, 3 }
 0x108   : > { %4959 = vmatmul.msk.f32.gmra.mxu2 %vm540_vm2, %v1253_v26 }
 0x109   : > { %5025 = vmatmul.msk.f32.gmra.mxu3 %vm540_vm2, %v1257_v61  ;;  %v2081_v55 = vsel %vm2048_vm4, %v2078_v25, %v2080_v11 }
 0x10a   : > { %5091 = vmatmul.msk.f32.gmra.mxu0 %vm540_vm2, %v2077_v18  ;;  %v1260_v18 = vrot.slane %v5789_v17, 2 }
 0x10b   : > { %v6346_v15 = vpop.f32.mrf.mxu2 }
 0x10c   : > { %7752 = vst [vmem:[#allocation31_spill] sm:$0xff] %v6346_v15  ;;  %v6348_v22 = vpop.f32.mrf.mxu3  ;;  %v6351_v21 = vpop.f32.mrf.mxu1 }
 0x10d   : > { %7753 = vst [vmem:[#allocation32_spill] sm:$0xff] %v6348_v22 }
 0x10e   : > { %7754 = vst [vmem:[#allocation33_spill] sm:$0xff] %v6351_v21 }
 0x10f   : > { %4894 = vmatmul.msk.f32.gmra.mxu1 %vm540_vm2, %v6037_v44  ;;  %v6356_v26 = vpop.f32.mrf.mxu0  ;;  %v1261_v44 = vsel %vm1224_vm3, %v1258_v7, %v1260_v18  ;;  %v2082_v7 = vrot.slane %v5824_v36, 3 }
 0x110   : > { %4960 = vmatmul.msk.f32.gmra.mxu2 %vm540_vm2, %v1255_v43 }
 0x111   : > { %5026 = vmatmul.msk.f32.gmra.mxu3 %vm540_vm2, %v1259_v24 }
 0x112   : > { %5092 = vmatmul.msk.f32.gmra.mxu0 %vm540_vm2, %v2079_v32  ;;  %v1262_v32 = vrot.slane %v5824_v36, 2 }
 0x113   : > { %v6363_v22 = vpop.f32.mrf.mxu2 }
 0x114   : > { %7755 = vst [vmem:[#allocation34_spill] sm:$0xff] %v6363_v22  ;;  %v6365_v15 = vpop.f32.mrf.mxu3  ;;  %v6368_v56 = vpop.f32.mrf.mxu1 }
 0x115   : > { %7756 = vst [vmem:[#allocation35_spill] sm:$0xff] %v6365_v15 }
 0x116   : > { %7757 = vst [vmem:[#allocation36_spill] sm:$0xff] %v6368_v56 }
 0x117   : > { %4895 = vmatmul.msk.f32.gmra.mxu1 %vm540_vm2, %v6069_v9  ;;  %v6373_v43 = vpop.f32.mrf.mxu0  ;;  %v1263_v9 = vsel %vm1224_vm3, %v1260_v18, %v1262_v32  ;;  %v2084_v18 = vrot.slane %v5842_v48, 3 }
 0x118   : > { %4961 = vmatmul.msk.f32.gmra.mxu2 %vm540_vm2, %v1257_v61  ;;  %v2083_v61 = vsel %vm2048_vm4, %v2080_v11, %v2082_v7 }
 0x119   : > { %5027 = vmatmul.msk.f32.gmra.mxu3 %vm540_vm2, %v1261_v44  ;;  %v2085_v11 = vsel %vm2048_vm4, %v2082_v7, %v2084_v18 }
 0x11a   : > { %5093 = vmatmul.msk.f32.gmra.mxu0 %vm540_vm2, %v2081_v55  ;;  %v1264_v55 = vrot.slane %v5842_v48, 2 }
 0x11b   : > { %v6380_v15 = vpop.f32.mrf.mxu2 }
 0x11c   : > { %7758 = vst [vmem:[#allocation37_spill] sm:$0xff] %v6380_v15  ;;  %v6382_v22 = vpop.f32.mrf.mxu3  ;;  %v1030_v12 = vpop.f32.mrf.mxu1 }
 0x11d   : > { %7759 = vst [vmem:[#allocation38_spill] sm:$0xff] %v6382_v22  ;;  %v1031_v15 = vadd.f32 %v1030_v12, %v6117_v52  ;;  %v1266_v52 = vrot.slane %v5860_v60, 2 }
 0x11f   : > { %4896 = vmatmul.msk.f32.gmra.mxu1 %vm540_vm2, %v5771_v5  ;;  %v2326_v25 = vpop.f32.mrf.mxu0  ;;  %v1265_v5 = vsel %vm1224_vm3, %v1262_v32, %v1264_v55  ;;  %v1267_v32 = vsel %vm1224_vm3, %v1264_v55, %v1266_v52 }
 0x120   : > { %4962 = vmatmul.msk.f32.gmra.mxu2 %vm540_vm2, %v1259_v24 }
 0x121   : > { %5028 = vmatmul.msk.f32.gmra.mxu3 %vm540_vm2, %v1263_v9 }
 0x122   : > { %5094 = vmatmul.msk.f32.gmra.mxu0 %vm540_vm2, %v2083_v61 }
 0x123   : > { %v1502_v22 = vpop.f32.mrf.mxu2 }
 0x124   : > { %v1790_v33 = vpop.f32.mrf.mxu3  ;;  %v1694_v20 = vadd.f32 %v1502_v22, %v1031_v15  ;;  %v1033_v57 = vpop.f32.mrf.mxu1 }
 0x125   : > { %v1034_v22 = vadd.f32 %v1033_v57, %v6135_v4  ;;  %v1268_v57 = vrot.slane %v5878_v14, 2 }
 0x126   : > { %v1982_v56 = vadd.f32 %v1790_v33, %v1694_v20  ;;  %v2086_v33 = vrot.slane %v5860_v60, 3 }
 0x127   : > { %4897 = vmatmul.msk.f32.gmra.mxu1 %vm540_vm2, %v5774_v6  ;;  %v2329_v24 = vpop.f32.mrf.mxu0 }
 0x128   : > { %v6399_v21 = vadd.f32 %v2326_v25, %v1982_v56  ;;  %4963 = vmatmul.msk.f32.gmra.mxu2 %vm540_vm2, %v1261_v44  ;;  %v2087_v7 = vsel %vm2048_vm4, %v2084_v18, %v2086_v33  ;;  %v1269_v18 = vsel %vm1224_vm3, %v1266_v52, %v1268_v57 }
 0x129   : > { %5029 = vmatmul.msk.f32.gmra.mxu3 %vm540_vm2, %v1265_v5 }
 0x12a   : > { %5095 = vmatmul.msk.f32.gmra.mxu0 %vm540_vm2, %v2085_v11  ;;  %v2088_v11 = vrot.slane %v5878_v14, 3 }
 0x12b   : > { %v1505_v12 = vpop.f32.mrf.mxu2 }
 0x12c   : > { %v1793_v20 = vpop.f32.mrf.mxu3  ;;  %v1695_v6 = vadd.f32 %v1505_v12, %v1034_v22  ;;  %v1036_v15 = vpop.f32.mrf.mxu1  ;;  %v2089_v12 = vsel %vm2048_vm4, %v2086_v33, %v2088_v11 }
 0x12d   : > { %v1037_v4 = vadd.f32 %v1036_v15, %v6152_v29  ;;  %v1270_v29 = vrot.slane %v5896_v31, 2 }
 0x12e   : > { %v1983_v56 = vadd.f32 %v1793_v20, %v1695_v6 }
 0x12f   : > { %4898 = vmatmul.msk.f32.gmra.mxu1 %vm540_vm2, %v5789_v17  ;;  %v2332_v44 = vpop.f32.mrf.mxu0  ;;  %v1271_v33 = vsel %vm1224_vm3, %v1268_v57, %v1270_v29 }
 0x130   : > { %v6411_v25 = vadd.f32 %v2329_v24, %v1983_v56  ;;  %4964 = vmatmul.msk.f32.gmra.mxu2 %vm540_vm2, %v1263_v9  ;;  %v2090_v56 = vrot.slane %v5896_v31, 3 }
 0x131   : > { %5030 = vmatmul.msk.f32.gmra.mxu3 %vm540_vm2, %v1267_v32 }
 0x132   : > { %5096 = vmatmul.msk.f32.gmra.mxu0 %vm540_vm2, %v2087_v7 }
 0x133   : > { %v1508_v61 = vpop.f32.mrf.mxu2 }
 0x134   : > { %v1796_v55 = vpop.f32.mrf.mxu3  ;;  %v1696_v17 = vadd.f32 %v1508_v61, %v1037_v4  ;;  %v1039_v22 = vpop.f32.mrf.mxu1  ;;  %v2091_v4 = vsel %vm2048_vm4, %v2088_v11, %v2090_v56 }
 0x135   : > { %v1040_v6 = vadd.f32 %v1039_v22, %v6169_v42  ;;  %v1272_v42 = vrot.slane %v5914_v45, 2  ;;  %v2092_v22 = vrot.slane %v5914_v45, 3 }
 0x136   : > { %v1984_v24 = vadd.f32 %v1796_v55, %v1696_v17 }
 0x137   : > { %4899 = vmatmul.msk.f32.gmra.mxu1 %vm540_vm2, %v5824_v36  ;;  %v2335_v9 = vpop.f32.mrf.mxu0  ;;  %v1273_v11 = vsel %vm1224_vm3, %v1270_v29, %v1272_v42 }
 0x138   : > { %v6423_v20 = vadd.f32 %v2332_v44, %v1984_v24  ;;  %4965 = vmatmul.msk.f32.gmra.mxu2 %vm540_vm2, %v1265_v5 }
 0x139   : > { %5031 = vmatmul.msk.f32.gmra.mxu3 %vm540_vm2, %v1269_v18 }
 0x13a   : > { %5097 = vmatmul.msk.f32.gmra.mxu0 %vm540_vm2, %v2089_v12  ;;  %v2093_v12 = vsel %vm2048_vm4, %v2090_v56, %v2092_v22 }
 0x13b   : > { %v1511_v52 = vpop.f32.mrf.mxu2 }
 0x13c   : > { %v1799_v15 = vpop.f32.mrf.mxu3  ;;  %v1697_v36 = vadd.f32 %v1511_v52, %v1040_v6  ;;  %v1042_v7 = vpop.f32.mrf.mxu1 }
 0x13d   : > { %v1043_v55 = vadd.f32 %v1042_v7, %v6186_v49  ;;  %v1274_v49 = vrot.slane %v5932_v59, 2 }
 0x13e   : > { %v1985_v44 = vadd.f32 %v1799_v15, %v1697_v36  ;;  %v2094_v36 = vrot.slane %v5932_v59, 3 }
 0x13f   : > { %4900 = vmatmul.msk.f32.gmra.mxu1 %vm540_vm2, %v5842_v48  ;;  %v2338_v5 = vpop.f32.mrf.mxu0  ;;  %v1275_v56 = vsel %vm1224_vm3, %v1272_v42, %v1274_v49 }
 0x140   : > { %v6435_v61 = vadd.f32 %v2335_v9, %v1985_v44  ;;  %4966 = vmatmul.msk.f32.gmra.mxu2 %vm540_vm2, %v1267_v32 }
 0x141   : > { %5032 = vmatmul.msk.f32.gmra.mxu3 %vm540_vm2, %v1271_v33 }
 0x142   : > { %5098 = vmatmul.msk.f32.gmra.mxu0 %vm540_vm2, %v2091_v4 }
 0x143   : > { %v1514_v57 = vpop.f32.mrf.mxu2 }
 0x144   : > { %v1802_v17 = vpop.f32.mrf.mxu3  ;;  %v1698_v48 = vadd.f32 %v1514_v57, %v1043_v55  ;;  %v1045_v24 = vpop.f32.mrf.mxu1 }
 0x145   : > { %v1046_v52 = vadd.f32 %v1045_v24, %v6203_v13  ;;  %v1276_v13 = vrot.slane %v5950_v19, 2 }
 0x146   : > { %v1986_v9 = vadd.f32 %v1802_v17, %v1698_v48  ;;  %v2096_v17 = vrot.slane %v5950_v19, 3 }
 0x147   : > { %4901 = vmatmul.msk.f32.gmra.mxu1 %vm540_vm2, %v5860_v60  ;;  %v2341_v32 = vpop.f32.mrf.mxu0 }
 0x148   : > { %v6447_v6 = vadd.f32 %v2338_v5, %v1986_v9  ;;  %4967 = vmatmul.msk.f32.gmra.mxu2 %vm540_vm2, %v1269_v18  ;;  %v2095_v5 = vsel %vm2048_vm4, %v2092_v22, %v2094_v36  ;;  %v1277_v22 = vsel %vm1224_vm3, %v1274_v49, %v1276_v13  ;;  %v2097_v9 = vsel %vm2048_vm4, %v2094_v36, %v2096_v17 }
 0x149   : > { %5033 = vmatmul.msk.f32.gmra.mxu3 %vm540_vm2, %v1273_v11 }
 0x14a   : > { %5099 = vmatmul.msk.f32.gmra.mxu0 %vm540_vm2, %v2093_v12 }
 0x14b   : > { %v1517_v29 = vpop.f32.mrf.mxu2 }
 0x14c   : > { %v1805_v15 = vpop.f32.mrf.mxu3  ;;  %v1699_v60 = vadd.f32 %v1517_v29, %v1046_v52  ;;  %v1048_v7 = vpop.f32.mrf.mxu1  ;;  %v2098_v29 = vrot.slane %v5968_v35, 3 }
 0x14d   : > { %v1049_v55 = vadd.f32 %v1048_v7, %v6220_v28  ;;  %v1278_v28 = vrot.slane %v5968_v35, 2 }
 0x14e   : > { %v1987_v44 = vadd.f32 %v1805_v15, %v1699_v60  ;;  %v2099_v7 = vsel %vm2048_vm4, %v2096_v17, %v2098_v29 }
 0x14f   : > { %4902 = vmatmul.msk.f32.gmra.mxu1 %vm540_vm2, %v5878_v14  ;;  %v2344_v18 = vpop.f32.mrf.mxu0  ;;  %v1279_v36 = vsel %vm1224_vm3, %v1276_v13, %v1278_v28 }
 0x150   : > { %v6459_v4 = vadd.f32 %v2341_v32, %v1987_v44  ;;  %4968 = vmatmul.msk.f32.gmra.mxu2 %vm540_vm2, %v1271_v33 }
 0x151   : > { %5034 = vmatmul.msk.f32.gmra.mxu3 %vm540_vm2, %v1275_v56 }
 0x152   : > { %5100 = vmatmul.msk.f32.gmra.mxu0 %vm540_vm2, %v2095_v5 }
 0x153   : > { %v1520_v42 = vpop.f32.mrf.mxu2 }
 0x154   : > { %v1808_v57 = vpop.f32.mrf.mxu3  ;;  %v1700_v14 = vadd.f32 %v1520_v42, %v1049_v55  ;;  %v1051_v48 = vpop.f32.mrf.mxu1  ;;  %v2100_v55 = vrot.slane %v5986_v54, 3 }
 0x155   : > { %v1052_v12 = vadd.f32 %v1051_v48, %v6237_v41  ;;  %v1280_v41 = vrot.slane %v5986_v54, 2 }
 0x156   : > { %v1988_v24 = vadd.f32 %v1808_v57, %v1700_v14  ;;  %v2101_v14 = vsel %vm2048_vm4, %v2098_v29, %v2100_v55 }
 0x157   : > { %4903 = vmatmul.msk.f32.gmra.mxu1 %vm540_vm2, %v5896_v31  ;;  %v2347_v33 = vpop.f32.mrf.mxu0  ;;  %v1281_v57 = vsel %vm1224_vm3, %v1278_v28, %v1280_v41  ;;  %v2102_v28 = vrot.slane %v6004_v10, 3 }
 0x158   : > { %v6471_v32 = vadd.f32 %v2344_v18, %v1988_v24  ;;  %4969 = vmatmul.msk.f32.gmra.mxu2 %vm540_vm2, %v1273_v11 }
 0x159   : > { %5035 = vmatmul.msk.f32.gmra.mxu3 %vm540_vm2, %v1277_v22  ;;  %v2103_v29 = vsel %vm2048_vm4, %v2100_v55, %v2102_v28 }
 0x15a   : > { %5101 = vmatmul.msk.f32.gmra.mxu0 %vm540_vm2, %v2097_v9 }
 0x15b   : > { %v1523_v49 = vpop.f32.mrf.mxu2 }
 0x15c   : > { %v1811_v52 = vpop.f32.mrf.mxu3  ;;  %v1701_v31 = vadd.f32 %v1523_v49, %v1052_v12  ;;  %v1054_v15 = vpop.f32.mrf.mxu1 }
 0x15d   : > { %v1055_v18 = vadd.f32 %v1054_v15, %v6254_v53  ;;  %v1282_v53 = vrot.slane %v6004_v10, 2 }
 0x15e   : > { %v1989_v60 = vadd.f32 %v1811_v52, %v1701_v31 }
 0x15f   : > { %4904 = vmatmul.msk.f32.gmra.mxu1 %vm540_vm2, %v5914_v45  ;;  %v2350_v11 = vpop.f32.mrf.mxu0  ;;  %v1283_v49 = vsel %vm1224_vm3, %v1280_v41, %v1282_v53 }
 0x160   : > { %v6483_v44 = vadd.f32 %v2347_v33, %v1989_v60  ;;  %4970 = vmatmul.msk.f32.gmra.mxu2 %vm540_vm2, %v1275_v56 }
 0x161   : > { %5036 = vmatmul.msk.f32.gmra.mxu3 %vm540_vm2, %v1279_v36 }
 0x162   : > { %5102 = vmatmul.msk.f32.gmra.mxu0 %vm540_vm2, %v2099_v7  ;;  %v2104_v7 = vrot.slane %v6023_v34, 3 }
 0x163   : > { %v1526_v5 = vpop.f32.mrf.mxu2 }
 0x164   : > { %v1814_v13 = vpop.f32.mrf.mxu3  ;;  %v1702_v45 = vadd.f32 %v1526_v5, %v1055_v18  ;;  %v1057_v42 = vpop.f32.mrf.mxu1 }
 0x165   : > { %v1058_v24 = vadd.f32 %v1057_v42, %v6271_v1  ;;  %v1284_v1 = vrot.slane %v6023_v34, 2 }
 0x166   : > { %v1990_v17 = vadd.f32 %v1814_v13, %v1702_v45  ;;  %v2105_v13 = vsel %vm2048_vm4, %v2102_v28, %v2104_v7 }
 0x167   : > { %4905 = vmatmul.msk.f32.gmra.mxu1 %vm540_vm2, %v5932_v59  ;;  %v2353_v56 = vpop.f32.mrf.mxu0  ;;  %v1285_v18 = vsel %vm1224_vm3, %v1282_v53, %v1284_v1 }
 0x168   : > { %v6495_v48 = vadd.f32 %v2350_v11, %v1990_v17  ;;  %4971 = vmatmul.msk.f32.gmra.mxu2 %vm540_vm2, %v1277_v22 }
 0x169   : > { %5037 = vmatmul.msk.f32.gmra.mxu3 %vm540_vm2, %v1281_v57 }
 0x16a   : > { %5103 = vmatmul.msk.f32.gmra.mxu0 %vm540_vm2, %v2101_v14 }
 0x16b   : > { %v1529_v33 = vpop.f32.mrf.mxu2 }
 0x16c   : > { %v1817_v9 = vpop.f32.mrf.mxu3  ;;  %v1703_v59 = vadd.f32 %v1529_v33, %v1058_v24  ;;  %v1060_v12 = vpop.f32.mrf.mxu1 }
 0x16d   : > { %v1061_v15 = vadd.f32 %v1060_v12, %v6288_v23  ;;  %v1286_v23 = vrot.slane %v6059_v62, 2 }
 0x16e   : > { %v1991_v52 = vadd.f32 %v1817_v9, %v1703_v59 }
 0x16f   : > { %4906 = vmatmul.msk.f32.gmra.mxu1 %vm540_vm2, %v5950_v19  ;;  %v2356_v22 = vpop.f32.mrf.mxu0  ;;  %v1287_v53 = vsel %vm1224_vm3, %v1284_v1, %v1286_v23 }
 0x170   : > { %v6507_v31 = vadd.f32 %v2353_v56, %v1991_v52  ;;  %4972 = vmatmul.msk.f32.gmra.mxu2 %vm540_vm2, %v1279_v36 }
 0x171   : > { %5038 = vmatmul.msk.f32.gmra.mxu3 %vm540_vm2, %v1283_v49 }
 0x172   : > { %5104 = vmatmul.msk.f32.gmra.mxu0 %vm540_vm2, %v2103_v29 }
 0x173   : > { %v1532_v60 = vpop.f32.mrf.mxu2 }
 0x174   : > { %v1820_v11 = vpop.f32.mrf.mxu3  ;;  %v1704_v19 = vadd.f32 %v1532_v60, %v1061_v15  ;;  %v1063_v41 = vpop.f32.mrf.mxu1 }
 0x175   : > { %v1064_v45 = vadd.f32 %v1063_v41, %v6305_v37  ;;  %v5475_v37 = vld [vmem:[%s5768_s26 + $0x100] sm:$0xff] }
 0x176   : > { %v1992_v5 = vadd.f32 %v1820_v11, %v1704_v19  ;;  %v1288_v28 = vrot.slane %v5475_v37, 2 }
 0x177   : > { %4907 = vmatmul.msk.f32.gmra.mxu1 %vm540_vm2, %v5968_v35  ;;  %v2359_v36 = vpop.f32.mrf.mxu0  ;;  %v2106_v35 = vrot.slane %v6059_v62, 3 }
 0x178   : > { %v6519_v55 = vadd.f32 %v2356_v22, %v1992_v5  ;;  %4973 = vmatmul.msk.f32.gmra.mxu2 %vm540_vm2, %v1281_v57  ;;  %v2108_v22 = vrot.slane %v5475_v37, 3  ;;  %v1289_v1 = vsel %vm1224_vm3, %v1286_v23, %v1288_v28 }
 0x179   : > { %5039 = vmatmul.msk.f32.gmra.mxu3 %vm540_vm2, %v1285_v18  ;;  %v2107_v33 = vsel %vm2048_vm4, %v2104_v7, %v2106_v35 }
 0x17a   : > { %5105 = vmatmul.msk.f32.gmra.mxu0 %vm540_vm2, %v2105_v13  ;;  %v2109_v60 = vsel %vm2048_vm4, %v2106_v35, %v2108_v22 }
 0x17b   : > { %v1535_v42 = vpop.f32.mrf.mxu2 }
 0x17c   : > { %v1823_v17 = vpop.f32.mrf.mxu3  ;;  %v1705_v56 = vadd.f32 %v1535_v42, %v1064_v45  ;;  %v1066_v14 = vpop.f32.mrf.mxu1 }
 0x17d   : > { %v1067_v59 = vadd.f32 %v1066_v14, %v6322_v51  ;;  %v5476_v51 = vld [vmem:[%s5768_s26 + $0x108] sm:$0xff] }
 0x17e   : > { %v1993_v24 = vadd.f32 %v1823_v17, %v1705_v56  ;;  %v1290_v7 = vrot.slane %v5476_v51, 2 }
 0x17f   : > { %4908 = vmatmul.msk.f32.gmra.mxu1 %vm540_vm2, %v5986_v54  ;;  %v2362_v57 = vpop.f32.mrf.mxu0 }
 0x180   : > { %v6531_v9 = vadd.f32 %v2359_v36, %v1993_v24  ;;  %4974 = vmatmul.msk.f32.gmra.mxu2 %vm540_vm2, %v1283_v49  ;;  %v2110_v36 = vrot.slane %v5476_v51, 3  ;;  %v1291_v23 = vsel %vm1224_vm3, %v1288_v28, %v1290_v7 }
 0x181   : > { %5040 = vmatmul.msk.f32.gmra.mxu3 %vm540_vm2, %v1287_v53 }
 0x182   : > { %5106 = vmatmul.msk.f32.gmra.mxu0 %vm540_vm2, %v2107_v33  ;;  %v2111_v42 = vsel %vm2048_vm4, %v2108_v22, %v2110_v36 }
 0x183   : > { %v1538_v12 = vpop.f32.mrf.mxu2 }
 0x184   : > { %v1826_v52 = vpop.f32.mrf.mxu3  ;;  %v1706_v54 = vadd.f32 %v1538_v12, %v1067_v59  ;;  %v1069_v29 = vpop.f32.mrf.mxu1 }
 0x185   : > { %v1070_v19 = vadd.f32 %v1069_v29, %v6339_v2  ;;  %v5477_v2 = vld [vmem:[%s5768_s26 + $0x110] sm:$0xff] }
 0x186   : > { %v1994_v15 = vadd.f32 %v1826_v52, %v1706_v54  ;;  %v1292_v35 = vrot.slane %v5477_v2, 2 }
 0x187   : > { %4909 = vmatmul.msk.f32.gmra.mxu1 %vm540_vm2, %v6004_v10  ;;  %v2365_v49 = vpop.f32.mrf.mxu0 }
 0x188   : > { %v6542_v11 = vadd.f32 %v2362_v57, %v1994_v15  ;;  %4975 = vmatmul.msk.f32.gmra.mxu2 %vm540_vm2, %v1285_v18  ;;  %v2112_v57 = vrot.slane %v5477_v2, 3  ;;  %v1293_v28 = vsel %vm1224_vm3, %v1290_v7, %v1292_v35 }
 0x189   : > { %5041 = vmatmul.msk.f32.gmra.mxu3 %vm540_vm2, %v1289_v1 }
 0x18a   : > { %5107 = vmatmul.msk.f32.gmra.mxu0 %vm540_vm2, %v2109_v60  ;;  %v2113_v12 = vsel %vm2048_vm4, %v2110_v36, %v2112_v57 }
 0x18b   : > { %v1541_v41 = vpop.f32.mrf.mxu2 }
 0x18c   : > { %v1829_v5 = vpop.f32.mrf.mxu3  ;;  %v1707_v10 = vadd.f32 %v1541_v41, %v1070_v19  ;;  %v1072_v13 = vpop.f32.mrf.mxu1 }
 0x18d   : > { %v1073_v56 = vadd.f32 %v1072_v13, %v6356_v26  ;;  %v5478_v26 = vld [vmem:[%s5768_s26 + $0x118] sm:$0xff] }
 0x18e   : > { %v1995_v45 = vadd.f32 %v1829_v5, %v1707_v10  ;;  %v1294_v22 = vrot.slane %v5478_v26, 2 }
 0x18f   : > { %4910 = vmatmul.msk.f32.gmra.mxu1 %vm540_vm2, %v6023_v34  ;;  %v2368_v18 = vpop.f32.mrf.mxu0 }
 0x190   : > { %v6553_v17 = vadd.f32 %v2365_v49, %v1995_v45  ;;  %4976 = vmatmul.msk.f32.gmra.mxu2 %vm540_vm2, %v1287_v53  ;;  %v2114_v49 = vrot.slane %v5478_v26, 3  ;;  %v1295_v7 = vsel %vm1224_vm3, %v1292_v35, %v1294_v22 }
 0x191   : > { %5042 = vmatmul.msk.f32.gmra.mxu3 %vm540_vm2, %v1291_v23 }
 0x192   : > { %5108 = vmatmul.msk.f32.gmra.mxu0 %vm540_vm2, %v2111_v42  ;;  %v2115_v41 = vsel %vm2048_vm4, %v2112_v57, %v2114_v49 }
 0x193   : > { %v1544_v14 = vpop.f32.mrf.mxu2 }
 0x194   : > { %v1832_v24 = vpop.f32.mrf.mxu3  ;;  %v1708_v34 = vadd.f32 %v1544_v14, %v1073_v56  ;;  %v1075_v33 = vpop.f32.mrf.mxu1 }
 0x195   : > { %v1076_v54 = vadd.f32 %v1075_v33, %v6373_v43  ;;  %v5479_v43 = vld [vmem:[%s5768_s26 + $0x120] sm:$0xff] }
 0x196   : > { %v1996_v59 = vadd.f32 %v1832_v24, %v1708_v34  ;;  %v1296_v36 = vrot.slane %v5479_v43, 2 }
 0x197   : > { %4911 = vmatmul.msk.f32.gmra.mxu1 %vm540_vm2, %v6059_v62  ;;  %v2371_v53 = vpop.f32.mrf.mxu0 }
 0x198   : > { %v6564_v52 = vadd.f32 %v2368_v18, %v1996_v59  ;;  %4977 = vmatmul.msk.f32.gmra.mxu2 %vm540_vm2, %v1289_v1  ;;  %v2116_v18 = vrot.slane %v5479_v43, 3  ;;  %v1297_v35 = vsel %vm1224_vm3, %v1294_v22, %v1296_v36 }
 0x199   : > { %5043 = vmatmul.msk.f32.gmra.mxu3 %vm540_vm2, %v1293_v28 }
 0x19a   : > { %5109 = vmatmul.msk.f32.gmra.mxu0 %vm540_vm2, %v2113_v12  ;;  %v2117_v14 = vsel %vm2048_vm4, %v2114_v49, %v2116_v18 }
 0x19b   : > { %v1547_v29 = vpop.f32.mrf.mxu2 }
 0x19c   : > { %v1835_v15 = vpop.f32.mrf.mxu3  ;;  %v1709_v62 = vadd.f32 %v1547_v29, %v1076_v54  ;;  %v1078_v60 = vpop.f32.mrf.mxu1 }
 0x19d   : > { %v1079_v10 = vadd.f32 %v1078_v60, %v6111_v8  ;;  %v5480_v8 = vld [vmem:[%s5768_s26 + $0x128] sm:$0xff] }
 0x19e   : > { %v1997_v19 = vadd.f32 %v1835_v15, %v1709_v62  ;;  %v1298_v57 = vrot.slane %v5480_v8, 2 }
 0x19f   : > { %4912 = vmatmul.msk.f32.gmra.mxu1 %vm540_vm2, %v5475_v37  ;;  %v2374_v1 = vpop.f32.mrf.mxu0 }
 0x1a0   : > { %v6574_v5 = vadd.f32 %v2371_v53, %v1997_v19  ;;  %4978 = vmatmul.msk.f32.gmra.mxu2 %vm540_vm2, %v1291_v23  ;;  %v2118_v53 = vrot.slane %v5480_v8, 3  ;;  %v1299_v22 = vsel %vm1224_vm3, %v1296_v36, %v1298_v57 }
 0x1a1   : > { %5044 = vmatmul.msk.f32.gmra.mxu3 %vm540_vm2, %v1295_v7 }
 0x1a2   : > { %5110 = vmatmul.msk.f32.gmra.mxu0 %vm540_vm2, %v2115_v41  ;;  %v2119_v29 = vsel %vm2048_vm4, %v2116_v18, %v2118_v53 }
 0x1a3   : > { %v1550_v13 = vpop.f32.mrf.mxu2 }
 0x1a4   : > { %v1838_v45 = vpop.f32.mrf.mxu3  ;;  %v1710_v37 = vadd.f32 %v1550_v13, %v1079_v10  ;;  %v1081_v42 = vpop.f32.mrf.mxu1 }
 0x1a5   : > { %v1082_v34 = vadd.f32 %v1081_v42, %v6129_v0  ;;  %v5481_v0 = vld [vmem:[%s5768_s26 + $0x130] sm:$0xff] }
 0x1a6   : > { %v1998_v56 = vadd.f32 %v1838_v45, %v1710_v37  ;;  %v1300_v49 = vrot.slane %v5481_v0, 2 }
 0x1a7   : > { %4913 = vmatmul.msk.f32.gmra.mxu1 %vm540_vm2, %v5476_v51  ;;  %v2377_v23 = vpop.f32.mrf.mxu0 }
 0x1a8   : > { %v6584_v24 = vadd.f32 %v2374_v1, %v1998_v56  ;;  %4979 = vmatmul.msk.f32.gmra.mxu2 %vm540_vm2, %v1293_v28  ;;  %v2120_v1 = vrot.slane %v5481_v0, 3  ;;  %v1301_v36 = vsel %vm1224_vm3, %v1298_v57, %v1300_v49 }
 0x1a9   : > { %5045 = vmatmul.msk.f32.gmra.mxu3 %vm540_vm2, %v1297_v35 }
 0x1aa   : > { %5111 = vmatmul.msk.f32.gmra.mxu0 %vm540_vm2, %v2117_v14  ;;  %v2121_v13 = vsel %vm2048_vm4, %v2118_v53, %v2120_v1 }
 0x1ab   : > { %v1553_v33 = vpop.f32.mrf.mxu2 }
 0x1ac   : > { %v1841_v59 = vpop.f32.mrf.mxu3  ;;  %v1711_v51 = vadd.f32 %v1553_v33, %v1082_v34  ;;  %v1084_v12 = vpop.f32.mrf.mxu1 }
 0x1ad   : > { %v1085_v62 = vadd.f32 %v1084_v12, %v6147_v27  ;;  %v5482_v27 = vld [vmem:[%s5768_s26 + $0x138] sm:$0xff] }
 0x1ae   : > { %v1999_v54 = vadd.f32 %v1841_v59, %v1711_v51  ;;  %v1302_v18 = vrot.slane %v5482_v27, 2 }
 0x1af   : > { %4914 = vmatmul.msk.f32.gmra.mxu1 %vm540_vm2, %v5477_v2  ;;  %v2380_v28 = vpop.f32.mrf.mxu0 }
 0x1b0   : > { %v6594_v15 = vadd.f32 %v2377_v23, %v1999_v54  ;;  %4980 = vmatmul.msk.f32.gmra.mxu2 %vm540_vm2, %v1295_v7  ;;  %v2122_v23 = vrot.slane %v5482_v27, 3  ;;  %v1303_v57 = vsel %vm1224_vm3, %v1300_v49, %v1302_v18 }
 0x1b1   : > { %5046 = vmatmul.msk.f32.gmra.mxu3 %vm540_vm2, %v1299_v22 }
 0x1b2   : > { %5112 = vmatmul.msk.f32.gmra.mxu0 %vm540_vm2, %v2119_v29  ;;  %v2123_v33 = vsel %vm2048_vm4, %v2120_v1, %v2122_v23 }
 0x1b3   : > { %v1556_v60 = vpop.f32.mrf.mxu2 }
 0x1b4   : > { %v1844_v19 = vpop.f32.mrf.mxu3  ;;  %v1712_v2 = vadd.f32 %v1556_v60, %v1085_v62  ;;  %v1087_v41 = vpop.f32.mrf.mxu1 }
 0x1b5   : > { %v1088_v37 = vadd.f32 %v1087_v41, %v6164_v40  ;;  %v5483_v40 = vld [vmem:[%s5768_s26 + $0x140] sm:$0xff] }
 0x1b6   : > { %v2000_v10 = vadd.f32 %v1844_v19, %v1712_v2  ;;  %v1304_v53 = vrot.slane %v5483_v40, 2 }
 0x1b7   : > { %4915 = vmatmul.msk.f32.gmra.mxu1 %vm540_vm2, %v5478_v26  ;;  %v2383_v7 = vpop.f32.mrf.mxu0 }
 0x1b8   : > { %v6604_v45 = vadd.f32 %v2380_v28, %v2000_v10  ;;  %4981 = vmatmul.msk.f32.gmra.mxu2 %vm540_vm2, %v1297_v35  ;;  %v2124_v28 = vrot.slane %v5483_v40, 3  ;;  %v1305_v49 = vsel %vm1224_vm3, %v1302_v18, %v1304_v53 }
 0x1b9   : > { %5047 = vmatmul.msk.f32.gmra.mxu3 %vm540_vm2, %v1301_v36 }
 0x1ba   : > { %5113 = vmatmul.msk.f32.gmra.mxu0 %vm540_vm2, %v2121_v13  ;;  %v2125_v60 = vsel %vm2048_vm4, %v2122_v23, %v2124_v28 }
 0x1bb   : > { %v1559_v42 = vpop.f32.mrf.mxu2 }
 0x1bc   : > { %v1847_v56 = vpop.f32.mrf.mxu3  ;;  %v1713_v26 = vadd.f32 %v1559_v42, %v1088_v37  ;;  %v1090_v14 = vpop.f32.mrf.mxu1 }
 0x1bd   : > { %v1091_v51 = vadd.f32 %v1090_v14, %v6181_v47  ;;  %v5484_v47 = vld [vmem:[%s5768_s26 + $0x148] sm:$0xff] }
 0x1be   : > { %v2001_v34 = vadd.f32 %v1847_v56, %v1713_v26  ;;  %v1306_v1 = vrot.slane %v5484_v47, 2 }
 0x1bf   : > { %4916 = vmatmul.msk.f32.gmra.mxu1 %vm540_vm2, %v5479_v43  ;;  %v2386_v35 = vpop.f32.mrf.mxu0 }
 0x1c0   : > { %v6614_v59 = vadd.f32 %v2383_v7, %v2001_v34  ;;  %4982 = vmatmul.msk.f32.gmra.mxu2 %vm540_vm2, %v1299_v22  ;;  %v2126_v7 = vrot.slane %v5484_v47, 3  ;;  %v1307_v18 = vsel %vm1224_vm3, %v1304_v53, %v1306_v1 }
 0x1c1   : > { %5048 = vmatmul.msk.f32.gmra.mxu3 %vm540_vm2, %v1303_v57 }
 0x1c2   : > { %5114 = vmatmul.msk.f32.gmra.mxu0 %vm540_vm2, %v2123_v33  ;;  %v2127_v42 = vsel %vm2048_vm4, %v2124_v28, %v2126_v7 }
 0x1c3   : > { %v1562_v12 = vpop.f32.mrf.mxu2 }
 0x1c4   : > { %v1850_v54 = vpop.f32.mrf.mxu3  ;;  %v1714_v43 = vadd.f32 %v1562_v12, %v1091_v51  ;;  %v1093_v29 = vpop.f32.mrf.mxu1 }
 0x1c5   : > { %v1094_v2 = vadd.f32 %v1093_v29, %v6198_v3  ;;  %v5485_v3 = vld [vmem:[%s5768_s26 + $0x150] sm:$0xff] }
 0x1c6   : > { %v2002_v62 = vadd.f32 %v1850_v54, %v1714_v43  ;;  %v1308_v23 = vrot.slane %v5485_v3, 2 }
 0x1c7   : > { %4917 = vmatmul.msk.f32.gmra.mxu1 %vm540_vm2, %v5480_v8  ;;  %v2389_v22 = vpop.f32.mrf.mxu0 }
 0x1c8   : > { %v6624_v19 = vadd.f32 %v2386_v35, %v2002_v62  ;;  %4983 = vmatmul.msk.f32.gmra.mxu2 %vm540_vm2, %v1301_v36  ;;  %v2128_v35 = vrot.slane %v5485_v3, 3  ;;  %v1309_v53 = vsel %vm1224_vm3, %v1306_v1, %v1308_v23 }
 0x1c9   : > { %5049 = vmatmul.msk.f32.gmra.mxu3 %vm540_vm2, %v1305_v49 }
 0x1ca   : > { %5115 = vmatmul.msk.f32.gmra.mxu0 %vm540_vm2, %v2125_v60  ;;  %v2129_v12 = vsel %vm2048_vm4, %v2126_v7, %v2128_v35 }
 0x1cb   : > { %v1565_v41 = vpop.f32.mrf.mxu2 }
 0x1cc   : > { %v1853_v10 = vpop.f32.mrf.mxu3  ;;  %v1715_v8 = vadd.f32 %v1565_v41, %v1094_v2  ;;  %v1096_v13 = vpop.f32.mrf.mxu1 }
 0x1cd   : > { %v1097_v26 = vadd.f32 %v1096_v13, %v6215_v39  ;;  %v5486_v39 = vld [vmem:[%s5768_s26 + $0x158] sm:$0xff] }
 0x1ce   : > { %v2003_v37 = vadd.f32 %v1853_v10, %v1715_v8  ;;  %v1310_v28 = vrot.slane %v5486_v39, 2 }
 0x1cf   : > { %4918 = vmatmul.msk.f32.gmra.mxu1 %vm540_vm2, %v5481_v0  ;;  %v2392_v36 = vpop.f32.mrf.mxu0 }
 0x1d0   : > { %v6634_v56 = vadd.f32 %v2389_v22, %v2003_v37  ;;  %4984 = vmatmul.msk.f32.gmra.mxu2 %vm540_vm2, %v1303_v57  ;;  %v2130_v22 = vrot.slane %v5486_v39, 3  ;;  %v1311_v1 = vsel %vm1224_vm3, %v1308_v23, %v1310_v28 }
 0x1d1   : > { %5050 = vmatmul.msk.f32.gmra.mxu3 %vm540_vm2, %v1307_v18 }
 0x1d2   : > { %5116 = vmatmul.msk.f32.gmra.mxu0 %vm540_vm2, %v2127_v42  ;;  %v2131_v41 = vsel %vm2048_vm4, %v2128_v35, %v2130_v22 }
 0x1d3   : > { %v1568_v14 = vpop.f32.mrf.mxu2 }
 0x1d4   : > { %v1856_v34 = vpop.f32.mrf.mxu3  ;;  %v1716_v0 = vadd.f32 %v1568_v14, %v1097_v26  ;;  %v1099_v33 = vpop.f32.mrf.mxu1 }
 0x1d5   : > { %v1100_v43 = vadd.f32 %v1099_v33, %v6232_v16  ;;  %v5487_v16 = vld [vmem:[%s5768_s26 + $0x160] sm:$0xff] }
 0x1d6   : > { %v2004_v51 = vadd.f32 %v1856_v34, %v1716_v0  ;;  %v1312_v7 = vrot.slane %v5487_v16, 2 }
 0x1d7   : > { %4919 = vmatmul.msk.f32.gmra.mxu1 %vm540_vm2, %v5482_v27  ;;  %v2395_v57 = vpop.f32.mrf.mxu0 }
 0x1d8   : > { %v6644_v54 = vadd.f32 %v2392_v36, %v2004_v51  ;;  %4985 = vmatmul.msk.f32.gmra.mxu2 %vm540_vm2, %v1305_v49  ;;  %v2132_v36 = vrot.slane %v5487_v16, 3  ;;  %v1313_v23 = vsel %vm1224_vm3, %v1310_v28, %v1312_v7 }
 0x1d9   : > { %5051 = vmatmul.msk.f32.gmra.mxu3 %vm540_vm2, %v1309_v53 }
 0x1da   : > { %5117 = vmatmul.msk.f32.gmra.mxu0 %vm540_vm2, %v2129_v12  ;;  %v2133_v14 = vsel %vm2048_vm4, %v2130_v22, %v2132_v36 }
 0x1db   : > { %v1571_v29 = vpop.f32.mrf.mxu2 }
 0x1dc   : > { %v1859_v62 = vpop.f32.mrf.mxu3  ;;  %v1717_v27 = vadd.f32 %v1571_v29, %v1100_v43  ;;  %v1102_v60 = vpop.f32.mrf.mxu1 }
 0x1dd   : > { %v1103_v8 = vadd.f32 %v1102_v60, %v6249_v63  ;;  %v5488_v63 = vld [vmem:[%s5768_s26 + $0x168] sm:$0xff] }
 0x1de   : > { %v2005_v2 = vadd.f32 %v1859_v62, %v1717_v27  ;;  %v1314_v35 = vrot.slane %v5488_v63, 2 }
 0x1df   : > { %4920 = vmatmul.msk.f32.gmra.mxu1 %vm540_vm2, %v5483_v40  ;;  %v2398_v49 = vpop.f32.mrf.mxu0 }
 0x1e0   : > { %v6654_v10 = vadd.f32 %v2395_v57, %v2005_v2  ;;  %4986 = vmatmul.msk.f32.gmra.mxu2 %vm540_vm2, %v1307_v18  ;;  %v2134_v57 = vrot.slane %v5488_v63, 3  ;;  %v1315_v28 = vsel %vm1224_vm3, %v1312_v7, %v1314_v35 }
 0x1e1   : > { %5052 = vmatmul.msk.f32.gmra.mxu3 %vm540_vm2, %v1311_v1 }
 0x1e2   : > { %5118 = vmatmul.msk.f32.gmra.mxu0 %vm540_vm2, %v2131_v41  ;;  %v2135_v29 = vsel %vm2048_vm4, %v2132_v36, %v2134_v57 }
 0x1e3   : > { %v1574_v13 = vpop.f32.mrf.mxu2 }
 0x1e4   : > { %v1862_v37 = vpop.f32.mrf.mxu3  ;;  %v1718_v40 = vadd.f32 %v1574_v13, %v1103_v8  ;;  %v1105_v42 = vpop.f32.mrf.mxu1 }
 0x1e5   : > { %v1106_v0 = vadd.f32 %v1105_v42, %v6266_v38  ;;  %v5489_v38 = vld [vmem:[%s5768_s26 + $0x170] sm:$0xff] }
 0x1e6   : > { %v2006_v26 = vadd.f32 %v1862_v37, %v1718_v40  ;;  %v1316_v22 = vrot.slane %v5489_v38, 2 }
 0x1e7   : > { %4921 = vmatmul.msk.f32.gmra.mxu1 %vm540_vm2, %v5484_v47  ;;  %v2401_v18 = vpop.f32.mrf.mxu0 }
 0x1e8   : > { %v6664_v34 = vadd.f32 %v2398_v49, %v2006_v26  ;;  %4987 = vmatmul.msk.f32.gmra.mxu2 %vm540_vm2, %v1309_v53  ;;  %v2136_v49 = vrot.slane %v5489_v38, 3  ;;  %v1317_v7 = vsel %vm1224_vm3, %v1314_v35, %v1316_v22 }
 0x1e9   : > { %5053 = vmatmul.msk.f32.gmra.mxu3 %vm540_vm2, %v1313_v23 }
 0x1ea   : > { %5119 = vmatmul.msk.f32.gmra.mxu0 %vm540_vm2, %v2133_v14  ;;  %v2137_v13 = vsel %vm2048_vm4, %v2134_v57, %v2136_v49 }
 0x1eb   : > { %v1577_v33 = vpop.f32.mrf.mxu2 }
 0x1ec   : > { %v1865_v51 = vpop.f32.mrf.mxu3  ;;  %v1719_v47 = vadd.f32 %v1577_v33, %v1106_v0  ;;  %v1108_v12 = vpop.f32.mrf.mxu1 }
 0x1ed   : > { %v1109_v27 = vadd.f32 %v1108_v12, %v6283_v58  ;;  %v5490_v58 = vld [vmem:[%s5768_s26 + $0x178] sm:$0xff] }
 0x1ee   : > { %v2007_v43 = vadd.f32 %v1865_v51, %v1719_v47  ;;  %v1318_v36 = vrot.slane %v5490_v58, 2 }
 0x1ef   : > { %4922 = vmatmul.msk.f32.gmra.mxu1 %vm540_vm2, %v5485_v3  ;;  %v2404_v53 = vpop.f32.mrf.mxu0 }
 0x1f0   : > { %v6674_v62 = vadd.f32 %v2401_v18, %v2007_v43  ;;  %4988 = vmatmul.msk.f32.gmra.mxu2 %vm540_vm2, %v1311_v1  ;;  %v2138_v18 = vrot.slane %v5490_v58, 3  ;;  %v1319_v35 = vsel %vm1224_vm3, %v1316_v22, %v1318_v36 }
 0x1f1   : > { %5054 = vmatmul.msk.f32.gmra.mxu3 %vm540_vm2, %v1315_v28 }
 0x1f2   : > { %5120 = vmatmul.msk.f32.gmra.mxu0 %vm540_vm2, %v2135_v29  ;;  %v2139_v33 = vsel %vm2048_vm4, %v2136_v49, %v2138_v18 }
 0x1f3   : > { %v1580_v60 = vpop.f32.mrf.mxu2 }
 0x1f4   : > { %v1868_v2 = vpop.f32.mrf.mxu3  ;;  %v1720_v3 = vadd.f32 %v1580_v60, %v1109_v27  ;;  %v1111_v41 = vpop.f32.mrf.mxu1 }
 0x1f5   : > { %v1112_v40 = vadd.f32 %v1111_v41, %v6300_v30  ;;  %v5491_v30 = vld [vmem:[%s5768_s26 + $0x180] sm:$0xff] }
 0x1f6   : > { %v2008_v8 = vadd.f32 %v1868_v2, %v1720_v3  ;;  %v1320_v57 = vrot.slane %v5491_v30, 2 }
 0x1f7   : > { %4923 = vmatmul.msk.f32.gmra.mxu1 %vm540_vm2, %v5486_v39  ;;  %v2407_v1 = vpop.f32.mrf.mxu0 }
 0x1f8   : > { %v6684_v37 = vadd.f32 %v2404_v53, %v2008_v8  ;;  %4989 = vmatmul.msk.f32.gmra.mxu2 %vm540_vm2, %v1313_v23  ;;  %v2140_v53 = vrot.slane %v5491_v30, 3  ;;  %v1321_v22 = vsel %vm1224_vm3, %v1318_v36, %v1320_v57 }
 0x1f9   : > { %5055 = vmatmul.msk.f32.gmra.mxu3 %vm540_vm2, %v1317_v7 }
 0x1fa   : > { %5121 = vmatmul.msk.f32.gmra.mxu0 %vm540_vm2, %v2137_v13  ;;  %v2141_v60 = vsel %vm2048_vm4, %v2138_v18, %v2140_v53 }
 0x1fb   : > { %v1583_v42 = vpop.f32.mrf.mxu2 }
 0x1fc   : > { %v1871_v26 = vpop.f32.mrf.mxu3  ;;  %v1721_v39 = vadd.f32 %v1583_v42, %v1112_v40  ;;  %v1114_v14 = vpop.f32.mrf.mxu1 }
 0x1fd   : > { %v1115_v47 = vadd.f32 %v1114_v14, %v6317_v50  ;;  %v5492_v50 = vld [vmem:[%s5768_s26 + $0x188] sm:$0xff] }
 0x1fe   : > { %v2009_v0 = vadd.f32 %v1871_v26, %v1721_v39  ;;  %v1322_v49 = vrot.slane %v5492_v50, 2  ;;  %v7760_v39 = vld [vmem:[#allocation33_spill] sm:$0xff] }
 0x1ff   : > { %4924 = vmatmul.msk.f32.gmra.mxu1 %vm540_vm2, %v5487_v16  ;;  %v2410_v23 = vpop.f32.mrf.mxu0 }
 0x200   : > { %v6694_v51 = vadd.f32 %v2407_v1, %v2009_v0  ;;  %4990 = vmatmul.msk.f32.gmra.mxu2 %vm540_vm2, %v1315_v28  ;;  %v2142_v1 = vrot.slane %v5492_v50, 3  ;;  %v1323_v36 = vsel %vm1224_vm3, %v1320_v57, %v1322_v49 }
 0x201   : > { %5056 = vmatmul.msk.f32.gmra.mxu3 %vm540_vm2, %v1319_v35 }
 0x202   : > { %5122 = vmatmul.msk.f32.gmra.mxu0 %vm540_vm2, %v2139_v33  ;;  %v2143_v42 = vsel %vm2048_vm4, %v2140_v53, %v2142_v1 }
 0x203   : > { %v1586_v12 = vpop.f32.mrf.mxu2 }
 0x204   : > { %v1874_v43 = vpop.f32.mrf.mxu3  ;;  %v1722_v16 = vadd.f32 %v1586_v12, %v1115_v47  ;;  %v1117_v29 = vpop.f32.mrf.mxu1 }
 0x205   : > { %v1118_v3 = vadd.f32 %v1117_v29, %v6334_v46  ;;  %v5493_v46 = vld [vmem:[%s5768_s26 + $0x190] sm:$0xff] }
 0x206   : > { %v2010_v27 = vadd.f32 %v1874_v43, %v1722_v16  ;;  %v1324_v18 = vrot.slane %v5493_v46, 2  ;;  %v2144_v33 = vrot.slane %v5493_v46, 3  ;;  %v5494_v16 = vld [vmem:[%s5768_s26 + $0x198] sm:$0xff] }
 0x207   : > { %4925 = vmatmul.msk.f32.gmra.mxu1 %vm540_vm2, %v5488_v63  ;;  %v2413_v28 = vpop.f32.mrf.mxu0  ;;  %v1326_v29 = vrot.slane %v5494_v16, 2 }
 0x208   : > { %v6704_v2 = vadd.f32 %v2410_v23, %v2010_v27  ;;  %4991 = vmatmul.msk.f32.gmra.mxu2 %vm540_vm2, %v1317_v7  ;;  %v1325_v47 = vsel %vm1224_vm3, %v1322_v49, %v1324_v18  ;;  %v2145_v43 = vsel %vm2048_vm4, %v2142_v1, %v2144_v33  ;;  %v7761_v27 = vld [vmem:[#allocation36_spill] sm:$0xff] }
 0x209   : > { %5057 = vmatmul.msk.f32.gmra.mxu3 %vm540_vm2, %v1321_v22 }
 0x20a   : > { %5123 = vmatmul.msk.f32.gmra.mxu0 %vm540_vm2, %v2141_v60 }
 0x20b   : > { %v1589_v41 = vpop.f32.mrf.mxu2 }
 0x20c   : > { %v1877_v8 = vpop.f32.mrf.mxu3  ;;  %v1723_v63 = vadd.f32 %v1589_v41, %v1118_v3  ;;  %v1120_v13 = vpop.f32.mrf.mxu1  ;;  %v2146_v3 = vrot.slane %v5494_v16, 3 }
 0x20d   : > { %v1121_v14 = vadd.f32 %v1120_v13, %v7760_v39 }
 0x20e   : > { %v2011_v40 = vadd.f32 %v1877_v8, %v1723_v63  ;;  %v1327_v8 = vsel %vm1224_vm3, %v1324_v18, %v1326_v29  ;;  %v2147_v63 = vsel %vm2048_vm4, %v2144_v33, %v2146_v3 }
 0x20f   : > { %4926 = vmatmul.msk.f32.gmra.mxu1 %vm540_vm2, %v5489_v38  ;;  %v2416_v7 = vpop.f32.mrf.mxu0 }
 0x210   : > { %v6714_v26 = vadd.f32 %v2413_v28, %v2011_v40  ;;  %4992 = vmatmul.msk.f32.gmra.mxu2 %vm540_vm2, %v1319_v35  ;;  %v5495_v40 = vld [vmem:[%s5768_s26 + $0x1a0] sm:$0xff] }
 0x211   : > { %5058 = vmatmul.msk.f32.gmra.mxu3 %vm540_vm2, %v1323_v36 }
 0x212   : > { %5124 = vmatmul.msk.f32.gmra.mxu0 %vm540_vm2, %v2143_v42  ;;  %v7762_v42 = vld [vmem:[#allocation5_spill] sm:$0xff] }
 0x213   : > { %v1592_v0 = vpop.f32.mrf.mxu2 }
 0x214   : > { %v1880_v23 = vpop.f32.mrf.mxu3  ;;  %v1724_v38 = vadd.f32 %v1592_v0, %v1121_v14  ;;  %v1123_v57 = vpop.f32.mrf.mxu1  ;;  %v2148_v0 = vrot.slane %v5495_v40, 3 }
 0x215   : > { %v1124_v28 = vadd.f32 %v1123_v57, %v7761_v27  ;;  %v7763_v27 = vld [vmem:[#allocation7_spill] sm:$0xff] }
 0x216   : > { %v2012_v12 = vadd.f32 %v1880_v23, %v1724_v38  ;;  %v2149_v57 = vsel %vm2048_vm4, %v2146_v3, %v2148_v0 }
 0x217   : > { %4927 = vmatmul.msk.f32.gmra.mxu1 %vm540_vm2, %v5490_v58  ;;  %v2419_v35 = vpop.f32.mrf.mxu0 }
 0x218   : > { %v6724_v53 = vadd.f32 %v2416_v7, %v2012_v12  ;;  %4993 = vmatmul.msk.f32.gmra.mxu2 %vm540_vm2, %v1321_v22  ;;  %v1328_v7 = vrot.slane %v5495_v40, 2 }
 0x219   : > { %5059 = vmatmul.msk.f32.gmra.mxu3 %vm540_vm2, %v1325_v47 }
 0x21a   : > { %5125 = vmatmul.msk.f32.gmra.mxu0 %vm540_vm2, %v2145_v43  ;;  %v1329_v33 = vsel %vm1224_vm3, %v1326_v29, %v1328_v7 }
 0x21b   : > { %v1595_v60 = vpop.f32.mrf.mxu2 }
 0x21c   : > { %v1883_v49 = vpop.f32.mrf.mxu3  ;;  %v1725_v58 = vadd.f32 %v1595_v60, %v1124_v28  ;;  %v1126_v41 = vpop.f32.mrf.mxu1 }
 0x21d   : > { %v1127_v39 = vadd.f32 %v1126_v41, %v7762_v42 }
 0x21e   : > { %v2013_v1 = vadd.f32 %v1883_v49, %v1725_v58 }
 0x21f   : > { %4928 = vmatmul.msk.f32.gmra.mxu1 %vm540_vm2, %v5491_v30  ;;  %v2422_v22 = vpop.f32.mrf.mxu0 }
 0x220   : > { %v6734_v13 = vadd.f32 %v2419_v35, %v2013_v1  ;;  %4994 = vmatmul.msk.f32.gmra.mxu2 %vm540_vm2, %v1323_v36  ;;  %v5496_v35 = vld [vmem:[%s5768_s26 + $0x1a8] sm:$0xff] }
 0x221   : > { %5060 = vmatmul.msk.f32.gmra.mxu3 %vm540_vm2, %v1327_v8  ;;  %v1330_v43 = vrot.slane %v5496_v35, 2  ;;  %v2150_v49 = vrot.slane %v5496_v35, 3 }
 0x222   : > { %5126 = vmatmul.msk.f32.gmra.mxu0 %vm540_vm2, %v2147_v63  ;;  %v5497_v63 = vld [vmem:[%s5768_s26 + $0x1b0] sm:$0xff] }
 0x223   : > { %v1598_v18 = vpop.f32.mrf.mxu2  ;;  %v1331_v3 = vsel %vm1224_vm3, %v1328_v7, %v1330_v43  ;;  %v2151_v1 = vsel %vm2048_vm4, %v2148_v0, %v2150_v49  ;;  %v1332_v42 = vrot.slane %v5497_v63, 2 }
 0x224   : > { %v1886_v14 = vpop.f32.mrf.mxu3  ;;  %v1726_v30 = vadd.f32 %v1598_v18, %v1127_v39  ;;  %v1129_v23 = vpop.f32.mrf.mxu1  ;;  %v7764_v39 = vld [vmem:[#allocation9_spill] sm:$0xff] }
 0x225   : > { %v1130_v28 = vadd.f32 %v1129_v23, %v7763_v27  ;;  %v1333_v0 = vsel %vm1224_vm3, %v1330_v43, %v1332_v42  ;;  %v5498_v27 = vld [vmem:[%s5768_s26 + $0x1b8] sm:$0xff] }
 0x226   : > { %v2014_v38 = vadd.f32 %v1886_v14, %v1726_v30  ;;  %v2152_v30 = vrot.slane %v5497_v63, 3 }
 0x227   : > { %4929 = vmatmul.msk.f32.gmra.mxu1 %vm540_vm2, %v5492_v50  ;;  %v2425_v36 = vpop.f32.mrf.mxu0 }
 0x228   : > { %v6744_v12 = vadd.f32 %v2422_v22, %v2014_v38  ;;  %4995 = vmatmul.msk.f32.gmra.mxu2 %vm540_vm2, %v1325_v47 }
 0x229   : > { %5061 = vmatmul.msk.f32.gmra.mxu3 %vm540_vm2, %v1329_v33 }
 0x22a   : > { %5127 = vmatmul.msk.f32.gmra.mxu0 %vm540_vm2, %v2149_v57 }
 0x22b   : > { %v1601_v29 = vpop.f32.mrf.mxu2 }
 0x22c   : > { %v1889_v60 = vpop.f32.mrf.mxu3  ;;  %v1727_v50 = vadd.f32 %v1601_v29, %v1130_v28  ;;  %v1132_v58 = vpop.f32.mrf.mxu1  ;;  %v1334_v28 = vrot.slane %v5498_v27, 2  ;;  %v7765_v29 = vld [vmem:[#allocation11_spill] sm:$0xff] }
 0x22d   : > { %v1133_v18 = vadd.f32 %v1132_v58, %v7764_v39  ;;  %v2154_v58 = vrot.slane %v5498_v27, 3 }
 0x22e   : > { %v2015_v41 = vadd.f32 %v1889_v60, %v1727_v50 }
 0x22f   : > { %4930 = vmatmul.msk.f32.gmra.mxu1 %vm540_vm2, %v5493_v46  ;;  %v2428_v47 = vpop.f32.mrf.mxu0 }
 0x230   : > { %v6754_v22 = vadd.f32 %v2425_v36, %v2015_v41  ;;  %4996 = vmatmul.msk.f32.gmra.mxu2 %vm540_vm2, %v1327_v8  ;;  %v2153_v36 = vsel %vm2048_vm4, %v2150_v49, %v2152_v30  ;;  %v1335_v49 = vsel %vm1224_vm3, %v1332_v42, %v1334_v28 }
 0x231   : > { %5062 = vmatmul.msk.f32.gmra.mxu3 %vm540_vm2, %v1331_v3 }
 0x232   : > { %5128 = vmatmul.msk.f32.gmra.mxu0 %vm540_vm2, %v2151_v1  ;;  %v2155_v1 = vsel %vm2048_vm4, %v2152_v30, %v2154_v58 }
 0x233   : > { %v1604_v7 = vpop.f32.mrf.mxu2 }
 0x234   : > { %v1892_v14 = vpop.f32.mrf.mxu3  ;;  %v1728_v46 = vadd.f32 %v1604_v7, %v1133_v18  ;;  %v1135_v23 = vpop.f32.mrf.mxu1  ;;  %v5499_v18 = vld [vmem:[%s5768_s26 + $0x1c0] sm:$0xff] }
 0x235   : > { %v1136_v60 = vadd.f32 %v1135_v23, %v7765_v29  ;;  %v1336_v7 = vrot.slane %v5499_v18, 2 }
 0x236   : > { %v2016_v38 = vadd.f32 %v1892_v14, %v1728_v46  ;;  %v7766_v14 = vld [vmem:[#allocation13_spill] sm:$0xff] }
 0x237   : > { %4931 = vmatmul.msk.f32.gmra.mxu1 %vm540_vm2, %v5494_v16  ;;  %v2431_v8 = vpop.f32.mrf.mxu0  ;;  %v1337_v30 = vsel %vm1224_vm3, %v1334_v28, %v1336_v7 }
 0x238   : > { %v6764_v57 = vadd.f32 %v2428_v47, %v2016_v38  ;;  %4997 = vmatmul.msk.f32.gmra.mxu2 %vm540_vm2, %v1329_v33  ;;  %v2156_v38 = vrot.slane %v5499_v18, 3 }
 0x239   : > { %5063 = vmatmul.msk.f32.gmra.mxu3 %vm540_vm2, %v1333_v0 }
 0x23a   : > { %5129 = vmatmul.msk.f32.gmra.mxu0 %vm540_vm2, %v2153_v36  ;;  %v2157_v29 = vsel %vm2048_vm4, %v2154_v58, %v2156_v38 }
 0x23b   : > { %v1607_v43 = vpop.f32.mrf.mxu2 }
 0x23c   : > { %v1895_v50 = vpop.f32.mrf.mxu3  ;;  %v1729_v16 = vadd.f32 %v1607_v43, %v1136_v60  ;;  %v1138_v41 = vpop.f32.mrf.mxu1  ;;  %v5500_v43 = vld [vmem:[%s5768_s26 + $0x1c8] sm:$0xff] }
 0x23d   : > { %v1139_v46 = vadd.f32 %v1138_v41, %v7766_v14 }
 0x23e   : > { %v2017_v47 = vadd.f32 %v1895_v50, %v1729_v16  ;;  %v1338_v50 = vrot.slane %v5500_v43, 2  ;;  %v7767_v16 = vld [vmem:[#allocation15_spill] sm:$0xff] }
 0x23f   : > { %4932 = vmatmul.msk.f32.gmra.mxu1 %vm540_vm2, %v5495_v40  ;;  %v2434_v33 = vpop.f32.mrf.mxu0 }
 0x240   : > { %v6774_v39 = vadd.f32 %v2431_v8, %v2017_v47  ;;  %4998 = vmatmul.msk.f32.gmra.mxu2 %vm540_vm2, %v1331_v3  ;;  %v1339_v58 = vsel %vm1224_vm3, %v1336_v7, %v1338_v50 }
 0x241   : > { %5064 = vmatmul.msk.f32.gmra.mxu3 %vm540_vm2, %v1335_v49 }
 0x242   : > { %5130 = vmatmul.msk.f32.gmra.mxu0 %vm540_vm2, %v2155_v1  ;;  %v2158_v1 = vrot.slane %v5500_v43, 3 }
 0x243   : > { %v1610_v42 = vpop.f32.mrf.mxu2 }
 0x244   : > { %v1898_v23 = vpop.f32.mrf.mxu3  ;;  %v1730_v40 = vadd.f32 %v1610_v42, %v1139_v46  ;;  %v1141_v36 = vpop.f32.mrf.mxu1  ;;  %v2159_v46 = vsel %vm2048_vm4, %v2156_v38, %v2158_v1 }
 0x245   : > { %v1142_v41 = vadd.f32 %v1141_v36, %v7767_v16  ;;  %v7768_v36 = vld [vmem:[#allocation17_spill] sm:$0xff] }
 0x246   : > { %v2018_v8 = vadd.f32 %v1898_v23, %v1730_v40  ;;  %v5501_v23 = vld [vmem:[%s5768_s26 + $0x1d0] sm:$0xff] }
 0x247   : > { %4933 = vmatmul.msk.f32.gmra.mxu1 %vm540_vm2, %v5496_v35  ;;  %v2437_v3 = vpop.f32.mrf.mxu0  ;;  %v1340_v40 = vrot.slane %v5501_v23, 2  ;;  %v2160_v16 = vrot.slane %v5501_v23, 3 }
 0x248   : > { %v6784_v60 = vadd.f32 %v2434_v33, %v2018_v8  ;;  %4999 = vmatmul.msk.f32.gmra.mxu2 %vm540_vm2, %v1333_v0 }
 0x249   : > { %5065 = vmatmul.msk.f32.gmra.mxu3 %vm540_vm2, %v1337_v30  ;;  %v1341_v38 = vsel %vm1224_vm3, %v1338_v50, %v1340_v40 }
 0x24a   : > { %5131 = vmatmul.msk.f32.gmra.mxu0 %vm540_vm2, %v2157_v29 }
 0x24b   : > { %v1613_v28 = vpop.f32.mrf.mxu2 }
 0x24c   : > { %v1901_v47 = vpop.f32.mrf.mxu3  ;;  %v1731_v35 = vadd.f32 %v1613_v28, %v1142_v41  ;;  %v1144_v14 = vpop.f32.mrf.mxu1  ;;  %v2161_v28 = vsel %vm2048_vm4, %v2158_v1, %v2160_v16 }
 0x24d   : > { %v1145_v8 = vadd.f32 %v1144_v14, %v7768_v36 }
 0x24e   : > { %v2019_v33 = vadd.f32 %v1901_v47, %v1731_v35  ;;  %v5502_v35 = vld [vmem:[%s5768_s26 + $0x1d8] sm:$0xff] }
 0x24f   : > { %4934 = vmatmul.msk.f32.gmra.mxu1 %vm540_vm2, %v5497_v63  ;;  %v2440_v0 = vpop.f32.mrf.mxu0  ;;  %v1342_v14 = vrot.slane %v5502_v35, 2 }
 0x250   : > { %v6794_v42 = vadd.f32 %v2437_v3, %v2019_v33  ;;  %5000 = vmatmul.msk.f32.gmra.mxu2 %vm540_vm2, %v1335_v49  ;;  %v7769_v33 = vld [vmem:[#allocation19_spill] sm:$0xff] }
 0x251   : > { %5066 = vmatmul.msk.f32.gmra.mxu3 %vm540_vm2, %v1339_v58  ;;  %v1343_v1 = vsel %vm1224_vm3, %v1340_v40, %v1342_v14 }
 0x252   : > { %5132 = vmatmul.msk.f32.gmra.mxu0 %vm540_vm2, %v2159_v46 }
 0x253   : > { %v1616_v7 = vpop.f32.mrf.mxu2 }
 0x254   : > { %v1904_v29 = vpop.f32.mrf.mxu3  ;;  %v1732_v63 = vadd.f32 %v1616_v7, %v1145_v8  ;;  %v1147_v41 = vpop.f32.mrf.mxu1  ;;  %v2162_v8 = vrot.slane %v5502_v35, 3 }
 0x255   : > { %v1148_v46 = vadd.f32 %v1147_v41, %v7769_v33  ;;  %v5503_v41 = vld [vmem:[%s5768_s26 + $0x1e0] sm:$0xff] }
 0x256   : > { %v2020_v3 = vadd.f32 %v1904_v29, %v1732_v63  ;;  %v2163_v29 = vsel %vm2048_vm4, %v2160_v16, %v2162_v8 }
 0x257   : > { %4935 = vmatmul.msk.f32.gmra.mxu1 %vm540_vm2, %v5498_v27  ;;  %v2443_v49 = vpop.f32.mrf.mxu0 }
 0x258   : > { %v6804_v47 = vadd.f32 %v2440_v0, %v2020_v3  ;;  %5001 = vmatmul.msk.f32.gmra.mxu2 %vm540_vm2, %v1337_v30  ;;  %v1344_v3 = vrot.slane %v5503_v41, 2 }
 0x259   : > { %5067 = vmatmul.msk.f32.gmra.mxu3 %vm540_vm2, %v1341_v38 }
 0x25a   : > { %5133 = vmatmul.msk.f32.gmra.mxu0 %vm540_vm2, %v2161_v28  ;;  %v7771_v28 = vld [vmem:[#allocation21_spill] sm:$0xff]  ;;  %v1345_v16 = vsel %vm1224_vm3, %v1342_v14, %v1344_v3 }
 0x25b   : > { %v1619_v50 = vpop.f32.mrf.mxu2 }
 0x25c   : > { %v1907_v36 = vpop.f32.mrf.mxu3  ;;  %v1733_v27 = vadd.f32 %v1619_v50, %v1148_v46  ;;  %v1150_v7 = vpop.f32.mrf.mxu1  ;;  %v2164_v50 = vrot.slane %v5503_v41, 3 }
 0x25d   : > { %v1151_v33 = vadd.f32 %v1150_v7, %v7771_v28  ;;  %v6829_v7 = vld [vmem:[%s5768_s26 + $0x1e8] sm:$0xff]  ;;  %v7773_v28 = vld [vmem:[#allocation23_spill] sm:$0xff] }
 0x25e   : > { %v2021_v0 = vadd.f32 %v1907_v36, %v1733_v27  ;;  %v2165_v27 = vsel %vm2048_vm4, %v2162_v8, %v2164_v50 }
 0x25f   : > { %4936 = vmatmul.msk.f32.gmra.mxu1 %vm540_vm2, %v5499_v18  ;;  %v2446_v30 = vpop.f32.mrf.mxu0 }
 0x260   : > { %v6814_v63 = vadd.f32 %v2443_v49, %v2021_v0  ;;  %5002 = vmatmul.msk.f32.gmra.mxu2 %vm540_vm2, %v1339_v58 }
 0x261   : > { %5068 = vmatmul.msk.f32.gmra.mxu3 %vm540_vm2, %v1343_v1 }
 0x262   : > { %7770 = vst [vmem:[#allocation33_spill] sm:$0xff] %v6814_v63  ;;  %5134 = vmatmul.msk.f32.gmra.mxu0 %vm540_vm2, %v2163_v29  ;;  %v1346_v29 = vrot.slane %v6829_v7, 2 }
 0x263   : > { %v1622_v40 = vpop.f32.mrf.mxu2 }
 0x264   : > { %v1910_v46 = vpop.f32.mrf.mxu3  ;;  %v1734_v18 = vadd.f32 %v1622_v40, %v1151_v33  ;;  %v1153_v36 = vpop.f32.mrf.mxu1  ;;  %v2166_v40 = vrot.slane %v6829_v7, 3 }
 0x265   : > { %v1154_v33 = vadd.f32 %v1153_v36, %v7773_v28  ;;  %v6843_v36 = vld [vmem:[%s5768_s26 + $0x1f0] sm:$0xff]  ;;  %v7775_v28 = vld [vmem:[#allocation25_spill] sm:$0xff] }
 0x266   : > { %v2022_v49 = vadd.f32 %v1910_v46, %v1734_v18  ;;  %v1347_v46 = vsel %vm1224_vm3, %v1344_v3, %v1346_v29 }
 0x267   : > { %4937 = vmatmul.msk.f32.gmra.mxu1 %vm540_vm2, %v5500_v43  ;;  %v2449_v58 = vpop.f32.mrf.mxu0 }
 0x268   : > { %v6824_v0 = vadd.f32 %v2446_v30, %v2022_v49  ;;  %5003 = vmatmul.msk.f32.gmra.mxu2 %vm540_vm2, %v1341_v38  ;;  %v2167_v49 = vsel %vm2048_vm4, %v2164_v50, %v2166_v40 }
 0x269   : > { %5069 = vmatmul.msk.f32.gmra.mxu3 %vm540_vm2, %v1345_v16 }
 0x26a   : > { %7772 = vst [vmem:[#allocation36_spill] sm:$0xff] %v6824_v0  ;;  %5135 = vmatmul.msk.f32.gmra.mxu0 %vm540_vm2, %v2165_v27  ;;  %v1348_v27 = vrot.slane %v6843_v36, 2 }
 0x26b   : > { %v1625_v14 = vpop.f32.mrf.mxu2 }
 0x26c   : > { %v1913_v43 = vpop.f32.mrf.mxu3  ;;  %v1735_v8 = vadd.f32 %v1625_v14, %v1154_v33  ;;  %v1156_v30 = vpop.f32.mrf.mxu1  ;;  %v2168_v14 = vrot.slane %v6843_v36, 3 }
 0x26d   : > { %v1157_v33 = vadd.f32 %v1156_v30, %v7775_v28  ;;  %v5506_v30 = vld [vmem:[%s5768_s26 + $0x1f8] sm:$0xff]  ;;  %v7777_v28 = vld [vmem:[#allocation27_spill] sm:$0xff] }
 0x26e   : > { %v2023_v38 = vadd.f32 %v1913_v43, %v1735_v8  ;;  %v1349_v43 = vsel %vm1224_vm3, %v1346_v29, %v1348_v27 }
 0x26f   : > { %4938 = vmatmul.msk.f32.gmra.mxu1 %vm540_vm2, %v5501_v23  ;;  %v2452_v18 = vpop.f32.mrf.mxu0 }
 0x270   : > { %v6838_v0 = vadd.f32 %v2449_v58, %v2023_v38  ;;  %5004 = vmatmul.msk.f32.gmra.mxu2 %vm540_vm2, %v1343_v1  ;;  %v2169_v38 = vsel %vm2048_vm4, %v2166_v40, %v2168_v14 }
 0x271   : > { %5070 = vmatmul.msk.f32.gmra.mxu3 %vm540_vm2, %v1347_v46 }
 0x272   : > { %7774 = vst [vmem:[#allocation5_spill] sm:$0xff] %v6838_v0  ;;  %5136 = vmatmul.msk.f32.gmra.mxu0 %vm540_vm2, %v2167_v49  ;;  %v1350_v49 = vrot.slane %v5506_v30, 2 }
 0x273   : > { %v1628_v3 = vpop.f32.mrf.mxu2 }
 0x274   : > { %v1916_v23 = vpop.f32.mrf.mxu3  ;;  %v1736_v50 = vadd.f32 %v1628_v3, %v1157_v33  ;;  %v1159_v58 = vpop.f32.mrf.mxu1  ;;  %v1351_v40 = vsel %vm1224_vm3, %v1348_v27, %v1350_v49 }
 0x275   : > { %v1160_v33 = vadd.f32 %v1159_v58, %v7777_v28  ;;  %v5507_v58 = vld [vmem:[%s6080_s22] sm:$0xff] }
 0x276   : > { %v2024_v1 = vadd.f32 %v1916_v23, %v1736_v50  ;;  %v2170_v23 = vrot.slane %v5506_v30, 3  ;;  %v7779_v28 = vld [vmem:[#allocation29_spill] sm:$0xff] }
 0x277   : > { %4939 = vmatmul.msk.f32.gmra.mxu1 %vm540_vm2, %v5502_v35  ;;  %v2455_v8 = vpop.f32.mrf.mxu0 }
 0x278   : > { %v6852_v0 = vadd.f32 %v2452_v18, %v2024_v1  ;;  %5005 = vmatmul.msk.f32.gmra.mxu2 %vm540_vm2, %v1345_v16  ;;  %v2171_v1 = vsel %vm2048_vm4, %v2168_v14, %v2170_v23 }
 0x279   : > { %5071 = vmatmul.msk.f32.gmra.mxu3 %vm540_vm2, %v1349_v43 }
 0x27a   : > { %7776 = vst [vmem:[#allocation7_spill] sm:$0xff] %v6852_v0  ;;  %5137 = vmatmul.msk.f32.gmra.mxu0 %vm540_vm2, %v2169_v38  ;;  %v1352_v38 = vrot.slane %v5507_v58, 2 }
 0x27b   : > { %v1631_v29 = vpop.f32.mrf.mxu2 }
 0x27c   : > { %v1919_v3 = vpop.f32.mrf.mxu3  ;;  %v1737_v35 = vadd.f32 %v1631_v29, %v1160_v33  ;;  %v1162_v50 = vpop.f32.mrf.mxu1  ;;  %v1353_v63 = vsel %vm1224_vm3, %v1350_v49, %v1352_v38 }
 0x27d   : > { %v1163_v33 = vadd.f32 %v1162_v50, %v7779_v28 }
 0x27e   : > { %v2025_v18 = vadd.f32 %v1919_v3, %v1737_v35  ;;  %v2172_v3 = vrot.slane %v5507_v58, 3 }
 0x27f   : > { %4940 = vmatmul.msk.f32.gmra.mxu1 %vm540_vm2, %v5503_v41  ;;  %v2458_v16 = vpop.f32.mrf.mxu0 }
 0x280   : > { %v6862_v0 = vadd.f32 %v2455_v8, %v2025_v18  ;;  %5006 = vmatmul.msk.f32.gmra.mxu2 %vm540_vm2, %v1347_v46  ;;  %v338_v8 = vld [vmem:[%s6080_s22 + $0x8] sm:$0xff]  ;;  %v2173_v18 = vsel %vm2048_vm4, %v2170_v23, %v2172_v3  ;;  %v339_v23 = vld [vmem:[%s6080_s22 + $0x10] sm:$0xff] }
 0x281   : > { %5072 = vmatmul.msk.f32.gmra.mxu3 %vm540_vm2, %v1351_v40  ;;  %v1762_v50 = vrot.slane %v338_v8, 2 }
 0x282   : > { %7778 = vst [vmem:[#allocation9_spill] sm:$0xff] %v6862_v0  ;;  %5138 = vmatmul.msk.f32.gmra.mxu0 %vm540_vm2, %v2171_v1  ;;  %v7780_v1 = vld [vmem:[#allocation31_spill] sm:$0xff] }
 0x283   : > { %v1634_v27 = vpop.f32.mrf.mxu2 }
 0x284   : > { %v1922_v29 = vpop.f32.mrf.mxu3  ;;  %v1738_v41 = vadd.f32 %v1634_v27, %v1163_v33  ;;  %v1165_v35 = vpop.f32.mrf.mxu1  ;;  %v2174_v33 = vrot.slane %v338_v8, 3  ;;  %v7782_v8 = vld [vmem:[#allocation34_spill] sm:$0xff] }
 0x285   : > { %v1166_v58 = vadd.f32 %v1165_v35, %v7780_v1  ;;  %v1764_v35 = vrot.slane %v339_v23, 2 }
 0x286   : > { %v2026_v14 = vadd.f32 %v1922_v29, %v1738_v41  ;;  %v1763_v29 = vsel %vm1224_vm3, %v1352_v38, %v1762_v50 }
 0x287   : > { %4941 = vmatmul.msk.f32.gmra.mxu1 %vm540_vm2, %v6829_v7  ;;  %v2461_v46 = vpop.f32.mrf.mxu0 }
 0x288   : > { %v6874_v0 = vadd.f32 %v2458_v16, %v2026_v14  ;;  %5007 = vmatmul.msk.f32.gmra.mxu2 %vm540_vm2, %v1349_v43  ;;  %v2175_v16 = vsel %vm2048_vm4, %v2172_v3, %v2174_v33 }
 0x289   : > { %5073 = vmatmul.msk.f32.gmra.mxu3 %vm540_vm2, %v1353_v63 }
 0x28a   : > { %5139 = vmatmul.msk.f32.gmra.mxu0 %vm540_vm2, %v2173_v18 }
 0x28b   : > { %v1637_v49 = vpop.f32.mrf.mxu2 }
 0x28c   : > { %v1925_v28 = vpop.f32.mrf.mxu3  ;;  %v1739_v27 = vadd.f32 %v1637_v49, %v1166_v58  ;;  %v1168_v7 = vpop.f32.mrf.mxu1 }
 0x28d   : > { %v1169_v18 = vadd.f32 %v1168_v7, %v7782_v8  ;;  %v5508_v7 = vld [vmem:[%s5768_s26 + $0x10] sm:$0xff] }
 0x28e   : > { %v2027_v41 = vadd.f32 %v1925_v28, %v1739_v27 }
 0x28f   : > { %4942 = vmatmul.msk.f32.gmra.mxu1 %vm540_vm2, %v6843_v36  ;;  %v2464_v43 = vpop.f32.mrf.mxu0  ;;  %v2176_v36 = vrot.slane %v339_v23, 3 }
 0x290   : > { %v6885_v14 = vadd.f32 %v2461_v46, %v2027_v41  ;;  %5008 = vmatmul.msk.f32.gmra.mxu2 %vm540_vm2, %v1351_v40  ;;  %v1765_v46 = vsel %vm1224_vm3, %v1762_v50, %v1764_v35  ;;  %v5509_v41 = vld [vmem:[%s5768_s26 + $0x18] sm:$0xff] }
 0x291   : > { %5074 = vmatmul.msk.f32.gmra.mxu3 %vm540_vm2, %v1763_v29  ;;  %v2177_v28 = vsel %vm2048_vm4, %v2174_v33, %v2176_v36  ;;  %v2584_v29 = vrot.slane %v5508_v7, 4  ;;  %v2585_v23 = vrot.slane %v5509_v41, 4 }
 0x292   : > { %7781 = vst [vmem:[#allocation11_spill] sm:$0xff] %v6885_v14  ;;  %5140 = vmatmul.msk.f32.gmra.mxu0 %vm540_vm2, %v2175_v16  ;;  %v5510_v16 = vld [vmem:[%s5768_s26 + $0x20] sm:$0xff] }
 0x293   : > { %v1640_v38 = vpop.f32.mrf.mxu2  ;;  %v2587_v8 = vrot.slane %v5510_v16, 4  ;;  %v3408_v35 = vrot.slane %v5510_v16, 5 }
 0x294   : > { %v1928_v1 = vpop.f32.mrf.mxu3  ;;  %v1740_v58 = vadd.f32 %v1640_v38, %v1169_v18  ;;  %v1171_v3 = vpop.f32.mrf.mxu1  ;;  %v5511_v18 = vld [vmem:[%s5768_s26 + $0x28] sm:$0xff] }
 0x295   : > { %v2589_v50 = vrot.slane %v5511_v18, 4  ;;  %v3409_v38 = vrot.slane %v5511_v18, 5  ;;  %v3945_v36 = vrot.slane %v5511_v18, 6 }
 0x296   : > { %v2028_v49 = vadd.f32 %v1928_v1, %v1740_v58 }
 0x297   : > { %4943 = vmatmul.msk.f32.gmra.mxu1 %vm540_vm2, %v5506_v30  ;;  %v2467_v40 = vpop.f32.mrf.mxu0  ;;  %v7784_v30 = vld [vmem:[#allocation37_spill] sm:$0xff]  ;;  %v2590_v7 = vsel %vm669_vm0, %v2587_v8, %v2589_v50  ;;  %v3410_v41 = vsel %vm3407_vm5, %v3408_v35, %v3409_v38 }
 0x298   : > { %v6894_v27 = vadd.f32 %v2464_v43, %v2028_v49  ;;  %5009 = vmatmul.msk.f32.gmra.mxu2 %vm540_vm2, %v1353_v63  ;;  %v1172_v1 = vadd.f32 %v1171_v3, %v7784_v30  ;;  %v3944_v63 = vrot.slane %v5510_v16, 6  ;;  %v2586_v49 = vsel %vm669_vm0, %v2584_v29, %v2585_v23  ;;  %v5512_v16 = vld [vmem:[%s5768_s26 + $0x30] sm:$0xff] }
 0x299   : > { %5075 = vmatmul.msk.f32.gmra.mxu3 %vm540_vm2, %v1765_v46  ;;  %v2591_v18 = vrot.slane %v5512_v16, 4  ;;  %v3411_v29 = vrot.slane %v5512_v16, 5 }
 0x29a   : > { %7783 = vst [vmem:[#allocation13_spill] sm:$0xff] %v6894_v27  ;;  %5141 = vmatmul.msk.f32.gmra.mxu0 %vm540_vm2, %v2177_v28  ;;  %v3946_v28 = vsel %vm3943_vm6, %v3944_v63, %v3945_v36 }
 0x29b   : > { %v1643_v33 = vpop.f32.mrf.mxu2  ;;  %v3412_v63 = vsel %vm3407_vm5, %v3409_v38, %v3411_v29 }
 0x29c   : > { %v1931_v43 = vpop.f32.mrf.mxu3  ;;  %v1741_v58 = vadd.f32 %v1643_v33, %v1172_v1  ;;  %v1174_v46 = vpop.f32.mrf.mxu1  ;;  %v7786_v1 = vld [vmem:[#allocation6_spill] sm:$0xff] }
 0x29d   : > { %v1175_v33 = vadd.f32 %v1174_v46, %v7786_v1 }
 0x29e   : > { %v2029_v27 = vadd.f32 %v1931_v43, %v1741_v58  ;;  %v3947_v58 = vrot.slane %v5512_v16, 6 }
 0x29f   : > { %5144 = vmatmul.msk.f32.vlgmr.msra.gmra.mxu1 %vm540_vm2, %v2586_v49  ;;  %v2470_v3 = vpop.f32.mrf.mxu0 }
 0x2a0   : > { %v6909_v30 = vadd.f32 %v2467_v40, %v2029_v27  ;;  %5210 = vmatmul.msk.f32.vlgmr.msra.gmra.mxu2 %vm540_vm2, %v2590_v7  ;;  %v2588_v40 = vsel %vm669_vm0, %v2585_v23, %v2587_v8  ;;  %v2592_v27 = vsel %vm669_vm0, %v2589_v50, %v2591_v18  ;;  %v3948_v46 = vsel %vm3943_vm6, %v3945_v36, %v3947_v58  ;;  %v7788_v23 = vld [vmem:[#allocation8_spill] sm:$0xff] }
 0x2a1   : > { %5276 = vmatmul.msk.f32.vlgmr.msra.gmra.mxu3 %vm540_vm2, %v3410_v41 }
 0x2a2   : > { %7785 = vst [vmem:[#allocation15_spill] sm:$0xff] %v6909_v30  ;;  %5342 = vmatmul.msk.f32.vlgmr.msra.gmra.mxu0 %vm540_vm2, %v3946_v28  ;;  %v5513_v28 = vld [vmem:[%s5768_s26 + $0x38] sm:$0xff] }
 0x2a3   : > { %v1646_v35 = vpop.f32.mrf.mxu2  ;;  %v2593_v16 = vrot.slane %v5513_v28, 4 }
 0x2a4   : > { %v1934_v43 = vpop.f32.mrf.mxu3  ;;  %v1742_v49 = vadd.f32 %v1646_v35, %v1175_v33  ;;  %v1177_v14 = vpop.f32.mrf.mxu1  ;;  %v3413_v33 = vrot.slane %v5513_v28, 5  ;;  %v3949_v35 = vrot.slane %v5513_v28, 6 }
 0x2a5   : > { %v1178_v8 = vadd.f32 %v1177_v14, %v7788_v23  ;;  %v2594_v36 = vsel %vm669_vm0, %v2591_v18, %v2593_v16  ;;  %v5514_v14 = vld [vmem:[%s5768_s26 + $0x40] sm:$0xff]  ;;  %v7790_v23 = vld [vmem:[#allocation10_spill] sm:$0xff] }
 0x2a6   : > { %v2030_v41 = vadd.f32 %v1934_v43, %v1742_v49  ;;  %v3415_v28 = vrot.slane %v5514_v14, 5 }
 0x2a7   : > { %5145 = vmatmul.msk.f32.gmra.mxu1 %vm540_vm2, %v2588_v40  ;;  %v2473_v30 = vpop.f32.mrf.mxu0 }
 0x2a8   : > { %v6921_v1 = vadd.f32 %v2470_v3, %v2030_v41  ;;  %5211 = vmatmul.msk.f32.gmra.mxu2 %vm540_vm2, %v2592_v27  ;;  %v3414_v3 = vsel %vm3407_vm5, %v3411_v29, %v3413_v33  ;;  %v3950_v41 = vsel %vm3943_vm6, %v3947_v58, %v3949_v35  ;;  %v3416_v58 = vsel %vm3407_vm5, %v3413_v33, %v3415_v28 }
 0x2a9   : > { %5277 = vmatmul.msk.f32.gmra.mxu3 %vm540_vm2, %v3412_v63 }
 0x2aa   : > { %7787 = vst [vmem:[#allocation17_spill] sm:$0xff] %v6921_v1  ;;  %5343 = vmatmul.msk.f32.gmra.mxu0 %vm540_vm2, %v3948_v46  ;;  %v2595_v46 = vrot.slane %v5514_v14, 4 }
 0x2ab   : > { %v1649_v50 = vpop.f32.mrf.mxu2 }
 0x2ac   : > { %v1937_v38 = vpop.f32.mrf.mxu3  ;;  %v1743_v43 = vadd.f32 %v1649_v50, %v1178_v8  ;;  %v1180_v49 = vpop.f32.mrf.mxu1 }
 0x2ad   : > { %v1181_v8 = vadd.f32 %v1180_v49, %v7790_v23  ;;  %v5515_v49 = vld [vmem:[%s5768_s26 + $0x48] sm:$0xff]  ;;  %v7792_v23 = vld [vmem:[#allocation12_spill] sm:$0xff] }
 0x2ae   : > { %v2031_v40 = vadd.f32 %v1937_v38, %v1743_v43 }
 0x2af   : > { %5146 = vmatmul.msk.f32.gmra.mxu1 %vm540_vm2, %v2590_v7  ;;  %v2476_v63 = vpop.f32.mrf.mxu0  ;;  %v3951_v7 = vrot.slane %v5514_v14, 6  ;;  %v3417_v14 = vrot.slane %v5515_v49, 5 }
 0x2b0   : > { %v6932_v1 = vadd.f32 %v2473_v30, %v2031_v40  ;;  %5212 = vmatmul.msk.f32.gmra.mxu2 %vm540_vm2, %v2594_v36  ;;  %v2596_v30 = vsel %vm669_vm0, %v2593_v16, %v2595_v46 }
 0x2b1   : > { %5278 = vmatmul.msk.f32.gmra.mxu3 %vm540_vm2, %v3414_v3  ;;  %v3952_v40 = vsel %vm3943_vm6, %v3949_v35, %v3951_v7 }
 0x2b2   : > { %7789 = vst [vmem:[#allocation19_spill] sm:$0xff] %v6932_v1  ;;  %5344 = vmatmul.msk.f32.gmra.mxu0 %vm540_vm2, %v3950_v41  ;;  %v2597_v41 = vrot.slane %v5515_v49, 4 }
 0x2b3   : > { %v1652_v18 = vpop.f32.mrf.mxu2 }
 0x2b4   : > { %v1940_v29 = vpop.f32.mrf.mxu3  ;;  %v1744_v50 = vadd.f32 %v1652_v18, %v1181_v8  ;;  %v1183_v38 = vpop.f32.mrf.mxu1  ;;  %v2598_v35 = vsel %vm669_vm0, %v2595_v46, %v2597_v41 }
 0x2b5   : > { %v1184_v8 = vadd.f32 %v1183_v38, %v7792_v23  ;;  %v5516_v38 = vld [vmem:[%s5768_s26 + $0x50] sm:$0xff]  ;;  %v7794_v23 = vld [vmem:[#allocation14_spill] sm:$0xff] }
 0x2b6   : > { %v2032_v43 = vadd.f32 %v1940_v29, %v1744_v50 }
 0x2b7   : > { %5147 = vmatmul.msk.f32.gmra.mxu1 %vm540_vm2, %v2592_v27  ;;  %v2479_v3 = vpop.f32.mrf.mxu0  ;;  %v3953_v27 = vrot.slane %v5515_v49, 6  ;;  %v3419_v49 = vrot.slane %v5516_v38, 5 }
 0x2b8   : > { %v6943_v1 = vadd.f32 %v2476_v63, %v2032_v43  ;;  %5213 = vmatmul.msk.f32.gmra.mxu2 %vm540_vm2, %v2596_v30  ;;  %v3418_v63 = vsel %vm3407_vm5, %v3415_v28, %v3417_v14 }
 0x2b9   : > { %5279 = vmatmul.msk.f32.gmra.mxu3 %vm540_vm2, %v3416_v58  ;;  %v3954_v43 = vsel %vm3943_vm6, %v3951_v7, %v3953_v27 }
 0x2ba   : > { %7791 = vst [vmem:[#allocation21_spill] sm:$0xff] %v6943_v1  ;;  %5345 = vmatmul.msk.f32.gmra.mxu0 %vm540_vm2, %v3952_v40  ;;  %v2599_v40 = vrot.slane %v5516_v38, 4 }
 0x2bb   : > { %v1655_v16 = vpop.f32.mrf.mxu2 }
 0x2bc   : > { %v1943_v33 = vpop.f32.mrf.mxu3  ;;  %v1745_v18 = vadd.f32 %v1655_v16, %v1184_v8  ;;  %v1186_v29 = vpop.f32.mrf.mxu1  ;;  %v2600_v7 = vsel %vm669_vm0, %v2597_v41, %v2599_v40 }
 0x2bd   : > { %v1187_v8 = vadd.f32 %v1186_v29, %v7794_v23  ;;  %v5517_v29 = vld [vmem:[%s5768_s26 + $0x58] sm:$0xff] }
 0x2be   : > { %v2033_v50 = vadd.f32 %v1943_v33, %v1745_v18  ;;  %v7796_v23 = vld [vmem:[#allocation16_spill] sm:$0xff] }
 0x2bf   : > { %5148 = vmatmul.msk.f32.gmra.mxu1 %vm540_vm2, %v2594_v36  ;;  %v2482_v58 = vpop.f32.mrf.mxu0  ;;  %v3955_v36 = vrot.slane %v5516_v38, 6  ;;  %v3421_v38 = vrot.slane %v5517_v29, 5 }
 0x2c0   : > { %v6954_v1 = vadd.f32 %v2479_v3, %v2033_v50  ;;  %5214 = vmatmul.msk.f32.gmra.mxu2 %vm540_vm2, %v2598_v35  ;;  %v3420_v3 = vsel %vm3407_vm5, %v3417_v14, %v3419_v49 }
 0x2c1   : > { %5280 = vmatmul.msk.f32.gmra.mxu3 %vm540_vm2, %v3418_v63  ;;  %v3956_v50 = vsel %vm3943_vm6, %v3953_v27, %v3955_v36 }
 0x2c2   : > { %7793 = vst [vmem:[#allocation23_spill] sm:$0xff] %v6954_v1  ;;  %5346 = vmatmul.msk.f32.gmra.mxu0 %vm540_vm2, %v3954_v43  ;;  %v2601_v43 = vrot.slane %v5517_v29, 4 }
 0x2c3   : > { %v1658_v46 = vpop.f32.mrf.mxu2 }
 0x2c4   : > { %v1946_v28 = vpop.f32.mrf.mxu3  ;;  %v1746_v16 = vadd.f32 %v1658_v46, %v1187_v8  ;;  %v1189_v33 = vpop.f32.mrf.mxu1  ;;  %v2602_v27 = vsel %vm669_vm0, %v2599_v40, %v2601_v43 }
 0x2c5   : > { %v1190_v8 = vadd.f32 %v1189_v33, %v7796_v23  ;;  %v5518_v33 = vld [vmem:[%s5768_s26 + $0x60] sm:$0xff]  ;;  %v7798_v23 = vld [vmem:[#allocation18_spill] sm:$0xff] }
 0x2c6   : > { %v2034_v18 = vadd.f32 %v1946_v28, %v1746_v16 }
 0x2c7   : > { %5149 = vmatmul.msk.f32.gmra.mxu1 %vm540_vm2, %v2596_v30  ;;  %v2485_v63 = vpop.f32.mrf.mxu0  ;;  %v3957_v30 = vrot.slane %v5517_v29, 6  ;;  %v3423_v29 = vrot.slane %v5518_v33, 5 }
 0x2c8   : > { %v6965_v1 = vadd.f32 %v2482_v58, %v2034_v18  ;;  %5215 = vmatmul.msk.f32.gmra.mxu2 %vm540_vm2, %v2600_v7  ;;  %v3422_v58 = vsel %vm3407_vm5, %v3419_v49, %v3421_v38 }
 0x2c9   : > { %5281 = vmatmul.msk.f32.gmra.mxu3 %vm540_vm2, %v3420_v3  ;;  %v3958_v18 = vsel %vm3943_vm6, %v3955_v36, %v3957_v30 }
 0x2ca   : > { %7795 = vst [vmem:[#allocation25_spill] sm:$0xff] %v6965_v1  ;;  %5347 = vmatmul.msk.f32.gmra.mxu0 %vm540_vm2, %v3956_v50  ;;  %v2603_v50 = vrot.slane %v5518_v33, 4 }
 0x2cb   : > { %v1661_v41 = vpop.f32.mrf.mxu2 }
 0x2cc   : > { %v1949_v14 = vpop.f32.mrf.mxu3  ;;  %v1747_v46 = vadd.f32 %v1661_v41, %v1190_v8  ;;  %v1192_v28 = vpop.f32.mrf.mxu1  ;;  %v2604_v36 = vsel %vm669_vm0, %v2601_v43, %v2603_v50 }
 0x2cd   : > { %v1193_v8 = vadd.f32 %v1192_v28, %v7798_v23  ;;  %v5519_v28 = vld [vmem:[%s5768_s26 + $0x68] sm:$0xff]  ;;  %v7800_v23 = vld [vmem:[#allocation20_spill] sm:$0xff] }
 0x2ce   : > { %v2035_v16 = vadd.f32 %v1949_v14, %v1747_v46 }
 0x2cf   : > { %5150 = vmatmul.msk.f32.gmra.mxu1 %vm540_vm2, %v2598_v35  ;;  %v2488_v3 = vpop.f32.mrf.mxu0  ;;  %v3959_v35 = vrot.slane %v5518_v33, 6  ;;  %v3425_v33 = vrot.slane %v5519_v28, 5 }
 0x2d0   : > { %v6976_v1 = vadd.f32 %v2485_v63, %v2035_v16  ;;  %5216 = vmatmul.msk.f32.gmra.mxu2 %vm540_vm2, %v2602_v27  ;;  %v3424_v63 = vsel %vm3407_vm5, %v3421_v38, %v3423_v29 }
 0x2d1   : > { %5282 = vmatmul.msk.f32.gmra.mxu3 %vm540_vm2, %v3422_v58  ;;  %v3960_v16 = vsel %vm3943_vm6, %v3957_v30, %v3959_v35 }
 0x2d2   : > { %7797 = vst [vmem:[#allocation27_spill] sm:$0xff] %v6976_v1  ;;  %5348 = vmatmul.msk.f32.gmra.mxu0 %vm540_vm2, %v3958_v18  ;;  %v2605_v18 = vrot.slane %v5519_v28, 4 }
 0x2d3   : > { %v1664_v40 = vpop.f32.mrf.mxu2 }
 0x2d4   : > { %v1952_v49 = vpop.f32.mrf.mxu3  ;;  %v1748_v41 = vadd.f32 %v1664_v40, %v1193_v8  ;;  %v1195_v14 = vpop.f32.mrf.mxu1  ;;  %v2606_v30 = vsel %vm669_vm0, %v2603_v50, %v2605_v18 }
 0x2d5   : > { %v1196_v8 = vadd.f32 %v1195_v14, %v7800_v23  ;;  %v5520_v14 = vld [vmem:[%s5768_s26 + $0x70] sm:$0xff]  ;;  %v7802_v23 = vld [vmem:[#allocation22_spill] sm:$0xff] }
 0x2d6   : > { %v2036_v46 = vadd.f32 %v1952_v49, %v1748_v41 }
 0x2d7   : > { %5151 = vmatmul.msk.f32.gmra.mxu1 %vm540_vm2, %v2600_v7  ;;  %v2491_v58 = vpop.f32.mrf.mxu0  ;;  %v3961_v7 = vrot.slane %v5519_v28, 6  ;;  %v3427_v28 = vrot.slane %v5520_v14, 5 }
 0x2d8   : > { %v6987_v1 = vadd.f32 %v2488_v3, %v2036_v46  ;;  %5217 = vmatmul.msk.f32.gmra.mxu2 %vm540_vm2, %v2604_v36  ;;  %v3426_v3 = vsel %vm3407_vm5, %v3423_v29, %v3425_v33 }
 0x2d9   : > { %5283 = vmatmul.msk.f32.gmra.mxu3 %vm540_vm2, %v3424_v63  ;;  %v3962_v46 = vsel %vm3943_vm6, %v3959_v35, %v3961_v7 }
 0x2da   : > { %7799 = vst [vmem:[#allocation29_spill] sm:$0xff] %v6987_v1  ;;  %5349 = vmatmul.msk.f32.gmra.mxu0 %vm540_vm2, %v3960_v16  ;;  %v2607_v16 = vrot.slane %v5520_v14, 4 }
 0x2db   : > { %v1667_v43 = vpop.f32.mrf.mxu2 }
 0x2dc   : > { %v1955_v38 = vpop.f32.mrf.mxu3  ;;  %v1749_v40 = vadd.f32 %v1667_v43, %v1196_v8  ;;  %v1198_v49 = vpop.f32.mrf.mxu1  ;;  %v2608_v35 = vsel %vm669_vm0, %v2605_v18, %v2607_v16 }
 0x2dd   : > { %v1199_v8 = vadd.f32 %v1198_v49, %v7802_v23  ;;  %v5521_v49 = vld [vmem:[%s5768_s26 + $0x78] sm:$0xff] }
 0x2de   : > { %v2037_v41 = vadd.f32 %v1955_v38, %v1749_v40  ;;  %v7804_v23 = vld [vmem:[#allocation24_spill] sm:$0xff] }
 0x2df   : > { %5152 = vmatmul.msk.f32.gmra.mxu1 %vm540_vm2, %v2602_v27  ;;  %v2494_v63 = vpop.f32.mrf.mxu0  ;;  %v3963_v27 = vrot.slane %v5520_v14, 6  ;;  %v3429_v14 = vrot.slane %v5521_v49, 5 }
 0x2e0   : > { %v6998_v1 = vadd.f32 %v2491_v58, %v2037_v41  ;;  %5218 = vmatmul.msk.f32.gmra.mxu2 %vm540_vm2, %v2606_v30  ;;  %v3428_v58 = vsel %vm3407_vm5, %v3425_v33, %v3427_v28 }
 0x2e1   : > { %5284 = vmatmul.msk.f32.gmra.mxu3 %vm540_vm2, %v3426_v3  ;;  %v3964_v41 = vsel %vm3943_vm6, %v3961_v7, %v3963_v27 }
 0x2e2   : > { %7801 = vst [vmem:[#allocation31_spill] sm:$0xff] %v6998_v1  ;;  %5350 = vmatmul.msk.f32.gmra.mxu0 %vm540_vm2, %v3962_v46  ;;  %v2609_v46 = vrot.slane %v5521_v49, 4 }
 0x2e3   : > { %v1670_v50 = vpop.f32.mrf.mxu2 }
 0x2e4   : > { %v1958_v29 = vpop.f32.mrf.mxu3  ;;  %v1750_v43 = vadd.f32 %v1670_v50, %v1199_v8  ;;  %v1201_v38 = vpop.f32.mrf.mxu1  ;;  %v2610_v7 = vsel %vm669_vm0, %v2607_v16, %v2609_v46 }
 0x2e5   : > { %v1202_v8 = vadd.f32 %v1201_v38, %v7804_v23  ;;  %v5522_v38 = vld [vmem:[%s5768_s26 + $0x80] sm:$0xff]  ;;  %v7806_v23 = vld [vmem:[#allocation26_spill] sm:$0xff] }
 0x2e6   : > { %v2038_v40 = vadd.f32 %v1958_v29, %v1750_v43 }
 0x2e7   : > { %5153 = vmatmul.msk.f32.gmra.mxu1 %vm540_vm2, %v2604_v36  ;;  %v2497_v3 = vpop.f32.mrf.mxu0  ;;  %v3965_v36 = vrot.slane %v5521_v49, 6  ;;  %v3431_v49 = vrot.slane %v5522_v38, 5 }
 0x2e8   : > { %v7009_v1 = vadd.f32 %v2494_v63, %v2038_v40  ;;  %5219 = vmatmul.msk.f32.gmra.mxu2 %vm540_vm2, %v2608_v35  ;;  %v3430_v63 = vsel %vm3407_vm5, %v3427_v28, %v3429_v14 }
 0x2e9   : > { %5285 = vmatmul.msk.f32.gmra.mxu3 %vm540_vm2, %v3428_v58  ;;  %v3966_v40 = vsel %vm3943_vm6, %v3963_v27, %v3965_v36 }
 0x2ea   : > { %7803 = vst [vmem:[#allocation34_spill] sm:$0xff] %v7009_v1  ;;  %5351 = vmatmul.msk.f32.gmra.mxu0 %vm540_vm2, %v3964_v41  ;;  %v2611_v41 = vrot.slane %v5522_v38, 4 }
 0x2eb   : > { %v1673_v18 = vpop.f32.mrf.mxu2 }
 0x2ec   : > { %v1961_v33 = vpop.f32.mrf.mxu3  ;;  %v1751_v50 = vadd.f32 %v1673_v18, %v1202_v8  ;;  %v1204_v29 = vpop.f32.mrf.mxu1  ;;  %v2612_v27 = vsel %vm669_vm0, %v2609_v46, %v2611_v41 }
 0x2ed   : > { %v1205_v8 = vadd.f32 %v1204_v29, %v7806_v23  ;;  %v5523_v29 = vld [vmem:[%s5768_s26 + $0x88] sm:$0xff]  ;;  %v7808_v23 = vld [vmem:[#allocation28_spill] sm:$0xff] }
 0x2ee   : > { %v2039_v43 = vadd.f32 %v1961_v33, %v1751_v50 }
 0x2ef   : > { %5154 = vmatmul.msk.f32.gmra.mxu1 %vm540_vm2, %v2606_v30  ;;  %v2500_v58 = vpop.f32.mrf.mxu0  ;;  %v3967_v30 = vrot.slane %v5522_v38, 6  ;;  %v3433_v38 = vrot.slane %v5523_v29, 5 }
 0x2f0   : > { %v7020_v1 = vadd.f32 %v2497_v3, %v2039_v43  ;;  %5220 = vmatmul.msk.f32.gmra.mxu2 %vm540_vm2, %v2610_v7  ;;  %v3432_v3 = vsel %vm3407_vm5, %v3429_v14, %v3431_v49 }
 0x2f1   : > { %5286 = vmatmul.msk.f32.gmra.mxu3 %vm540_vm2, %v3430_v63  ;;  %v3968_v43 = vsel %vm3943_vm6, %v3965_v36, %v3967_v30 }
 0x2f2   : > { %7805 = vst [vmem:[#allocation37_spill] sm:$0xff] %v7020_v1  ;;  %5352 = vmatmul.msk.f32.gmra.mxu0 %vm540_vm2, %v3966_v40  ;;  %v2613_v40 = vrot.slane %v5523_v29, 4 }
 0x2f3   : > { %v1676_v16 = vpop.f32.mrf.mxu2 }
 0x2f4   : > { %v1964_v28 = vpop.f32.mrf.mxu3  ;;  %v1752_v18 = vadd.f32 %v1676_v16, %v1205_v8  ;;  %v1207_v33 = vpop.f32.mrf.mxu1  ;;  %v2614_v36 = vsel %vm669_vm0, %v2611_v41, %v2613_v40 }
 0x2f5   : > { %v1208_v8 = vadd.f32 %v1207_v33, %v7808_v23  ;;  %v5524_v33 = vld [vmem:[%s5768_s26 + $0x90] sm:$0xff]  ;;  %v7810_v23 = vld [vmem:[#allocation30_spill] sm:$0xff] }
 0x2f6   : > { %v2040_v50 = vadd.f32 %v1964_v28, %v1752_v18 }
 0x2f7   : > { %5155 = vmatmul.msk.f32.gmra.mxu1 %vm540_vm2, %v2608_v35  ;;  %v2503_v63 = vpop.f32.mrf.mxu0  ;;  %v3969_v35 = vrot.slane %v5523_v29, 6  ;;  %v3435_v29 = vrot.slane %v5524_v33, 5 }
 0x2f8   : > { %v7031_v1 = vadd.f32 %v2500_v58, %v2040_v50  ;;  %5221 = vmatmul.msk.f32.gmra.mxu2 %vm540_vm2, %v2612_v27  ;;  %v3434_v58 = vsel %vm3407_vm5, %v3431_v49, %v3433_v38 }
 0x2f9   : > { %5287 = vmatmul.msk.f32.gmra.mxu3 %vm540_vm2, %v3432_v3  ;;  %v3970_v50 = vsel %vm3943_vm6, %v3967_v30, %v3969_v35 }
 0x2fa   : > { %7807 = vst [vmem:[#allocation6_spill] sm:$0xff] %v7031_v1  ;;  %5353 = vmatmul.msk.f32.gmra.mxu0 %vm540_vm2, %v3968_v43  ;;  %v2615_v43 = vrot.slane %v5524_v33, 4 }
 0x2fb   : > { %v1679_v46 = vpop.f32.mrf.mxu2 }
 0x2fc   : > { %v1967_v14 = vpop.f32.mrf.mxu3  ;;  %v1753_v16 = vadd.f32 %v1679_v46, %v1208_v8  ;;  %v1210_v28 = vpop.f32.mrf.mxu1  ;;  %v2616_v30 = vsel %vm669_vm0, %v2613_v40, %v2615_v43 }
 0x2fd   : > { %v1211_v8 = vadd.f32 %v1210_v28, %v7810_v23  ;;  %v5525_v28 = vld [vmem:[%s5768_s26 + $0x98] sm:$0xff] }
 0x2fe   : > { %v2041_v18 = vadd.f32 %v1967_v14, %v1753_v16  ;;  %v7812_v23 = vld [vmem:[#allocation32_spill] sm:$0xff] }
 0x2ff   : > { %5156 = vmatmul.msk.f32.gmra.mxu1 %vm540_vm2, %v2610_v7  ;;  %v2506_v3 = vpop.f32.mrf.mxu0  ;;  %v3971_v7 = vrot.slane %v5524_v33, 6  ;;  %v3437_v33 = vrot.slane %v5525_v28, 5 }
 0x300   : > { %v7042_v1 = vadd.f32 %v2503_v63, %v2041_v18  ;;  %5222 = vmatmul.msk.f32.gmra.mxu2 %vm540_vm2, %v2614_v36  ;;  %v3436_v63 = vsel %vm3407_vm5, %v3433_v38, %v3435_v29 }
 0x301   : > { %5288 = vmatmul.msk.f32.gmra.mxu3 %vm540_vm2, %v3434_v58  ;;  %v3972_v18 = vsel %vm3943_vm6, %v3969_v35, %v3971_v7 }
 0x302   : > { %7809 = vst [vmem:[#allocation8_spill] sm:$0xff] %v7042_v1  ;;  %5354 = vmatmul.msk.f32.gmra.mxu0 %vm540_vm2, %v3970_v50  ;;  %v2617_v50 = vrot.slane %v5525_v28, 4 }
 0x303   : > { %v1682_v41 = vpop.f32.mrf.mxu2 }
 0x304   : > { %v1970_v49 = vpop.f32.mrf.mxu3  ;;  %v1754_v46 = vadd.f32 %v1682_v41, %v1211_v8  ;;  %v1213_v14 = vpop.f32.mrf.mxu1  ;;  %v2618_v35 = vsel %vm669_vm0, %v2615_v43, %v2617_v50 }
 0x305   : > { %v1214_v8 = vadd.f32 %v1213_v14, %v7812_v23  ;;  %v5526_v14 = vld [vmem:[%s5768_s26 + $0xa0] sm:$0xff]  ;;  %v7814_v23 = vld [vmem:[#allocation35_spill] sm:$0xff] }
 0x306   : > { %v2042_v16 = vadd.f32 %v1970_v49, %v1754_v46 }
 0x307   : > { %5157 = vmatmul.msk.f32.gmra.mxu1 %vm540_vm2, %v2612_v27  ;;  %v2509_v58 = vpop.f32.mrf.mxu0  ;;  %v3973_v27 = vrot.slane %v5525_v28, 6  ;;  %v3439_v28 = vrot.slane %v5526_v14, 5 }
 0x308   : > { %v7053_v1 = vadd.f32 %v2506_v3, %v2042_v16  ;;  %5223 = vmatmul.msk.f32.gmra.mxu2 %vm540_vm2, %v2616_v30  ;;  %v3438_v3 = vsel %vm3407_vm5, %v3435_v29, %v3437_v33 }
 0x309   : > { %5289 = vmatmul.msk.f32.gmra.mxu3 %vm540_vm2, %v3436_v63  ;;  %v3974_v16 = vsel %vm3943_vm6, %v3971_v7, %v3973_v27 }
 0x30a   : > { %7811 = vst [vmem:[#allocation10_spill] sm:$0xff] %v7053_v1  ;;  %5355 = vmatmul.msk.f32.gmra.mxu0 %vm540_vm2, %v3972_v18  ;;  %v2619_v18 = vrot.slane %v5526_v14, 4 }
 0x30b   : > { %v1685_v40 = vpop.f32.mrf.mxu2 }
 0x30c   : > { %v1973_v38 = vpop.f32.mrf.mxu3  ;;  %v1755_v41 = vadd.f32 %v1685_v40, %v1214_v8  ;;  %v1216_v49 = vpop.f32.mrf.mxu1  ;;  %v2620_v7 = vsel %vm669_vm0, %v2617_v50, %v2619_v18 }
 0x30d   : > { %v1217_v8 = vadd.f32 %v1216_v49, %v7814_v23  ;;  %v5527_v49 = vld [vmem:[%s5768_s26 + $0xa8] sm:$0xff] }
 0x30e   : > { %v2043_v46 = vadd.f32 %v1973_v38, %v1755_v41  ;;  %v7815_v23 = vld [vmem:[#allocation38_spill] sm:$0xff] }
 0x30f   : > { %5158 = vmatmul.msk.f32.gmra.mxu1 %vm540_vm2, %v2614_v36  ;;  %v2512_v63 = vpop.f32.mrf.mxu0  ;;  %v3975_v36 = vrot.slane %v5526_v14, 6  ;;  %v3441_v14 = vrot.slane %v5527_v49, 5 }
 0x310   : > { %v7064_v1 = vadd.f32 %v2509_v58, %v2043_v46  ;;  %5224 = vmatmul.msk.f32.gmra.mxu2 %vm540_vm2, %v2618_v35  ;;  %v3440_v58 = vsel %vm3407_vm5, %v3437_v33, %v3439_v28 }
 0x311   : > { %5290 = vmatmul.msk.f32.gmra.mxu3 %vm540_vm2, %v3438_v3  ;;  %v3976_v46 = vsel %vm3943_vm6, %v3973_v27, %v3975_v36 }
 0x312   : > { %7813 = vst [vmem:[#allocation12_spill] sm:$0xff] %v7064_v1  ;;  %5356 = vmatmul.msk.f32.gmra.mxu0 %vm540_vm2, %v3974_v16  ;;  %v2621_v16 = vrot.slane %v5527_v49, 4 }
 0x313   : > { %v1688_v43 = vpop.f32.mrf.mxu2 }
 0x314   : > { %v1976_v29 = vpop.f32.mrf.mxu3  ;;  %v1756_v40 = vadd.f32 %v1688_v43, %v1217_v8  ;;  %v1219_v38 = vpop.f32.mrf.mxu1  ;;  %v2622_v27 = vsel %vm669_vm0, %v2619_v18, %v2621_v16 }
 0x315   : > { %v1220_v8 = vadd.f32 %v1219_v38, %v7815_v23 }
 0x316   : > { %v2044_v41 = vadd.f32 %v1976_v29, %v1756_v40 }
 0x317   : > { %5159 = vmatmul.msk.f32.gmra.mxu1 %vm540_vm2, %v2616_v30  ;;  %v2515_v3 = vpop.f32.mrf.mxu0  ;;  %v3977_v30 = vrot.slane %v5527_v49, 6 }
 0x318   : > { %v7075_v1 = vadd.f32 %v2512_v63, %v2044_v41  ;;  %5225 = vmatmul.msk.f32.gmra.mxu2 %vm540_vm2, %v2620_v7  ;;  %v3442_v63 = vsel %vm3407_vm5, %v3439_v28, %v3441_v14 }
 0x319   : > { %5291 = vmatmul.msk.f32.gmra.mxu3 %vm540_vm2, %v3440_v58  ;;  %v3978_v41 = vsel %vm3943_vm6, %v3975_v36, %v3977_v30 }
 0x31a   : > { %5357 = vmatmul.msk.f32.gmra.mxu0 %vm540_vm2, %v3976_v46  ;;  %v5528_v46 = vld [vmem:[%s5768_s26 + $0xb0] sm:$0xff] }
 0x31b   : > { %v1691_v50 = vpop.f32.mrf.mxu2  ;;  %v2623_v49 = vrot.slane %v5528_v46, 4  ;;  %v3443_v23 = vrot.slane %v5528_v46, 5 }
 0x31c   : > { %v1979_v33 = vpop.f32.mrf.mxu3  ;;  %v1757_v43 = vadd.f32 %v1691_v50, %v1220_v8  ;;  %v2861_v29 = vpop.f32.mrf.mxu1  ;;  %v3979_v8 = vrot.slane %v5528_v46, 6 }
 0x31d   : > { %v3053_v18 = vadd.f32 %v2861_v29, %v6399_v21  ;;  %v7103_v29 = vld [vmem:[%s7721_s3] ss:$0 sm:$0xff] }
 0x31e   : > { %v2045_v40 = vadd.f32 %v1979_v33, %v1757_v43  ;;  %v3444_v33 = vsel %vm3407_vm5, %v3441_v14, %v3443_v23 }
 0x31f   : > { %5160 = vmatmul.msk.f32.gmra.mxu1 %vm540_vm2, %v2618_v35  ;;  %v4221_v58 = vpop.f32.mrf.mxu0 }
 0x320   : > { %v7086_v38 = vadd.f32 %v2515_v3, %v2045_v40  ;;  %5226 = vmatmul.msk.f32.gmra.mxu2 %vm540_vm2, %v2622_v27  ;;  %v2624_v3 = vsel %vm669_vm0, %v2621_v16, %v2623_v49  ;;  %v3980_v40 = vsel %vm3943_vm6, %v3977_v30, %v3979_v8  ;;  %v5529_v16 = vld [vmem:[%s5768_s26 + $0xb8] sm:$0xff] }
 0x321   : > { %5292 = vmatmul.msk.f32.gmra.mxu3 %vm540_vm2, %v3442_v63  ;;  %v2625_v14 = vrot.slane %v5529_v16, 4 }
 0x322   : > { %5358 = vmatmul.msk.f32.gmra.mxu0 %vm540_vm2, %v3978_v41  ;;  %v3445_v41 = vrot.slane %v5529_v16, 5 }
 0x323   : > { %v3149_v28 = vpop.f32.mrf.mxu2 }
 0x324   : > { %v3685_v35 = vpop.f32.mrf.mxu3  ;;  %v3341_v50 = vadd.f32 %v3149_v28, %v3053_v18  ;;  %v2864_v36 = vpop.f32.mrf.mxu1 }
 0x326   : > { %v3877_v43 = vadd.f32 %v3685_v35, %v3341_v50 }
 0x327   : > { %5161 = vmatmul.msk.f32.gmra.mxu1 %vm540_vm2, %v2620_v7  ;;  %v4224_v63 = vpop.f32.mrf.mxu0  ;;  %v3054_v7 = vadd.f32 %v2864_v36, %v6411_v25 }
 0x328   : > { %v4413_v21 = vadd.f32 %v4221_v58, %v3877_v43  ;;  %5227 = vmatmul.msk.f32.gmra.mxu2 %vm540_vm2, %v2624_v3  ;;  %v3981_v58 = vrot.slane %v5529_v16, 6  ;;  %v2626_v43 = vsel %vm669_vm0, %v2623_v49, %v2625_v14  ;;  %v5530_v16 = vld [vmem:[%s5768_s26 + $0xc0] sm:$0xff] }
 0x329   : > { %5293 = vmatmul.msk.f32.gmra.mxu3 %vm540_vm2, %v3444_v33  ;;  %v3446_v33 = vsel %vm3407_vm5, %v3443_v23, %v3445_v41  ;;  %v2627_v49 = vrot.slane %v5530_v16, 4 }
 0x32a   : > { %v4477_v46 = vmul.f32 0.16666667, %v4413_v21  ;;  %5359 = vmatmul.msk.f32.gmra.mxu0 %vm540_vm2, %v3980_v40  ;;  %v3982_v40 = vsel %vm3943_vm6, %v3979_v8, %v3981_v58 }
 0x32b   : > { %v3152_v30 = vpop.f32.mrf.mxu2 }
 0x32c   : > { %v3688_v18 = vpop.f32.mrf.mxu3  ;;  %v4545_v28 = vadd.f32 %v7103_v29, %v4477_v46  ;;  %v3342_v35 = vadd.f32 %v3152_v30, %v3054_v7  ;;  %v2867_v50 = vpop.f32.mrf.mxu1  ;;  %v3447_v7 = vrot.slane %v5530_v16, 5 }
 0x32d   : > { %v3055_v23 = vadd.f32 %v2867_v50, %v6423_v20 }
 0x32e   : > { %4609 = vst [vmem:[%s7113_s6] sm:$0xff] %v4545_v28  ;;  %v3878_v25 = vadd.f32 %v3688_v18, %v3342_v35  ;;  %v3983_v18 = vrot.slane %v5530_v16, 6  ;;  %v2628_v35 = vsel %vm669_vm0, %v2625_v14, %v2627_v49 }
 0x32f   : > { %5162 = vmatmul.msk.f32.gmra.mxu1 %vm540_vm2, %v2622_v27  ;;  %v4227_v36 = vpop.f32.mrf.mxu0 }
 0x330   : > { %v4414_v21 = vadd.f32 %v4224_v63, %v3878_v25  ;;  %5228 = vmatmul.msk.f32.gmra.mxu2 %vm540_vm2, %v2626_v43  ;;  %v3984_v50 = vsel %vm3943_vm6, %v3981_v58, %v3983_v18 }
 0x331   : > { %5294 = vmatmul.msk.f32.gmra.mxu3 %vm540_vm2, %v3446_v33  ;;  %v3448_v33 = vsel %vm3407_vm5, %v3445_v41, %v3447_v7 }
 0x332   : > { %v4478_v46 = vmul.f32 0.16666667, %v4414_v21  ;;  %5360 = vmatmul.msk.f32.gmra.mxu0 %vm540_vm2, %v3982_v40  ;;  %v5531_v21 = vld [vmem:[%s5768_s26 + $0xc8] sm:$0xff] }
 0x333   : > { %v3155_v30 = vpop.f32.mrf.mxu2  ;;  %v2629_v16 = vrot.slane %v5531_v21, 4 }
 0x334   : > { %v3691_v27 = vpop.f32.mrf.mxu3  ;;  %v4546_v8 = vadd.f32 %v7103_v29, %v4478_v46  ;;  %v3343_v63 = vadd.f32 %v3155_v30, %v3055_v23  ;;  %v2870_v28 = vpop.f32.mrf.mxu1  ;;  %v3449_v23 = vrot.slane %v5531_v21, 5  ;;  %v3985_v30 = vrot.slane %v5531_v21, 6 }
 0x335   : > { %v3056_v14 = vadd.f32 %v2870_v28, %v6435_v61 }
 0x336   : > { %4610 = vst [vmem:[%s7113_s6 + $0x8] sm:$0xff] %v4546_v8  ;;  %v3879_v25 = vadd.f32 %v3691_v27, %v3343_v63  ;;  %v2630_v8 = vsel %vm669_vm0, %v2627_v49, %v2629_v16  ;;  %v3450_v63 = vsel %vm3407_vm5, %v3447_v7, %v3449_v23  ;;  %v3986_v28 = vsel %vm3943_vm6, %v3983_v18, %v3985_v30 }
 0x337   : > { %5163 = vmatmul.msk.f32.gmra.mxu1 %vm540_vm2, %v2624_v3  ;;  %v4230_v20 = vpop.f32.mrf.mxu0 }
 0x338   : > { %v4415_v40 = vadd.f32 %v4227_v36, %v3879_v25  ;;  %5229 = vmatmul.msk.f32.gmra.mxu2 %vm540_vm2, %v2628_v35 }
 0x339   : > { %5295 = vmatmul.msk.f32.gmra.mxu3 %vm540_vm2, %v3448_v33 }
 0x33a   : > { %v4479_v46 = vmul.f32 0.16666667, %v4415_v40  ;;  %5361 = vmatmul.msk.f32.gmra.mxu0 %vm540_vm2, %v3984_v50  ;;  %v5532_v50 = vld [vmem:[%s5768_s26 + $0xd0] sm:$0xff] }
 0x33b   : > { %v3158_v41 = vpop.f32.mrf.mxu2  ;;  %v2631_v40 = vrot.slane %v5532_v50, 4  ;;  %v3451_v21 = vrot.slane %v5532_v50, 5 }
 0x33c   : > { %v3694_v3 = vpop.f32.mrf.mxu3  ;;  %v4547_v58 = vadd.f32 %v7103_v29, %v4479_v46  ;;  %v3344_v36 = vadd.f32 %v3158_v41, %v3056_v14  ;;  %v2873_v27 = vpop.f32.mrf.mxu1  ;;  %v3987_v46 = vrot.slane %v5532_v50, 6 }
 0x33d   : > { %v3057_v49 = vadd.f32 %v2873_v27, %v6447_v6 }
 0x33e   : > { %4611 = vst [vmem:[%s7113_s6 + $0x10] sm:$0xff] %v4547_v58  ;;  %v3880_v33 = vadd.f32 %v3694_v3, %v3344_v36  ;;  %v2632_v3 = vsel %vm669_vm0, %v2629_v16, %v2631_v40  ;;  %v3452_v58 = vsel %vm3407_vm5, %v3449_v23, %v3451_v21  ;;  %v3988_v27 = vsel %vm3943_vm6, %v3985_v30, %v3987_v46 }
 0x33f   : > { %5164 = vmatmul.msk.f32.gmra.mxu1 %vm540_vm2, %v2626_v43  ;;  %v4233_v61 = vpop.f32.mrf.mxu0 }
 0x340   : > { %v4416_v25 = vadd.f32 %v4230_v20, %v3880_v33  ;;  %5230 = vmatmul.msk.f32.gmra.mxu2 %vm540_vm2, %v2630_v8  ;;  %v5533_v33 = vld [vmem:[%s5768_s26 + $0xd8] sm:$0xff] }
 0x341   : > { %5296 = vmatmul.msk.f32.gmra.mxu3 %vm540_vm2, %v3450_v63 }
 0x342   : > { %v4480_v14 = vmul.f32 0.16666667, %v4416_v25  ;;  %5362 = vmatmul.msk.f32.gmra.mxu0 %vm540_vm2, %v3986_v28  ;;  %v2633_v28 = vrot.slane %v5533_v33, 4  ;;  %v3453_v25 = vrot.slane %v5533_v33, 5 }
 0x343   : > { %v3161_v7 = vpop.f32.mrf.mxu2 }
 0x344   : > { %v3697_v43 = vpop.f32.mrf.mxu3  ;;  %v4548_v18 = vadd.f32 %v7103_v29, %v4480_v14  ;;  %v3345_v20 = vadd.f32 %v3161_v7, %v3057_v49  ;;  %v2876_v41 = vpop.f32.mrf.mxu1  ;;  %v3989_v49 = vrot.slane %v5533_v33, 6  ;;  %v2634_v7 = vsel %vm669_vm0, %v2631_v40, %v2633_v28 }
 0x345   : > { %v3058_v16 = vadd.f32 %v2876_v41, %v6459_v4 }
 0x346   : > { %4612 = vst [vmem:[%s7113_s6 + $0x18] sm:$0xff] %v4548_v18  ;;  %v3881_v36 = vadd.f32 %v3697_v43, %v3345_v20  ;;  %v3454_v43 = vsel %vm3407_vm5, %v3451_v21, %v3453_v25  ;;  %v3990_v20 = vsel %vm3943_vm6, %v3987_v46, %v3989_v49 }
 0x347   : > { %5165 = vmatmul.msk.f32.gmra.mxu1 %vm540_vm2, %v2628_v35  ;;  %v4236_v6 = vpop.f32.mrf.mxu0 }
 0x348   : > { %v4417_v63 = vadd.f32 %v4233_v61, %v3881_v36  ;;  %5231 = vmatmul.msk.f32.gmra.mxu2 %vm540_vm2, %v2632_v3 }
 0x349   : > { %5297 = vmatmul.msk.f32.gmra.mxu3 %vm540_vm2, %v3452_v58  ;;  %v5534_v58 = vld [vmem:[%s5768_s26 + $0xe0] sm:$0xff] }
 0x34a   : > { %v4481_v50 = vmul.f32 0.16666667, %v4417_v63  ;;  %5363 = vmatmul.msk.f32.gmra.mxu0 %vm540_vm2, %v3988_v27  ;;  %v2635_v36 = vrot.slane %v5534_v58, 4  ;;  %v3455_v27 = vrot.slane %v5534_v58, 5  ;;  %v3991_v33 = vrot.slane %v5534_v58, 6 }
 0x34b   : > { %v3164_v23 = vpop.f32.mrf.mxu2 }
 0x34c   : > { %v3700_v35 = vpop.f32.mrf.mxu3  ;;  %v4549_v30 = vadd.f32 %v7103_v29, %v4481_v50  ;;  %v3346_v61 = vadd.f32 %v3164_v23, %v3058_v16  ;;  %v2879_v14 = vpop.f32.mrf.mxu1  ;;  %v2636_v50 = vsel %vm669_vm0, %v2633_v28, %v2635_v36  ;;  %v3456_v23 = vsel %vm3407_vm5, %v3453_v25, %v3455_v27 }
 0x34d   : > { %v3059_v40 = vadd.f32 %v2879_v14, %v6471_v32  ;;  %v5535_v14 = vld [vmem:[%s5768_s26 + $0xe8] sm:$0xff] }
 0x34e   : > { %4613 = vst [vmem:[%s7113_s6 + $0x20] sm:$0xff] %v4549_v30  ;;  %v3882_v18 = vadd.f32 %v3700_v35, %v3346_v61  ;;  %v3992_v30 = vsel %vm3943_vm6, %v3989_v49, %v3991_v33 }
 0x34f   : > { %5166 = vmatmul.msk.f32.gmra.mxu1 %vm540_vm2, %v2630_v8  ;;  %v4239_v4 = vpop.f32.mrf.mxu0 }
 0x350   : > { %v4418_v41 = vadd.f32 %v4236_v6, %v3882_v18  ;;  %5232 = vmatmul.msk.f32.gmra.mxu2 %vm540_vm2, %v2634_v7  ;;  %v3457_v18 = vrot.slane %v5535_v14, 5 }
 0x351   : > { %5298 = vmatmul.msk.f32.gmra.mxu3 %vm540_vm2, %v3454_v43  ;;  %v2637_v43 = vrot.slane %v5535_v14, 4 }
 0x352   : > { %v4482_v63 = vmul.f32 0.16666667, %v4418_v41  ;;  %5364 = vmatmul.msk.f32.gmra.mxu0 %vm540_vm2, %v3990_v20  ;;  %v3993_v41 = vrot.slane %v5535_v14, 6 }
 0x353   : > { %v3167_v21 = vpop.f32.mrf.mxu2 }
 0x354   : > { %v3703_v8 = vpop.f32.mrf.mxu3  ;;  %v4550_v46 = vadd.f32 %v7103_v29, %v4482_v63  ;;  %v3347_v6 = vadd.f32 %v3167_v21, %v3059_v40  ;;  %v2882_v16 = vpop.f32.mrf.mxu1  ;;  %v2638_v40 = vsel %vm669_vm0, %v2635_v36, %v2637_v43  ;;  %v3458_v63 = vsel %vm3407_vm5, %v3455_v27, %v3457_v18 }
 0x355   : > { %v3060_v28 = vadd.f32 %v2882_v16, %v6483_v44 }
 0x356   : > { %4614 = vst [vmem:[%s7113_s6 + $0x28] sm:$0xff] %v4550_v46  ;;  %v3883_v35 = vadd.f32 %v3703_v8, %v3347_v6  ;;  %v3994_v8 = vsel %vm3943_vm6, %v3991_v33, %v3993_v41  ;;  %v5536_v6 = vld [vmem:[%s5768_s26 + $0xf0] sm:$0xff] }
 0x357   : > { %5167 = vmatmul.msk.f32.gmra.mxu1 %vm540_vm2, %v2632_v3  ;;  %v4242_v32 = vpop.f32.mrf.mxu0  ;;  %v2639_v16 = vrot.slane %v5536_v6, 4 }
 0x358   : > { %v4419_v61 = vadd.f32 %v4239_v4, %v3883_v35  ;;  %5233 = vmatmul.msk.f32.gmra.mxu2 %vm540_vm2, %v2636_v50 }
 0x359   : > { %5299 = vmatmul.msk.f32.gmra.mxu3 %vm540_vm2, %v3456_v23  ;;  %v3459_v23 = vrot.slane %v5536_v6, 5  ;;  %v2640_v14 = vsel %vm669_vm0, %v2637_v43, %v2639_v16 }
 0x35a   : > { %v4483_v20 = vmul.f32 0.16666667, %v4419_v61  ;;  %5365 = vmatmul.msk.f32.gmra.mxu0 %vm540_vm2, %v3992_v30  ;;  %v3995_v30 = vrot.slane %v5536_v6, 6 }
 0x35b   : > { %v3170_v25 = vpop.f32.mrf.mxu2 }
 0x35c   : > { %v3706_v3 = vpop.f32.mrf.mxu3  ;;  %v4551_v49 = vadd.f32 %v7103_v29, %v4483_v20  ;;  %v3348_v4 = vadd.f32 %v3170_v25, %v3060_v28  ;;  %v2885_v58 = vpop.f32.mrf.mxu1  ;;  %v3460_v28 = vsel %vm3407_vm5, %v3457_v18, %v3459_v23  ;;  %v3996_v25 = vsel %vm3943_vm6, %v3993_v41, %v3995_v30 }
 0x35d   : > { %v3061_v36 = vadd.f32 %v2885_v58, %v6495_v48 }
 0x35e   : > { %4615 = vst [vmem:[%s7113_s6 + $0x30] sm:$0xff] %v4551_v49  ;;  %v3884_v21 = vadd.f32 %v3706_v3, %v3348_v4  ;;  %v5537_v49 = vld [vmem:[%s5768_s26 + $0xf8] sm:$0xff] }
 0x35f   : > { %5168 = vmatmul.msk.f32.gmra.mxu1 %vm540_vm2, %v2634_v7  ;;  %v4245_v44 = vpop.f32.mrf.mxu0  ;;  %v2641_v4 = vrot.slane %v5537_v49, 4  ;;  %v3461_v58 = vrot.slane %v5537_v49, 5 }
 0x360   : > { %v4420_v46 = vadd.f32 %v4242_v32, %v3884_v21  ;;  %5234 = vmatmul.msk.f32.gmra.mxu2 %vm540_vm2, %v2638_v40  ;;  %v3997_v21 = vrot.slane %v5537_v49, 6 }
 0x361   : > { %5300 = vmatmul.msk.f32.gmra.mxu3 %vm540_vm2, %v3458_v63  ;;  %v3462_v6 = vsel %vm3407_vm5, %v3459_v23, %v3461_v58 }
 0x362   : > { %v4484_v35 = vmul.f32 0.16666667, %v4420_v46  ;;  %5366 = vmatmul.msk.f32.gmra.mxu0 %vm540_vm2, %v3994_v8  ;;  %v2642_v46 = vsel %vm669_vm0, %v2639_v16, %v2641_v4 }
 0x363   : > { %v3173_v27 = vpop.f32.mrf.mxu2 }
 0x364   : > { %v3709_v7 = vpop.f32.mrf.mxu3  ;;  %v4552_v33 = vadd.f32 %v7103_v29, %v4484_v35  ;;  %v3349_v32 = vadd.f32 %v3173_v27, %v3061_v36  ;;  %v2888_v61 = vpop.f32.mrf.mxu1  ;;  %v3998_v35 = vsel %vm3943_vm6, %v3995_v30, %v3997_v21 }
 0x365   : > { %v3062_v43 = vadd.f32 %v2888_v61, %v6507_v31 }
 0x366   : > { %4616 = vst [vmem:[%s7113_s6 + $0x38] sm:$0xff] %v4552_v33  ;;  %v3885_v20 = vadd.f32 %v3709_v7, %v3349_v32  ;;  %v5538_v7 = vld [vmem:[%s5768_s26 + $0x100] sm:$0xff] }
 0x367   : > { %5169 = vmatmul.msk.f32.gmra.mxu1 %vm540_vm2, %v2636_v50  ;;  %v4248_v48 = vpop.f32.mrf.mxu0  ;;  %v2643_v33 = vrot.slane %v5538_v7, 4  ;;  %v3463_v32 = vrot.slane %v5538_v7, 5 }
 0x368   : > { %v4421_v3 = vadd.f32 %v4245_v44, %v3885_v20  ;;  %5235 = vmatmul.msk.f32.gmra.mxu2 %vm540_vm2, %v2640_v14 }
 0x369   : > { %5301 = vmatmul.msk.f32.gmra.mxu3 %vm540_vm2, %v3460_v28  ;;  %v3999_v28 = vrot.slane %v5538_v7, 6 }
 0x36a   : > { %v4485_v63 = vmul.f32 0.16666667, %v4421_v3  ;;  %5367 = vmatmul.msk.f32.gmra.mxu0 %vm540_vm2, %v3996_v25  ;;  %v2644_v25 = vsel %vm669_vm0, %v2641_v4, %v2643_v33  ;;  %v3464_v3 = vsel %vm3407_vm5, %v3461_v58, %v3463_v32 }
 0x36b   : > { %v3176_v18 = vpop.f32.mrf.mxu2 }
 0x36c   : > { %v3712_v50 = vpop.f32.mrf.mxu3  ;;  %v4553_v41 = vadd.f32 %v7103_v29, %v4485_v63  ;;  %v3350_v44 = vadd.f32 %v3176_v18, %v3062_v43  ;;  %v2891_v8 = vpop.f32.mrf.mxu1  ;;  %v4000_v43 = vsel %vm3943_vm6, %v3997_v21, %v3999_v28  ;;  %v5539_v18 = vld [vmem:[%s5768_s26 + $0x108] sm:$0xff] }
 0x36d   : > { %v3063_v16 = vadd.f32 %v2891_v8, %v6519_v55  ;;  %v4001_v8 = vrot.slane %v5539_v18, 6 }
 0x36e   : > { %4617 = vst [vmem:[%s7113_s6 + $0x40] sm:$0xff] %v4553_v41  ;;  %v3886_v36 = vadd.f32 %v3712_v50, %v3350_v44  ;;  %v2645_v50 = vrot.slane %v5539_v18, 4  ;;  %v3465_v41 = vrot.slane %v5539_v18, 5 }
 0x36f   : > { %5170 = vmatmul.msk.f32.gmra.mxu1 %vm540_vm2, %v2638_v40  ;;  %v4251_v31 = vpop.f32.mrf.mxu0  ;;  %v4002_v7 = vsel %vm3943_vm6, %v3999_v28, %v4001_v8 }
 0x370   : > { %v4422_v27 = vadd.f32 %v4248_v48, %v3886_v36  ;;  %5236 = vmatmul.msk.f32.gmra.mxu2 %vm540_vm2, %v2642_v46 }
 0x371   : > { %5302 = vmatmul.msk.f32.gmra.mxu3 %vm540_vm2, %v3462_v6 }
 0x372   : > { %v4486_v61 = vmul.f32 0.16666667, %v4422_v27  ;;  %5368 = vmatmul.msk.f32.gmra.mxu0 %vm540_vm2, %v3998_v35  ;;  %v3466_v35 = vsel %vm3407_vm5, %v3463_v32, %v3465_v41 }
 0x373   : > { %v3179_v23 = vpop.f32.mrf.mxu2 }
 0x374   : > { %v3715_v40 = vpop.f32.mrf.mxu3  ;;  %v4554_v30 = vadd.f32 %v7103_v29, %v4486_v61  ;;  %v3351_v20 = vadd.f32 %v3179_v23, %v3063_v16  ;;  %v2894_v48 = vpop.f32.mrf.mxu1  ;;  %v5540_v61 = vld [vmem:[%s5768_s26 + $0x110] sm:$0xff] }
 0x375   : > { %v3064_v4 = vadd.f32 %v2894_v48, %v6531_v9  ;;  %v2647_v23 = vrot.slane %v5540_v61, 4 }
 0x376   : > { %4618 = vst [vmem:[%s7113_s6 + $0x48] sm:$0xff] %v4554_v30  ;;  %v3887_v49 = vadd.f32 %v3715_v40, %v3351_v20  ;;  %v3467_v40 = vrot.slane %v5540_v61, 5  ;;  %v4003_v20 = vrot.slane %v5540_v61, 6  ;;  %v5542_v61 = vld [vmem:[%s5768_s26 + $0x120] sm:$0xff] }
 0x377   : > { %5171 = vmatmul.msk.f32.gmra.mxu1 %vm540_vm2, %v2640_v14  ;;  %v4254_v55 = vpop.f32.mrf.mxu0 }
 0x378   : > { %v4423_v63 = vadd.f32 %v4251_v31, %v3887_v49  ;;  %5237 = vmatmul.msk.f32.gmra.mxu2 %vm540_vm2, %v2644_v25  ;;  %v2646_v31 = vsel %vm669_vm0, %v2643_v33, %v2645_v50  ;;  %v2648_v49 = vsel %vm669_vm0, %v2645_v50, %v2647_v23 }
 0x379   : > { %5303 = vmatmul.msk.f32.gmra.mxu3 %vm540_vm2, %v3464_v3 }
 0x37a   : > { %v4487_v44 = vmul.f32 0.16666667, %v4423_v63  ;;  %5369 = vmatmul.msk.f32.gmra.mxu0 %vm540_vm2, %v4000_v43  ;;  %v4004_v63 = vsel %vm3943_vm6, %v4001_v8, %v4003_v20 }
 0x37b   : > { %v3182_v58 = vpop.f32.mrf.mxu2 }
 0x37c   : > { %v3718_v14 = vpop.f32.mrf.mxu3  ;;  %v4555_v21 = vadd.f32 %v7103_v29, %v4487_v44  ;;  %v3352_v6 = vadd.f32 %v3182_v58, %v3064_v4  ;;  %v2897_v36 = vpop.f32.mrf.mxu1  ;;  %v5541_v4 = vld [vmem:[%s5768_s26 + $0x118] sm:$0xff] }
 0x37d   : > { %v3065_v33 = vadd.f32 %v2897_v36, %v6542_v11  ;;  %v2649_v44 = vrot.slane %v5541_v4, 4  ;;  %v3469_v58 = vrot.slane %v5541_v4, 5 }
 0x37e   : > { %4619 = vst [vmem:[%s7113_s6 + $0x50] sm:$0xff] %v4555_v21  ;;  %v3888_v27 = vadd.f32 %v3718_v14, %v3352_v6  ;;  %v4005_v21 = vrot.slane %v5541_v4, 6 }
 0x37f   : > { %5172 = vmatmul.msk.f32.gmra.mxu1 %vm540_vm2, %v2642_v46  ;;  %v4257_v9 = vpop.f32.mrf.mxu0 }
 0x380   : > { %v4424_v16 = vadd.f32 %v4254_v55, %v3888_v27  ;;  %5238 = vmatmul.msk.f32.gmra.mxu2 %vm540_vm2, %v2646_v31  ;;  %v3468_v55 = vsel %vm3407_vm5, %v3465_v41, %v3467_v40  ;;  %v3470_v27 = vsel %vm3407_vm5, %v3467_v40, %v3469_v58 }
 0x381   : > { %5304 = vmatmul.msk.f32.gmra.mxu3 %vm540_vm2, %v3466_v35  ;;  %v2650_v35 = vsel %vm669_vm0, %v2647_v23, %v2649_v44 }
 0x382   : > { %v4488_v30 = vmul.f32 0.16666667, %v4424_v16  ;;  %5370 = vmatmul.msk.f32.gmra.mxu0 %vm540_vm2, %v4002_v7  ;;  %v4006_v7 = vsel %vm3943_vm6, %v4003_v20, %v4005_v21 }
 0x383   : > { %v3185_v32 = vpop.f32.mrf.mxu2 }
 0x384   : > { %v3721_v46 = vpop.f32.mrf.mxu3  ;;  %v4556_v28 = vadd.f32 %v7103_v29, %v4488_v30  ;;  %v3353_v48 = vadd.f32 %v3185_v32, %v3065_v33  ;;  %v2900_v3 = vpop.f32.mrf.mxu1  ;;  %v2651_v33 = vrot.slane %v5542_v61, 4  ;;  %v3471_v30 = vrot.slane %v5542_v61, 5 }
 0x385   : > { %v3066_v50 = vadd.f32 %v2900_v3, %v6553_v17 }
 0x386   : > { %4620 = vst [vmem:[%s7113_s6 + $0x58] sm:$0xff] %v4556_v28  ;;  %v3889_v43 = vadd.f32 %v3721_v46, %v3353_v48  ;;  %v4007_v46 = vrot.slane %v5542_v61, 6  ;;  %v2652_v3 = vsel %vm669_vm0, %v2649_v44, %v2651_v33 }
 0x387   : > { %5173 = vmatmul.msk.f32.gmra.mxu1 %vm540_vm2, %v2644_v25  ;;  %v4260_v11 = vpop.f32.mrf.mxu0 }
 0x388   : > { %v4425_v18 = vadd.f32 %v4257_v9, %v3889_v43  ;;  %5239 = vmatmul.msk.f32.gmra.mxu2 %vm540_vm2, %v2648_v49 }
 0x389   : > { %5305 = vmatmul.msk.f32.gmra.mxu3 %vm540_vm2, %v3468_v55  ;;  %v3472_v55 = vsel %vm3407_vm5, %v3469_v58, %v3471_v30 }
 0x38a   : > { %v4489_v14 = vmul.f32 0.16666667, %v4425_v18  ;;  %5371 = vmatmul.msk.f32.gmra.mxu0 %vm540_vm2, %v4004_v63  ;;  %v5543_v18 = vld [vmem:[%s5768_s26 + $0x128] sm:$0xff] }
 0x38b   : > { %v3188_v41 = vpop.f32.mrf.mxu2  ;;  %v2653_v4 = vrot.slane %v5543_v18, 4 }
 0x38c   : > { %v3724_v25 = vpop.f32.mrf.mxu3  ;;  %v4557_v8 = vadd.f32 %v7103_v29, %v4489_v14  ;;  %v3354_v6 = vadd.f32 %v3188_v41, %v3066_v50  ;;  %v2903_v36 = vpop.f32.mrf.mxu1  ;;  %v3473_v50 = vrot.slane %v5543_v18, 5  ;;  %v4009_v41 = vrot.slane %v5543_v18, 6 }
 0x38d   : > { %v3067_v23 = vadd.f32 %v2903_v36, %v6564_v52 }
 0x38e   : > { %4621 = vst [vmem:[%s7113_s6 + $0x60] sm:$0xff] %v4557_v8  ;;  %v3890_v9 = vadd.f32 %v3724_v25, %v3354_v6  ;;  %v2654_v6 = vsel %vm669_vm0, %v2651_v33, %v2653_v4  ;;  %v3474_v36 = vsel %vm3407_vm5, %v3471_v30, %v3473_v50 }
 0x38f   : > { %5174 = vmatmul.msk.f32.gmra.mxu1 %vm540_vm2, %v2646_v31  ;;  %v4263_v17 = vpop.f32.mrf.mxu0 }
 0x390   : > { %v4426_v16 = vadd.f32 %v4260_v11, %v3890_v9  ;;  %5240 = vmatmul.msk.f32.gmra.mxu2 %vm540_vm2, %v2650_v35  ;;  %v4008_v11 = vsel %vm3943_vm6, %v4005_v21, %v4007_v46  ;;  %v4010_v9 = vsel %vm3943_vm6, %v4007_v46, %v4009_v41 }
 0x391   : > { %5306 = vmatmul.msk.f32.gmra.mxu3 %vm540_vm2, %v3470_v27 }
 0x392   : > { %v4490_v32 = vmul.f32 0.16666667, %v4426_v16  ;;  %5372 = vmatmul.msk.f32.gmra.mxu0 %vm540_vm2, %v4006_v7  ;;  %v5544_v7 = vld [vmem:[%s5768_s26 + $0x130] sm:$0xff] }
 0x393   : > { %v3191_v40 = vpop.f32.mrf.mxu2  ;;  %v2655_v16 = vrot.slane %v5544_v7, 4  ;;  %v3475_v61 = vrot.slane %v5544_v7, 5 }
 0x394   : > { %v3727_v31 = vpop.f32.mrf.mxu3  ;;  %v4558_v20 = vadd.f32 %v7103_v29, %v4490_v32  ;;  %v3355_v28 = vadd.f32 %v3191_v40, %v3067_v23  ;;  %v2906_v48 = vpop.f32.mrf.mxu1  ;;  %v4011_v32 = vrot.slane %v5544_v7, 6 }
 0x395   : > { %v3068_v44 = vadd.f32 %v2906_v48, %v6574_v5 }
 0x396   : > { %4622 = vst [vmem:[%s7113_s6 + $0x68] sm:$0xff] %v4558_v20  ;;  %v3891_v43 = vadd.f32 %v3727_v31, %v3355_v28  ;;  %v2656_v20 = vsel %vm669_vm0, %v2653_v4, %v2655_v16  ;;  %v3476_v28 = vsel %vm3407_vm5, %v3473_v50, %v3475_v61 }
 0x397   : > { %5175 = vmatmul.msk.f32.gmra.mxu1 %vm540_vm2, %v2648_v49  ;;  %v4266_v52 = vpop.f32.mrf.mxu0 }
 0x398   : > { %v4427_v63 = vadd.f32 %v4263_v17, %v3891_v43  ;;  %5241 = vmatmul.msk.f32.gmra.mxu2 %vm540_vm2, %v2652_v3 }
 0x399   : > { %5307 = vmatmul.msk.f32.gmra.mxu3 %vm540_vm2, %v3472_v55  ;;  %v4012_v55 = vsel %vm3943_vm6, %v4009_v41, %v4011_v32 }
 0x39a   : > { %v4491_v14 = vmul.f32 0.16666667, %v4427_v63  ;;  %5373 = vmatmul.msk.f32.gmra.mxu0 %vm540_vm2, %v4008_v11 }
 0x39b   : > { %v3194_v58 = vpop.f32.mrf.mxu2 }
 0x39c   : > { %v3730_v49 = vpop.f32.mrf.mxu3  ;;  %v4559_v25 = vadd.f32 %v7103_v29, %v4491_v14  ;;  %v3356_v21 = vadd.f32 %v3194_v58, %v3068_v44  ;;  %v2909_v8 = vpop.f32.mrf.mxu1 }
 0x39d   : > { %v3069_v33 = vadd.f32 %v2909_v8, %v6584_v24 }
 0x39e   : > { %4623 = vst [vmem:[%s7113_s6 + $0x70] sm:$0xff] %v4559_v25  ;;  %v3892_v27 = vadd.f32 %v3730_v49, %v3356_v21 }
 0x39f   : > { %5176 = vmatmul.msk.f32.gmra.mxu1 %vm540_vm2, %v2650_v35  ;;  %v4269_v5 = vpop.f32.mrf.mxu0 }
 0x3a0   : > { %v4428_v17 = vadd.f32 %v4266_v52, %v3892_v27  ;;  %5242 = vmatmul.msk.f32.gmra.mxu2 %vm540_vm2, %v2654_v6  ;;  %v5545_v52 = vld [vmem:[%s5768_s26 + $0x138] sm:$0xff]  ;;  %v5546_v27 = vld [vmem:[%s5768_s26 + $0x140] sm:$0xff] }
 0x3a1   : > { %5308 = vmatmul.msk.f32.gmra.mxu3 %vm540_vm2, %v3474_v36  ;;  %v2657_v11 = vrot.slane %v5545_v52, 4  ;;  %v3477_v63 = vrot.slane %v5545_v52, 5  ;;  %v4013_v44 = vrot.slane %v5545_v52, 6 }
 0x3a2   : > { %v4492_v23 = vmul.f32 0.16666667, %v4428_v17  ;;  %5374 = vmatmul.msk.f32.gmra.mxu0 %vm540_vm2, %v4010_v9  ;;  %v3479_v9 = vrot.slane %v5546_v27, 5 }
 0x3a3   : > { %v3197_v30 = vpop.f32.mrf.mxu2  ;;  %v2658_v41 = vsel %vm669_vm0, %v2655_v16, %v2657_v11  ;;  %v3478_v25 = vsel %vm3407_vm5, %v3475_v61, %v3477_v63  ;;  %v4014_v8 = vsel %vm3943_vm6, %v4011_v32, %v4013_v44  ;;  %v4015_v61 = vrot.slane %v5546_v27, 6 }
 0x3a4   : > { %v3733_v35 = vpop.f32.mrf.mxu3  ;;  %v4560_v40 = vadd.f32 %v7103_v29, %v4492_v23  ;;  %v3357_v31 = vadd.f32 %v3197_v30, %v3069_v33  ;;  %v2912_v46 = vpop.f32.mrf.mxu1  ;;  %v3480_v32 = vsel %vm3407_vm5, %v3477_v63, %v3479_v9 }
 0x3a5   : > { %v3070_v18 = vadd.f32 %v2912_v46, %v6594_v15 }
 0x3a6   : > { %4624 = vst [vmem:[%s7113_s6 + $0x78] sm:$0xff] %v4560_v40  ;;  %v3893_v48 = vadd.f32 %v3733_v35, %v3357_v31  ;;  %v4016_v31 = vsel %vm3943_vm6, %v4013_v44, %v4015_v61 }
 0x3a7   : > { %5177 = vmatmul.msk.f32.gmra.mxu1 %vm540_vm2, %v2652_v3  ;;  %v4272_v24 = vpop.f32.mrf.mxu0 }
 0x3a8   : > { %v4429_v43 = vadd.f32 %v4269_v5, %v3893_v48  ;;  %5243 = vmatmul.msk.f32.gmra.mxu2 %vm540_vm2, %v2656_v20  ;;  %v2659_v5 = vrot.slane %v5546_v27, 4 }
 0x3a9   : > { %5309 = vmatmul.msk.f32.gmra.mxu3 %vm540_vm2, %v3476_v28  ;;  %v5547_v28 = vld [vmem:[%s5768_s26 + $0x148] sm:$0xff] }
 0x3aa   : > { %v4493_v4 = vmul.f32 0.16666667, %v4429_v43  ;;  %5375 = vmatmul.msk.f32.gmra.mxu0 %vm540_vm2, %v4012_v55  ;;  %v2660_v35 = vsel %vm669_vm0, %v2657_v11, %v2659_v5  ;;  %v2661_v48 = vrot.slane %v5547_v28, 4  ;;  %v4017_v11 = vrot.slane %v5547_v28, 6 }
 0x3ab   : > { %v3200_v50 = vpop.f32.mrf.mxu2 }
 0x3ac   : > { %v3736_v3 = vpop.f32.mrf.mxu3  ;;  %v4561_v14 = vadd.f32 %v7103_v29, %v4493_v4  ;;  %v3358_v58 = vadd.f32 %v3200_v50, %v3070_v18  ;;  %v2915_v49 = vpop.f32.mrf.mxu1  ;;  %v2662_v50 = vsel %vm669_vm0, %v2659_v5, %v2661_v48 }
 0x3ad   : > { %v3071_v17 = vadd.f32 %v2915_v49, %v6604_v45  ;;  %v5548_v49 = vld [vmem:[%s5768_s26 + $0x150] sm:$0xff] }
 0x3ae   : > { %4625 = vst [vmem:[%s7113_s6 + $0x80] sm:$0xff] %v4561_v14  ;;  %v3894_v21 = vadd.f32 %v3736_v3, %v3358_v58  ;;  %v4018_v14 = vsel %vm3943_vm6, %v4015_v61, %v4017_v11  ;;  %v4019_v27 = vrot.slane %v5548_v49, 6 }
 0x3af   : > { %5178 = vmatmul.msk.f32.gmra.mxu1 %vm540_vm2, %v2654_v6  ;;  %v4275_v15 = vpop.f32.mrf.mxu0 }
 0x3b0   : > { %v4430_v36 = vadd.f32 %v4272_v24, %v3894_v21  ;;  %5244 = vmatmul.msk.f32.gmra.mxu2 %vm540_vm2, %v2658_v41  ;;  %v3481_v24 = vrot.slane %v5547_v28, 5  ;;  %v3483_v21 = vrot.slane %v5548_v49, 5  ;;  %v4020_v61 = vsel %vm3943_vm6, %v4017_v11, %v4019_v27 }
 0x3b1   : > { %5310 = vmatmul.msk.f32.gmra.mxu3 %vm540_vm2, %v3478_v25  ;;  %v2663_v25 = vrot.slane %v5548_v49, 4 }
 0x3b2   : > { %v4494_v7 = vmul.f32 0.16666667, %v4430_v36  ;;  %5376 = vmatmul.msk.f32.gmra.mxu0 %vm540_vm2, %v4014_v8  ;;  %v3482_v3 = vsel %vm3407_vm5, %v3479_v9, %v3481_v24 }
 0x3b3   : > { %v3203_v16 = vpop.f32.mrf.mxu2 }
 0x3b4   : > { %v3739_v6 = vpop.f32.mrf.mxu3  ;;  %v4562_v33 = vadd.f32 %v7103_v29, %v4494_v7  ;;  %v3359_v23 = vadd.f32 %v3203_v16, %v3071_v17  ;;  %v2918_v30 = vpop.f32.mrf.mxu1  ;;  %v2664_v7 = vsel %vm669_vm0, %v2661_v48, %v2663_v25  ;;  %v3484_v16 = vsel %vm3407_vm5, %v3481_v24, %v3483_v21 }
 0x3b5   : > { %v3072_v55 = vadd.f32 %v2918_v30, %v6614_v59 }
 0x3b6   : > { %4626 = vst [vmem:[%s7113_s6 + $0x88] sm:$0xff] %v4562_v33  ;;  %v3895_v40 = vadd.f32 %v3739_v6, %v3359_v23  ;;  %v5549_v23 = vld [vmem:[%s5768_s26 + $0x158] sm:$0xff] }
 0x3b7   : > { %5179 = vmatmul.msk.f32.gmra.mxu1 %vm540_vm2, %v2656_v20  ;;  %v4278_v45 = vpop.f32.mrf.mxu0  ;;  %v2665_v30 = vrot.slane %v5549_v23, 4 }
 0x3b8   : > { %v4431_v46 = vadd.f32 %v4275_v15, %v3895_v40  ;;  %5245 = vmatmul.msk.f32.gmra.mxu2 %vm540_vm2, %v2660_v35 }
 0x3b9   : > { %5311 = vmatmul.msk.f32.gmra.mxu3 %vm540_vm2, %v3480_v32  ;;  %v3485_v32 = vrot.slane %v5549_v23, 5 }
 0x3ba   : > { %v4495_v43 = vmul.f32 0.16666667, %v4431_v46  ;;  %5377 = vmatmul.msk.f32.gmra.mxu0 %vm540_vm2, %v4016_v31  ;;  %v4021_v46 = vrot.slane %v5549_v23, 6 }
 0x3bb   : > { %v3206_v52 = vpop.f32.mrf.mxu2 }
 0x3bc   : > { %v3742_v20 = vpop.f32.mrf.mxu3  ;;  %v4563_v63 = vadd.f32 %v7103_v29, %v4495_v43  ;;  %v3360_v18 = vadd.f32 %v3206_v52, %v3072_v55  ;;  %v2921_v4 = vpop.f32.mrf.mxu1  ;;  %v2666_v55 = vsel %vm669_vm0, %v2663_v25, %v2665_v30  ;;  %v3486_v43 = vsel %vm3407_vm5, %v3483_v21, %v3485_v32 }
 0x3bd   : > { %v3073_v15 = vadd.f32 %v2921_v4, %v6624_v19 }
 0x3be   : > { %4627 = vst [vmem:[%s7113_s6 + $0x90] sm:$0xff] %v4563_v63  ;;  %v3896_v44 = vadd.f32 %v3742_v20, %v3360_v18  ;;  %v4022_v20 = vsel %vm3943_vm6, %v4019_v27, %v4021_v46  ;;  %v5550_v63 = vld [vmem:[%s5768_s26 + $0x160] sm:$0xff]  ;;  %v5551_v27 = vld [vmem:[%s5768_s26 + $0x168] sm:$0xff] }
 0x3bf   : > { %5180 = vmatmul.msk.f32.gmra.mxu1 %vm540_vm2, %v2658_v41  ;;  %v4281_v59 = vpop.f32.mrf.mxu0  ;;  %v2667_v18 = vrot.slane %v5550_v63, 4  ;;  %v3487_v4 = vrot.slane %v5550_v63, 5 }
 0x3c0   : > { %v4432_v58 = vadd.f32 %v4278_v45, %v3896_v44  ;;  %5246 = vmatmul.msk.f32.gmra.mxu2 %vm540_vm2, %v2662_v50 }
 0x3c1   : > { %5312 = vmatmul.msk.f32.gmra.mxu3 %vm540_vm2, %v3482_v3  ;;  %v2668_v21 = vsel %vm669_vm0, %v2665_v30, %v2667_v18 }
 0x3c2   : > { %v4496_v8 = vmul.f32 0.16666667, %v4432_v58  ;;  %5378 = vmatmul.msk.f32.gmra.mxu0 %vm540_vm2, %v4018_v14  ;;  %v4023_v14 = vrot.slane %v5550_v63, 6 }
 0x3c3   : > { %v3209_v36 = vpop.f32.mrf.mxu2 }
 0x3c4   : > { %v3745_v41 = vpop.f32.mrf.mxu3  ;;  %v4564_v5 = vadd.f32 %v7103_v29, %v4496_v8  ;;  %v3361_v9 = vadd.f32 %v3209_v36, %v3073_v15  ;;  %v2924_v17 = vpop.f32.mrf.mxu1  ;;  %v3488_v15 = vsel %vm3407_vm5, %v3485_v32, %v3487_v4  ;;  %v4024_v36 = vsel %vm3943_vm6, %v4021_v46, %v4023_v14 }
 0x3c5   : > { %v3074_v40 = vadd.f32 %v2924_v17, %v6634_v56 }
 0x3c6   : > { %4628 = vst [vmem:[%s7113_s6 + $0x98] sm:$0xff] %v4564_v5  ;;  %v3897_v6 = vadd.f32 %v3745_v41, %v3361_v9  ;;  %v2669_v5 = vrot.slane %v5551_v27, 4  ;;  %v3489_v9 = vrot.slane %v5551_v27, 5 }
 0x3c7   : > { %5181 = vmatmul.msk.f32.gmra.mxu1 %vm540_vm2, %v2660_v35  ;;  %v4284_v19 = vpop.f32.mrf.mxu0 }
 0x3c8   : > { %v4433_v33 = vadd.f32 %v4281_v59, %v3897_v6  ;;  %5247 = vmatmul.msk.f32.gmra.mxu2 %vm540_vm2, %v2664_v7  ;;  %v2670_v30 = vsel %vm669_vm0, %v2667_v18, %v2669_v5  ;;  %v3490_v32 = vsel %vm3407_vm5, %v3487_v4, %v3489_v9 }
 0x3c9   : > { %5313 = vmatmul.msk.f32.gmra.mxu3 %vm540_vm2, %v3484_v16 }
 0x3ca   : > { %v4497_v45 = vmul.f32 0.16666667, %v4433_v33  ;;  %5379 = vmatmul.msk.f32.gmra.mxu0 %vm540_vm2, %v4020_v61 }
 0x3cb   : > { %v3212_v31 = vpop.f32.mrf.mxu2 }
 0x3cc   : > { %v3748_v35 = vpop.f32.mrf.mxu3  ;;  %v4565_v28 = vadd.f32 %v7103_v29, %v4497_v45  ;;  %v3362_v48 = vadd.f32 %v3212_v31, %v3074_v40  ;;  %v2927_v24 = vpop.f32.mrf.mxu1 }
 0x3cd   : > { %v3075_v3 = vadd.f32 %v2927_v24, %v6644_v54 }
 0x3ce   : > { %4629 = vst [vmem:[%s7113_s6 + $0xa0] sm:$0xff] %v4565_v28  ;;  %v3898_v52 = vadd.f32 %v3748_v35, %v3362_v48  ;;  %v5552_v35 = vld [vmem:[%s5768_s26 + $0x170] sm:$0xff] }
 0x3cf   : > { %5182 = vmatmul.msk.f32.gmra.mxu1 %vm540_vm2, %v2662_v50  ;;  %v4287_v56 = vpop.f32.mrf.mxu0  ;;  %v2671_v46 = vrot.slane %v5552_v35, 4  ;;  %v3491_v28 = vrot.slane %v5552_v35, 5 }
 0x3d0   : > { %v4434_v11 = vadd.f32 %v4284_v19, %v3898_v52  ;;  %5248 = vmatmul.msk.f32.gmra.mxu2 %vm540_vm2, %v2666_v55  ;;  %v4025_v19 = vrot.slane %v5551_v27, 6  ;;  %v4027_v52 = vrot.slane %v5552_v35, 6 }
 0x3d1   : > { %5314 = vmatmul.msk.f32.gmra.mxu3 %vm540_vm2, %v3486_v43  ;;  %v2672_v63 = vsel %vm669_vm0, %v2669_v5, %v2671_v46  ;;  %v3492_v18 = vsel %vm3407_vm5, %v3489_v9, %v3491_v28 }
 0x3d2   : > { %v4498_v44 = vmul.f32 0.16666667, %v4434_v11  ;;  %5380 = vmatmul.msk.f32.gmra.mxu0 %vm540_vm2, %v4022_v20  ;;  %v4026_v45 = vsel %vm3943_vm6, %v4023_v14, %v4025_v19 }
 0x3d3   : > { %v3215_v59 = vpop.f32.mrf.mxu2 }
 0x3d4   : > { %v3751_v50 = vpop.f32.mrf.mxu3  ;;  %v4566_v58 = vadd.f32 %v7103_v29, %v4498_v44  ;;  %v3363_v49 = vadd.f32 %v3215_v59, %v3075_v3  ;;  %v2930_v25 = vpop.f32.mrf.mxu1  ;;  %v4028_v3 = vsel %vm3943_vm6, %v4025_v19, %v4027_v52 }
 0x3d5   : > { %v3076_v17 = vadd.f32 %v2930_v25, %v6654_v10 }
 0x3d6   : > { %4630 = vst [vmem:[%s7113_s6 + $0xa8] sm:$0xff] %v4566_v58  ;;  %v3899_v8 = vadd.f32 %v3751_v50, %v3363_v49 }
 0x3d7   : > { %5183 = vmatmul.msk.f32.gmra.mxu1 %vm540_vm2, %v2664_v7  ;;  %v4290_v54 = vpop.f32.mrf.mxu0 }
 0x3d8   : > { %v4435_v41 = vadd.f32 %v4287_v56, %v3899_v8  ;;  %5249 = vmatmul.msk.f32.gmra.mxu2 %vm540_vm2, %v2668_v21 }
 0x3d9   : > { %5315 = vmatmul.msk.f32.gmra.mxu3 %vm540_vm2, %v3488_v15  ;;  %v7379_v15 = vld [vmem:[%s7721_s3] ss:$0 sm:$0xff] }
 0x3da   : > { %v4499_v16 = vmul.f32 0.16666667, %v4435_v41  ;;  %5381 = vmatmul.msk.f32.gmra.mxu0 %vm540_vm2, %v4024_v36 }
 0x3db   : > { %v3218_v6 = vpop.f32.mrf.mxu2 }
 0x3dc   : > { %v3754_v7 = vpop.f32.mrf.mxu3  ;;  %v4567_v61 = vadd.f32 %v7103_v29, %v4499_v16  ;;  %v3364_v33 = vadd.f32 %v3218_v6, %v3076_v17  ;;  %v2933_v23 = vpop.f32.mrf.mxu1  ;;  %v5555_v16 = vld [vmem:[%s5768_s26 + $0x180] sm:$0xff] }
 0x3dd   : > { %v3077_v48 = vadd.f32 %v2933_v23, %v6664_v34  ;;  %v2675_v6 = vrot.slane %v5555_v16, 4 }
 0x3de   : > { %4631 = vst [vmem:[%s7113_s6 + $0xb0] sm:$0xff] %v4567_v61  ;;  %v3900_v40 = vadd.f32 %v3754_v7, %v3364_v33  ;;  %v3495_v7 = vrot.slane %v5555_v16, 5 }
 0x3df   : > { %5184 = vmatmul.msk.f32.gmra.mxu1 %vm540_vm2, %v2666_v55  ;;  %v4293_v10 = vpop.f32.mrf.mxu0 }
 0x3e0   : > { %v4436_v31 = vadd.f32 %v4290_v54, %v3900_v40  ;;  %5250 = vmatmul.msk.f32.gmra.mxu2 %vm540_vm2, %v2670_v30 }
 0x3e1   : > { %5316 = vmatmul.msk.f32.gmra.mxu3 %vm540_vm2, %v3490_v32 }
 0x3e2   : > { %v4500_v24 = vmul.f32 0.16666667, %v4436_v31  ;;  %5382 = vmatmul.msk.f32.gmra.mxu0 %vm540_vm2, %v4026_v45 }
 0x3e3   : > { %v3221_v43 = vpop.f32.mrf.mxu2 }
 0x3e4   : > { %v3757_v55 = vpop.f32.mrf.mxu3  ;;  %v4568_v56 = vadd.f32 %v7103_v29, %v4500_v24  ;;  %v3365_v20 = vadd.f32 %v3221_v43, %v3077_v48  ;;  %v2936_v11 = vpop.f32.mrf.mxu1  ;;  %v5553_v29 = vld [vmem:[%s5768_s26 + $0x178] sm:$0xff]  ;;  %v5556_v48 = vld [vmem:[%s5768_s26 + $0x188] sm:$0xff] }
 0x3e5   : > { %v2673_v59 = vrot.slane %v5553_v29, 4  ;;  %v3493_v50 = vrot.slane %v5553_v29, 5  ;;  %v3078_v14 = vadd.f32 %v2936_v11, %v6674_v62  ;;  %v2677_v24 = vrot.slane %v5556_v48, 4 }
 0x3e6   : > { %4632 = vst [vmem:[%s7113_s6 + $0xb8] sm:$0xff] %v4568_v56  ;;  %v3901_v4 = vadd.f32 %v3757_v55, %v3365_v20  ;;  %v3497_v43 = vrot.slane %v5556_v48, 5  ;;  %v4033_v11 = vrot.slane %v5556_v48, 6  ;;  %v5559_v48 = vld [vmem:[%s5768_s26 + $0x1a0] sm:$0xff] }
 0x3e7   : > { %5185 = vmatmul.msk.f32.gmra.mxu1 %vm540_vm2, %v2668_v21  ;;  %v4296_v34 = vpop.f32.mrf.mxu0  ;;  %v4029_v21 = vrot.slane %v5553_v29, 6  ;;  %v2674_v41 = vsel %vm669_vm0, %v2671_v46, %v2673_v59  ;;  %v3494_v62 = vsel %vm3407_vm5, %v3491_v28, %v3493_v50  ;;  %v2676_v45 = vsel %vm669_vm0, %v2673_v59, %v2675_v6 }
 0x3e8   : > { %v4437_v44 = vadd.f32 %v4293_v10, %v3901_v4  ;;  %5251 = vmatmul.msk.f32.gmra.mxu2 %vm540_vm2, %v2672_v63  ;;  %v3496_v31 = vsel %vm3407_vm5, %v3493_v50, %v3495_v7  ;;  %v5557_v50 = vld [vmem:[%s5768_s26 + $0x190] sm:$0xff] }
 0x3e9   : > { %5317 = vmatmul.msk.f32.gmra.mxu3 %vm540_vm2, %v3492_v18  ;;  %v4030_v9 = vsel %vm3943_vm6, %v4027_v52, %v4029_v21 }
 0x3ea   : > { %v4501_v58 = vmul.f32 0.16666667, %v4437_v44  ;;  %5383 = vmatmul.msk.f32.gmra.mxu0 %vm540_vm2, %v4028_v3  ;;  %v3498_v3 = vsel %vm3407_vm5, %v3495_v7, %v3497_v43 }
 0x3eb   : > { %v3224_v49 = vpop.f32.mrf.mxu2 }
 0x3ec   : > { %v3760_v25 = vpop.f32.mrf.mxu3  ;;  %v4569_v8 = vadd.f32 %v7379_v15, %v4501_v58  ;;  %v3366_v54 = vadd.f32 %v3224_v49, %v3078_v14  ;;  %v2939_v36 = vpop.f32.mrf.mxu1  ;;  %v2679_v14 = vrot.slane %v5557_v50, 4  ;;  %v3499_v58 = vrot.slane %v5557_v50, 5 }
 0x3ed   : > { %v3079_v19 = vadd.f32 %v2939_v36, %v6684_v37 }
 0x3ee   : > { %4633 = vst [vmem:[%s7113_s6 + $0xc0] sm:$0xff] %v4569_v8  ;;  %v3902_v27 = vadd.f32 %v3760_v25, %v3366_v54  ;;  %v4035_v54 = vrot.slane %v5557_v50, 6 }
 0x3ef   : > { %5186 = vmatmul.msk.f32.gmra.mxu1 %vm540_vm2, %v2670_v30  ;;  %v4299_v5 = vpop.f32.mrf.mxu0  ;;  %v4031_v30 = vrot.slane %v5555_v16, 6 }
 0x3f0   : > { %v4438_v17 = vadd.f32 %v4296_v34, %v3902_v27  ;;  %5252 = vmatmul.msk.f32.gmra.mxu2 %vm540_vm2, %v2674_v41  ;;  %v2678_v34 = vsel %vm669_vm0, %v2675_v6, %v2677_v24  ;;  %v2680_v27 = vsel %vm669_vm0, %v2677_v24, %v2679_v14  ;;  %v5558_v6 = vld [vmem:[%s5768_s26 + $0x198] sm:$0xff]  ;;  %v2683_v24 = vrot.slane %v5559_v48, 4 }
 0x3f1   : > { %5318 = vmatmul.msk.f32.gmra.mxu3 %vm540_vm2, %v3494_v62  ;;  %v4032_v46 = vsel %vm3943_vm6, %v4029_v21, %v4031_v30  ;;  %v4034_v29 = vsel %vm3943_vm6, %v4031_v30, %v4033_v11  ;;  %v2681_v7 = vrot.slane %v5558_v6, 4 }
 0x3f2   : > { %v4502_v61 = vmul.f32 0.16666667, %v4438_v17  ;;  %5384 = vmatmul.msk.f32.gmra.mxu0 %vm540_vm2, %v4030_v9  ;;  %v4036_v17 = vsel %vm3943_vm6, %v4033_v11, %v4035_v54  ;;  %v4039_v11 = vrot.slane %v5559_v48, 6 }
 0x3f3   : > { %v3227_v33 = vpop.f32.mrf.mxu2 }
 0x3f4   : > { %v3763_v23 = vpop.f32.mrf.mxu3  ;;  %v4570_v32 = vadd.f32 %v7379_v15, %v4502_v61  ;;  %v3367_v40 = vadd.f32 %v3227_v33, %v3079_v19  ;;  %v2942_v10 = vpop.f32.mrf.mxu1  ;;  %v3501_v19 = vrot.slane %v5558_v6, 5 }
 0x3f5   : > { %v3080_v55 = vadd.f32 %v2942_v10, %v6694_v51 }
 0x3f6   : > { %4634 = vst [vmem:[%s7113_s6 + $0xc8] sm:$0xff] %v4570_v32  ;;  %v3903_v35 = vadd.f32 %v3763_v23, %v3367_v40  ;;  %v4037_v32 = vrot.slane %v5558_v6, 6 }
 0x3f7   : > { %5187 = vmatmul.msk.f32.gmra.mxu1 %vm540_vm2, %v2672_v63  ;;  %v4302_v37 = vpop.f32.mrf.mxu0 }
 0x3f8   : > { %v4439_v28 = vadd.f32 %v4299_v5, %v3903_v35  ;;  %5253 = vmatmul.msk.f32.gmra.mxu2 %vm540_vm2, %v2676_v45  ;;  %v3500_v5 = vsel %vm3407_vm5, %v3497_v43, %v3499_v58  ;;  %v3502_v35 = vsel %vm3407_vm5, %v3499_v58, %v3501_v19  ;;  %v3503_v43 = vrot.slane %v5559_v48, 5 }
 0x3f9   : > { %5319 = vmatmul.msk.f32.gmra.mxu3 %vm540_vm2, %v3496_v31  ;;  %v2682_v31 = vsel %vm669_vm0, %v2679_v14, %v2681_v7 }
 0x3fa   : > { %v4503_v52 = vmul.f32 0.16666667, %v4439_v28  ;;  %5385 = vmatmul.msk.f32.gmra.mxu0 %vm540_vm2, %v4032_v46  ;;  %v4038_v46 = vsel %vm3943_vm6, %v4035_v54, %v4037_v32 }
 0x3fb   : > { %v3230_v56 = vpop.f32.mrf.mxu2 }
 0x3fc   : > { %v3766_v20 = vpop.f32.mrf.mxu3  ;;  %v4571_v63 = vadd.f32 %v7379_v15, %v4503_v52  ;;  %v3368_v18 = vadd.f32 %v3230_v56, %v3080_v55  ;;  %v2945_v4 = vpop.f32.mrf.mxu1 }
 0x3fd   : > { %v3081_v49 = vadd.f32 %v2945_v4, %v6704_v2 }
 0x3fe   : > { %4635 = vst [vmem:[%s7113_s6 + $0xd0] sm:$0xff] %v4571_v63  ;;  %v3904_v44 = vadd.f32 %v3766_v20, %v3368_v18 }
 0x3ff   : > { %5188 = vmatmul.msk.f32.gmra.mxu1 %vm540_vm2, %v2674_v41  ;;  %v4305_v51 = vpop.f32.mrf.mxu0 }
 0x400   : > { %v4440_v59 = vadd.f32 %v4302_v37, %v3904_v44  ;;  %5254 = vmatmul.msk.f32.gmra.mxu2 %vm540_vm2, %v2678_v34 }
 0x401   : > { %5320 = vmatmul.msk.f32.gmra.mxu3 %vm540_vm2, %v3498_v3  ;;  %v3504_v3 = vsel %vm3407_vm5, %v3501_v19, %v3503_v43 }
 0x402   : > { %v4504_v25 = vmul.f32 0.16666667, %v4440_v59  ;;  %5386 = vmatmul.msk.f32.gmra.mxu0 %vm540_vm2, %v4034_v29  ;;  %v5560_v59 = vld [vmem:[%s5768_s26 + $0x1a8] sm:$0xff] }
 0x403   : > { %v3233_v21 = vpop.f32.mrf.mxu2  ;;  %v2685_v50 = vrot.slane %v5560_v59, 4  ;;  %v3505_v14 = vrot.slane %v5560_v59, 5 }
 0x404   : > { %v3769_v8 = vpop.f32.mrf.mxu3  ;;  %v4572_v36 = vadd.f32 %v7379_v15, %v4504_v25  ;;  %v3369_v41 = vadd.f32 %v3233_v21, %v3081_v49  ;;  %v2948_v62 = vpop.f32.mrf.mxu1 }
 0x405   : > { %v3082_v61 = vadd.f32 %v2948_v62, %v6714_v26  ;;  %v2686_v62 = vsel %vm669_vm0, %v2683_v24, %v2685_v50 }
 0x406   : > { %4636 = vst [vmem:[%s7113_s6 + $0xd8] sm:$0xff] %v4572_v36  ;;  %v3905_v9 = vadd.f32 %v3769_v8, %v3369_v41  ;;  %v4041_v8 = vrot.slane %v5560_v59, 6 }
 0x407   : > { %5189 = vmatmul.msk.f32.gmra.mxu1 %vm540_vm2, %v2676_v45  ;;  %v4308_v2 = vpop.f32.mrf.mxu0 }
 0x408   : > { %v4441_v16 = vadd.f32 %v4305_v51, %v3905_v9  ;;  %5255 = vmatmul.msk.f32.gmra.mxu2 %vm540_vm2, %v2680_v27  ;;  %v4040_v51 = vsel %vm3943_vm6, %v4037_v32, %v4039_v11  ;;  %v4042_v9 = vsel %vm3943_vm6, %v4039_v11, %v4041_v8 }
 0x409   : > { %5321 = vmatmul.msk.f32.gmra.mxu3 %vm540_vm2, %v3500_v5 }
 0x40a   : > { %v4505_v33 = vmul.f32 0.16666667, %v4441_v16  ;;  %5387 = vmatmul.msk.f32.gmra.mxu0 %vm540_vm2, %v4036_v17  ;;  %v5561_v17 = vld [vmem:[%s5768_s26 + $0x1b0] sm:$0xff] }
 0x40b   : > { %v3236_v23 = vpop.f32.mrf.mxu2  ;;  %v2687_v16 = vrot.slane %v5561_v17, 4  ;;  %v3507_v6 = vrot.slane %v5561_v17, 5 }
 0x40c   : > { %v3772_v30 = vpop.f32.mrf.mxu3  ;;  %v4573_v40 = vadd.f32 %v7379_v15, %v4505_v33  ;;  %v3370_v10 = vadd.f32 %v3236_v23, %v3082_v61  ;;  %v2951_v45 = vpop.f32.mrf.mxu1  ;;  %v4043_v23 = vrot.slane %v5561_v17, 6 }
 0x40d   : > { %v3083_v55 = vadd.f32 %v2951_v45, %v6724_v53  ;;  %v3508_v45 = vsel %vm3407_vm5, %v3505_v14, %v3507_v6 }
 0x40e   : > { %4637 = vst [vmem:[%s7113_s6 + $0xe0] sm:$0xff] %v4573_v40  ;;  %v3906_v37 = vadd.f32 %v3772_v30, %v3370_v10  ;;  %v2688_v10 = vsel %vm669_vm0, %v2685_v50, %v2687_v16 }
 0x40f   : > { %5190 = vmatmul.msk.f32.gmra.mxu1 %vm540_vm2, %v2678_v34  ;;  %v4311_v26 = vpop.f32.mrf.mxu0  ;;  %v2684_v34 = vsel %vm669_vm0, %v2681_v7, %v2683_v24 }
 0x410   : > { %v4442_v28 = vadd.f32 %v4308_v2, %v3906_v37  ;;  %5256 = vmatmul.msk.f32.gmra.mxu2 %vm540_vm2, %v2682_v31 }
 0x411   : > { %5322 = vmatmul.msk.f32.gmra.mxu3 %vm540_vm2, %v3502_v35  ;;  %v4044_v35 = vsel %vm3943_vm6, %v4041_v8, %v4043_v23 }
 0x412   : > { %v4506_v52 = vmul.f32 0.16666667, %v4442_v28  ;;  %5388 = vmatmul.msk.f32.gmra.mxu0 %vm540_vm2, %v4038_v46 }
 0x413   : > { %v3239_v56 = vpop.f32.mrf.mxu2 }
 0x414   : > { %v3775_v20 = vpop.f32.mrf.mxu3  ;;  %v4574_v63 = vadd.f32 %v7379_v15, %v4506_v52  ;;  %v3371_v18 = vadd.f32 %v3239_v56, %v3083_v55  ;;  %v2954_v4 = vpop.f32.mrf.mxu1 }
 0x415   : > { %v3084_v58 = vadd.f32 %v2954_v4, %v6734_v13 }
 0x416   : > { %4638 = vst [vmem:[%s7113_s6 + $0xe8] sm:$0xff] %v4574_v63  ;;  %v3907_v44 = vadd.f32 %v3775_v20, %v3371_v18 }
 0x417   : > { %5191 = vmatmul.msk.f32.gmra.mxu1 %vm540_vm2, %v2680_v27  ;;  %v4314_v53 = vpop.f32.mrf.mxu0  ;;  %v3506_v27 = vsel %vm3407_vm5, %v3503_v43, %v3505_v14 }
 0x418   : > { %v4443_v29 = vadd.f32 %v4311_v26, %v3907_v44  ;;  %5257 = vmatmul.msk.f32.gmra.mxu2 %vm540_vm2, %v2684_v34  ;;  %v5562_v26 = vld [vmem:[%s5768_s26 + $0x1b8] sm:$0xff]  ;;  %v5563_v44 = vld [vmem:[%s5768_s26 + $0x1c0] sm:$0xff] }
 0x419   : > { %5323 = vmatmul.msk.f32.gmra.mxu3 %vm540_vm2, %v3504_v3  ;;  %v2689_v46 = vrot.slane %v5562_v26, 4  ;;  %v3509_v28 = vrot.slane %v5562_v26, 5  ;;  %v4045_v52 = vrot.slane %v5562_v26, 6 }
 0x41a   : > { %v4507_v49 = vmul.f32 0.16666667, %v4443_v29  ;;  %5389 = vmatmul.msk.f32.gmra.mxu0 %vm540_vm2, %v4040_v51  ;;  %v3511_v51 = vrot.slane %v5563_v44, 5 }
 0x41b   : > { %v3242_v25 = vpop.f32.mrf.mxu2  ;;  %v2690_v63 = vsel %vm669_vm0, %v2687_v16, %v2689_v46  ;;  %v3510_v18 = vsel %vm3407_vm5, %v3507_v6, %v3509_v28 }
 0x41c   : > { %v3778_v21 = vpop.f32.mrf.mxu3  ;;  %v4575_v54 = vadd.f32 %v7379_v15, %v4507_v49  ;;  %v3372_v36 = vadd.f32 %v3242_v25, %v3084_v58  ;;  %v2957_v41 = vpop.f32.mrf.mxu1  ;;  %v4047_v58 = vrot.slane %v5563_v44, 6 }
 0x41d   : > { %v3085_v7 = vadd.f32 %v2957_v41, %v6744_v12 }
 0x41e   : > { %4639 = vst [vmem:[%s7113_s6 + $0xf0] sm:$0xff] %v4575_v54  ;;  %v3908_v5 = vadd.f32 %v3778_v21, %v3372_v36  ;;  %v3512_v54 = vsel %vm3407_vm5, %v3509_v28, %v3511_v51  ;;  %v4048_v41 = vsel %vm3943_vm6, %v4045_v52, %v4047_v58 }
 0x41f   : > { %5192 = vmatmul.msk.f32.gmra.mxu1 %vm540_vm2, %v2682_v31  ;;  %v4317_v13 = vpop.f32.mrf.mxu0 }
 0x420   : > { %v4444_v2 = vadd.f32 %v4314_v53, %v3908_v5  ;;  %5258 = vmatmul.msk.f32.gmra.mxu2 %vm540_vm2, %v2686_v62  ;;  %v2691_v53 = vrot.slane %v5563_v44, 4 }
 0x421   : > { %5324 = vmatmul.msk.f32.gmra.mxu3 %vm540_vm2, %v3506_v27  ;;  %v5564_v27 = vld [vmem:[%s5768_s26 + $0x1c8] sm:$0xff] }
 0x422   : > { %v4508_v19 = vmul.f32 0.16666667, %v4444_v2  ;;  %5390 = vmatmul.msk.f32.gmra.mxu0 %vm540_vm2, %v4042_v9  ;;  %v2692_v8 = vsel %vm669_vm0, %v2689_v46, %v2691_v53  ;;  %v2693_v5 = vrot.slane %v5564_v27, 4  ;;  %v4049_v6 = vrot.slane %v5564_v27, 6 }
 0x423   : > { %v3245_v61 = vpop.f32.mrf.mxu2 }
 0x424   : > { %v3781_v33 = vpop.f32.mrf.mxu3  ;;  %v4576_v30 = vadd.f32 %v7379_v15, %v4508_v19  ;;  %v3373_v32 = vadd.f32 %v3245_v61, %v3085_v7  ;;  %v2960_v40 = vpop.f32.mrf.mxu1 }
 0x425   : > { %v3086_v48 = vadd.f32 %v2960_v40, %v6754_v22 }
 0x426   : > { %4640 = vst [vmem:[%s7113_s6 + $0xf8] sm:$0xff] %v4576_v30  ;;  %v3909_v31 = vadd.f32 %v3781_v33, %v3373_v32  ;;  %v2694_v33 = vsel %vm669_vm0, %v2691_v53, %v2693_v5  ;;  %v4050_v32 = vsel %vm3943_vm6, %v4047_v58, %v4049_v6 }
 0x427   : > { %5193 = vmatmul.msk.f32.gmra.mxu1 %vm540_vm2, %v2684_v34  ;;  %v4320_v12 = vpop.f32.mrf.mxu0  ;;  %v4046_v34 = vsel %vm3943_vm6, %v4043_v23, %v4045_v52 }
 0x428   : > { %v4445_v37 = vadd.f32 %v4317_v13, %v3909_v31  ;;  %5259 = vmatmul.msk.f32.gmra.mxu2 %vm540_vm2, %v2688_v10  ;;  %v3513_v13 = vrot.slane %v5564_v27, 5 }
 0x429   : > { %5325 = vmatmul.msk.f32.gmra.mxu3 %vm540_vm2, %v3508_v45 }
 0x42a   : > { %v4509_v24 = vmul.f32 0.16666667, %v4445_v37  ;;  %5391 = vmatmul.msk.f32.gmra.mxu0 %vm540_vm2, %v4044_v35  ;;  %v3514_v23 = vsel %vm3407_vm5, %v3511_v51, %v3513_v13 }
 0x42b   : > { %v3248_v43 = vpop.f32.mrf.mxu2 }
 0x42c   : > { %v3784_v55 = vpop.f32.mrf.mxu3  ;;  %v4577_v56 = vadd.f32 %v7379_v15, %v4509_v24  ;;  %v3374_v20 = vadd.f32 %v3248_v43, %v3086_v48  ;;  %v2963_v11 = vpop.f32.mrf.mxu1 }
 0x42d   : > { %v3087_v29 = vadd.f32 %v2963_v11, %v6764_v57  ;;  %v5566_v11 = vld [vmem:[%s5768_s26 + $0x1d8] sm:$0xff] }
 0x42e   : > { %4641 = vst [vmem:[%s7113_s6 + $0x100] sm:$0xff] %v4577_v56  ;;  %v3910_v4 = vadd.f32 %v3784_v55, %v3374_v20  ;;  %v4053_v44 = vrot.slane %v5566_v11, 6 }
 0x42f   : > { %5194 = vmatmul.msk.f32.gmra.mxu1 %vm540_vm2, %v2686_v62  ;;  %v4323_v22 = vpop.f32.mrf.mxu0 }
 0x430   : > { %v4446_v3 = vadd.f32 %v4320_v12, %v3910_v4  ;;  %5260 = vmatmul.msk.f32.gmra.mxu2 %vm540_vm2, %v2690_v63 }
 0x431   : > { %5326 = vmatmul.msk.f32.gmra.mxu3 %vm540_vm2, %v3510_v18  ;;  %v3517_v18 = vrot.slane %v5566_v11, 5 }
 0x432   : > { %v4510_v59 = vmul.f32 0.16666667, %v4446_v3  ;;  %5392 = vmatmul.msk.f32.gmra.mxu0 %vm540_vm2, %v4046_v34 }
 0x433   : > { %v3251_v50 = vpop.f32.mrf.mxu2 }
 0x434   : > { %v3787_v14 = vpop.f32.mrf.mxu3  ;;  %v4578_v49 = vadd.f32 %v7379_v15, %v4510_v59  ;;  %v3375_v25 = vadd.f32 %v3251_v50, %v3087_v29  ;;  %v2966_v21 = vpop.f32.mrf.mxu1 }
 0x435   : > { %v3088_v9 = vadd.f32 %v2966_v21, %v6774_v39 }
 0x436   : > { %4642 = vst [vmem:[%s7113_s6 + $0x108] sm:$0xff] %v4578_v49  ;;  %v3911_v36 = vadd.f32 %v3787_v14, %v3375_v25  ;;  %v5567_v25 = vld [vmem:[%s5768_s26 + $0x1e0] sm:$0xff] }
 0x437   : > { %5195 = vmatmul.msk.f32.gmra.mxu1 %vm540_vm2, %v2688_v10  ;;  %v4326_v57 = vpop.f32.mrf.mxu0  ;;  %v5565_v10 = vld [vmem:[%s5768_s26 + $0x1d0] sm:$0xff]  ;;  %v2699_v21 = vrot.slane %v5567_v25, 4 }
 0x438   : > { %v4447_v62 = vadd.f32 %v4323_v22, %v3911_v36  ;;  %5261 = vmatmul.msk.f32.gmra.mxu2 %vm540_vm2, %v2692_v8  ;;  %v2695_v45 = vrot.slane %v5565_v10, 4  ;;  %v3515_v31 = vrot.slane %v5565_v10, 5  ;;  %v4051_v46 = vrot.slane %v5565_v10, 6 }
 0x439   : > { %5327 = vmatmul.msk.f32.gmra.mxu3 %vm540_vm2, %v3512_v54 }
 0x43a   : > { %v4511_v2 = vmul.f32 0.16666667, %v4447_v62  ;;  %5393 = vmatmul.msk.f32.gmra.mxu0 %vm540_vm2, %v4048_v41  ;;  %v2696_v43 = vsel %vm669_vm0, %v2693_v5, %v2695_v45  ;;  %v3516_v55 = vsel %vm3407_vm5, %v3513_v13, %v3515_v31  ;;  %v4052_v56 = vsel %vm3943_vm6, %v4049_v6, %v4051_v46 }
 0x43b   : > { %v3254_v17 = vpop.f32.mrf.mxu2  ;;  %v3518_v50 = vsel %vm3407_vm5, %v3515_v31, %v3517_v18  ;;  %v4054_v58 = vsel %vm3943_vm6, %v4051_v46, %v4053_v44  ;;  %v4055_v62 = vrot.slane %v5567_v25, 6 }
 0x43c   : > { %v3790_v16 = vpop.f32.mrf.mxu3  ;;  %v4579_v7 = vadd.f32 %v7379_v15, %v4511_v2  ;;  %v3376_v19 = vadd.f32 %v3254_v17, %v3088_v9  ;;  %v2969_v61 = vpop.f32.mrf.mxu1 }
 0x43d   : > { %v3089_v12 = vadd.f32 %v2969_v61, %v6784_v60 }
 0x43e   : > { %4643 = vst [vmem:[%s7113_s6 + $0x110] sm:$0xff] %v4579_v7  ;;  %v3912_v30 = vadd.f32 %v3790_v16, %v3376_v19  ;;  %v4056_v16 = vsel %vm3943_vm6, %v4053_v44, %v4055_v62  ;;  %v5568_v7 = vld [vmem:[%s5768_s26 + $0x1e8] sm:$0xff] }
 0x43f   : > { %5196 = vmatmul.msk.f32.gmra.mxu1 %vm540_vm2, %v2690_v63  ;;  %v4329_v39 = vpop.f32.mrf.mxu0  ;;  %v2697_v63 = vrot.slane %v5566_v11, 4  ;;  %v2701_v19 = vrot.slane %v5568_v7, 4  ;;  %v3521_v61 = vrot.slane %v5568_v7, 5 }
 0x440   : > { %v4448_v40 = vadd.f32 %v4326_v57, %v3912_v30  ;;  %5262 = vmatmul.msk.f32.gmra.mxu2 %vm540_vm2, %v2694_v33 }
 0x441   : > { %5328 = vmatmul.msk.f32.gmra.mxu3 %vm540_vm2, %v3514_v23  ;;  %v2698_v59 = vsel %vm669_vm0, %v2695_v45, %v2697_v63  ;;  %v2700_v9 = vsel %vm669_vm0, %v2697_v63, %v2699_v21 }
 0x442   : > { %v4512_v35 = vmul.f32 0.16666667, %v4448_v40  ;;  %5394 = vmatmul.msk.f32.gmra.mxu0 %vm540_vm2, %v4050_v32  ;;  %v4057_v40 = vrot.slane %v5568_v7, 6 }
 0x443   : > { %v3257_v37 = vpop.f32.mrf.mxu2 }
 0x444   : > { %v3793_v26 = vpop.f32.mrf.mxu3  ;;  %v4580_v28 = vadd.f32 %v7379_v15, %v4512_v35  ;;  %v3377_v48 = vadd.f32 %v3257_v37, %v3089_v12  ;;  %v2972_v24 = vpop.f32.mrf.mxu1  ;;  %v2702_v12 = vsel %vm669_vm0, %v2699_v21, %v2701_v19  ;;  %v4058_v46 = vsel %vm3943_vm6, %v4055_v62, %v4057_v40 }
 0x445   : > { %v3090_v4 = vadd.f32 %v2972_v24, %v6794_v42 }
 0x446   : > { %4644 = vst [vmem:[%s7113_s6 + $0x118] sm:$0xff] %v4580_v28  ;;  %v3913_v52 = vadd.f32 %v3793_v26, %v3377_v48  ;;  %v5569_v48 = vld [vmem:[%s5768_s26 + $0x1f0] sm:$0xff] }
 0x447   : > { %5197 = vmatmul.msk.f32.gmra.mxu1 %vm540_vm2, %v2692_v8  ;;  %v4332_v60 = vpop.f32.mrf.mxu0  ;;  %v3519_v8 = vrot.slane %v5567_v25, 5  ;;  %v2703_v24 = vrot.slane %v5569_v48, 4  ;;  %v4059_v11 = vrot.slane %v5569_v48, 6 }
 0x448   : > { %v4449_v20 = vadd.f32 %v4329_v39, %v3913_v52  ;;  %5263 = vmatmul.msk.f32.gmra.mxu2 %vm540_vm2, %v2696_v43 }
 0x449   : > { %5329 = vmatmul.msk.f32.gmra.mxu3 %vm540_vm2, %v3516_v55  ;;  %v3520_v2 = vsel %vm3407_vm5, %v3517_v18, %v3519_v8  ;;  %v3522_v35 = vsel %vm3407_vm5, %v3519_v8, %v3521_v61  ;;  %v7817_v55 = vld [vmem:[#allocation36_spill] sm:$0xff] }
 0x44a   : > { %v4513_v22 = vmul.f32 0.16666667, %v4449_v20  ;;  %5395 = vmatmul.msk.f32.gmra.mxu0 %vm540_vm2, %v4052_v56 }
 0x44b   : > { %v3260_v34 = vpop.f32.mrf.mxu2 }
 0x44c   : > { %v3796_v3 = vpop.f32.mrf.mxu3  ;;  %v4581_v53 = vadd.f32 %v7379_v15, %v4513_v22  ;;  %v3378_v51 = vadd.f32 %v3260_v34, %v3090_v4  ;;  %v2975_v29 = vpop.f32.mrf.mxu1  ;;  %v2704_v22 = vsel %vm669_vm0, %v2701_v19, %v2703_v24 }
 0x44d   : > { %v3091_v54 = vadd.f32 %v2975_v29, %v6804_v47  ;;  %v5570_v29 = vld [vmem:[%s5768_s26 + $0x1f8] sm:$0xff] }
 0x44e   : > { %4645 = vst [vmem:[%s7113_s6 + $0x120] sm:$0xff] %v4581_v53  ;;  %v3914_v14 = vadd.f32 %v3796_v3, %v3378_v51  ;;  %v4060_v53 = vsel %vm3943_vm6, %v4057_v40, %v4059_v11  ;;  %v4061_v21 = vrot.slane %v5570_v29, 6 }
 0x44f   : > { %5198 = vmatmul.msk.f32.gmra.mxu1 %vm540_vm2, %v2694_v33  ;;  %v4335_v42 = vpop.f32.mrf.mxu0  ;;  %v7816_v33 = vld [vmem:[#allocation33_spill] sm:$0xff] }
 0x450   : > { %v4450_v49 = vadd.f32 %v4332_v60, %v3914_v14  ;;  %5264 = vmatmul.msk.f32.gmra.mxu2 %vm540_vm2, %v2698_v59  ;;  %v7818_v14 = vld [vmem:[#allocation5_spill] sm:$0xff] }
 0x451   : > { %5330 = vmatmul.msk.f32.gmra.mxu3 %vm540_vm2, %v3518_v50  ;;  %v3525_v50 = vrot.slane %v5570_v29, 5 }
 0x452   : > { %v4514_v36 = vmul.f32 0.16666667, %v4450_v49  ;;  %5396 = vmatmul.msk.f32.gmra.mxu0 %vm540_vm2, %v4054_v58 }
 0x453   : > { %v3263_v57 = vpop.f32.mrf.mxu2 }
 0x454   : > { %v3799_v41 = vpop.f32.mrf.mxu3  ;;  %v4582_v27 = vadd.f32 %v7379_v15, %v4514_v36  ;;  %v3379_v5 = vadd.f32 %v3263_v57, %v3091_v54  ;;  %v2978_v13 = vpop.f32.mrf.mxu1 }
 0x455   : > { %v3092_v23 = vadd.f32 %v2978_v13, %v7816_v33 }
 0x456   : > { %4646 = vst [vmem:[%s7113_s6 + $0x128] sm:$0xff] %v4582_v27  ;;  %v3915_v17 = vadd.f32 %v3799_v41, %v3379_v5  ;;  %v4062_v5 = vsel %vm3943_vm6, %v4059_v11, %v4061_v21 }
 0x457   : > { %5199 = vmatmul.msk.f32.gmra.mxu1 %vm540_vm2, %v2696_v43  ;;  %v4338_v47 = vpop.f32.mrf.mxu0  ;;  %v3523_v43 = vrot.slane %v5569_v48, 5 }
 0x458   : > { %v4451_v6 = vadd.f32 %v4335_v42, %v3915_v17  ;;  %5265 = vmatmul.msk.f32.gmra.mxu2 %vm540_vm2, %v2700_v9 }
 0x459   : > { %5331 = vmatmul.msk.f32.gmra.mxu3 %vm540_vm2, %v3520_v2  ;;  %v3524_v34 = vsel %vm3407_vm5, %v3521_v61, %v3523_v43  ;;  %v3526_v41 = vsel %vm3407_vm5, %v3523_v43, %v3525_v50 }
 0x45a   : > { %v4515_v30 = vmul.f32 0.16666667, %v4451_v6  ;;  %5397 = vmatmul.msk.f32.gmra.mxu0 %vm540_vm2, %v4056_v16 }
 0x45b   : > { %v3266_v39 = vpop.f32.mrf.mxu2 }
 0x45c   : > { %v3802_v32 = vpop.f32.mrf.mxu3  ;;  %v4583_v10 = vadd.f32 %v7379_v15, %v4515_v30  ;;  %v3380_v45 = vadd.f32 %v3266_v39, %v3092_v23  ;;  %v2981_v31 = vpop.f32.mrf.mxu1 }
 0x45d   : > { %v3093_v52 = vadd.f32 %v2981_v31, %v7817_v55 }
 0x45e   : > { %4647 = vst [vmem:[%s7113_s6 + $0x130] sm:$0xff] %v4583_v10  ;;  %v3916_v37 = vadd.f32 %v3802_v32, %v3380_v45 }
 0x45f   : > { %5200 = vmatmul.msk.f32.gmra.mxu1 %vm540_vm2, %v2698_v59  ;;  %v4341_v26 = vpop.f32.mrf.mxu0  ;;  %v2705_v59 = vrot.slane %v5570_v29, 4 }
 0x460   : > { %v4452_v28 = vadd.f32 %v4338_v47, %v3916_v37  ;;  %5266 = vmatmul.msk.f32.gmra.mxu2 %vm540_vm2, %v2702_v12  ;;  %v7819_v47 = vld [vmem:[#allocation7_spill] sm:$0xff] }
 0x461   : > { %5332 = vmatmul.msk.f32.gmra.mxu3 %vm540_vm2, %v3522_v35  ;;  %v2706_v57 = vsel %vm669_vm0, %v2703_v24, %v2705_v59 }
 0x462   : > { %v4516_v60 = vmul.f32 0.16666667, %v4452_v28  ;;  %5398 = vmatmul.msk.f32.gmra.mxu0 %vm540_vm2, %v4058_v46 }
 0x463   : > { %v3269_v56 = vpop.f32.mrf.mxu2 }
 0x464   : > { %v3805_v20 = vpop.f32.mrf.mxu3  ;;  %v4584_v63 = vadd.f32 %v7379_v15, %v4516_v60  ;;  %v3381_v18 = vadd.f32 %v3269_v56, %v3093_v52  ;;  %v2984_v4 = vpop.f32.mrf.mxu1 }
 0x465   : > { %v3094_v42 = vadd.f32 %v2984_v4, %v7818_v14 }
 0x466   : > { %4648 = vst [vmem:[%s7113_s6 + $0x138] sm:$0xff] %v4584_v63  ;;  %v3917_v3 = vadd.f32 %v3805_v20, %v3381_v18 }
 0x467   : > { %5201 = vmatmul.msk.f32.gmra.mxu1 %vm540_vm2, %v2700_v9  ;;  %v4344_v44 = vpop.f32.mrf.mxu0  ;;  %v5571_v9 = vld [vmem:[%s6080_s22] sm:$0xff] }
 0x468   : > { %v4453_v51 = vadd.f32 %v4341_v26, %v3917_v3  ;;  %5267 = vmatmul.msk.f32.gmra.mxu2 %vm540_vm2, %v2704_v22  ;;  %v2707_v2 = vrot.slane %v5571_v9, 4  ;;  %v3527_v17 = vrot.slane %v5571_v9, 5  ;;  %v4063_v61 = vrot.slane %v5571_v9, 6  ;;  %v7820_v26 = vld [vmem:[#allocation9_spill] sm:$0xff] }
 0x469   : > { %5333 = vmatmul.msk.f32.gmra.mxu3 %vm540_vm2, %v3524_v34 }
 0x46a   : > { %v4517_v58 = vmul.f32 0.16666667, %v4453_v51  ;;  %5399 = vmatmul.msk.f32.gmra.mxu0 %vm540_vm2, %v4060_v53  ;;  %v2708_v39 = vsel %vm669_vm0, %v2705_v59, %v2707_v2  ;;  %v3528_v32 = vsel %vm3407_vm5, %v3525_v50, %v3527_v17  ;;  %v4064_v45 = vsel %vm3943_vm6, %v4061_v21, %v4063_v61  ;;  %v340_v21 = vld [vmem:[%s6080_s22 + $0x18] sm:$0xff] }
 0x46b   : > { %v3272_v49 = vpop.f32.mrf.mxu2  ;;  %v4069_v9 = vrot.slane %v340_v21, 6 }
 0x46c   : > { %v3808_v25 = vpop.f32.mrf.mxu3  ;;  %v4585_v8 = vadd.f32 %v7379_v15, %v4517_v58  ;;  %v3382_v54 = vadd.f32 %v3272_v49, %v3094_v42  ;;  %v2987_v36 = vpop.f32.mrf.mxu1 }
 0x46d   : > { %v3095_v16 = vadd.f32 %v2987_v36, %v7819_v47  ;;  %v3121_v36 = vrot.slane %v340_v21, 4 }
 0x46e   : > { %4649 = vst [vmem:[%s7113_s6 + $0x140] sm:$0xff] %v4585_v8  ;;  %v3918_v62 = vadd.f32 %v3808_v25, %v3382_v54 }
 0x46f   : > { %5202 = vmatmul.msk.f32.gmra.mxu1 %vm540_vm2, %v2702_v12  ;;  %v4347_v27 = vpop.f32.mrf.mxu0  ;;  %v5572_v12 = vld [vmem:[%s6080_s22 + $0x8] sm:$0xff] }
 0x470   : > { %v4454_v13 = vadd.f32 %v4344_v44, %v3918_v62  ;;  %5268 = vmatmul.msk.f32.gmra.mxu2 %vm540_vm2, %v2706_v57  ;;  %v2709_v35 = vrot.slane %v5572_v12, 4  ;;  %v3529_v37 = vrot.slane %v5572_v12, 5  ;;  %v4065_v43 = vrot.slane %v5572_v12, 6 }
 0x471   : > { %5334 = vmatmul.msk.f32.gmra.mxu3 %vm540_vm2, %v3526_v41  ;;  %v7821_v41 = vld [vmem:[#allocation11_spill] sm:$0xff] }
 0x472   : > { %v4518_v6 = vmul.f32 0.16666667, %v4454_v13  ;;  %5400 = vmatmul.msk.f32.gmra.mxu0 %vm540_vm2, %v4062_v5  ;;  %v2710_v56 = vsel %vm669_vm0, %v2707_v2, %v2709_v35  ;;  %v3530_v20 = vsel %vm3407_vm5, %v3527_v17, %v3529_v37  ;;  %v4066_v18 = vsel %vm3943_vm6, %v4063_v61, %v4065_v43 }
 0x473   : > { %v3275_v7 = vpop.f32.mrf.mxu2 }
 0x474   : > { %v3811_v19 = vpop.f32.mrf.mxu3  ;;  %v4586_v33 = vadd.f32 %v7379_v15, %v4518_v6  ;;  %v3383_v23 = vadd.f32 %v3275_v7, %v3095_v16  ;;  %v2990_v30 = vpop.f32.mrf.mxu1 }
 0x475   : > { %v3096_v46 = vadd.f32 %v2990_v30, %v7820_v26 }
 0x476   : > { %4650 = vst [vmem:[%s7113_s6 + $0x148] sm:$0xff] %v4586_v33  ;;  %v3919_v40 = vadd.f32 %v3811_v19, %v3383_v23  ;;  %v341_v19 = vld [vmem:[%s6080_s22 + $0x20] sm:$0xff] }
 0x477   : > { %5203 = vmatmul.msk.f32.gmra.mxu1 %vm540_vm2, %v2704_v22  ;;  %v4350_v10 = vpop.f32.mrf.mxu0  ;;  %v5573_v22 = vld [vmem:[%s6080_s22 + $0x10] sm:$0xff]  ;;  %v3123_v30 = vrot.slane %v341_v19, 4  ;;  %v4071_v12 = vrot.slane %v341_v19, 6  ;;  %s5589_s22 = sshra.s32 %s4690_s21, 4  ;;  %s5590_s22 = int_to_ptr.hbm [resolvable:$true] %s5589_s22 }
 0x478   : > { %v4455_v31 = vadd.f32 %v4347_v27, %v3919_v40  ;;  %5269 = vmatmul.msk.f32.gmra.mxu2 %vm540_vm2, %v2708_v39  ;;  %v2711_v34 = vrot.slane %v5573_v22, 4  ;;  %v3531_v3 = vrot.slane %v5573_v22, 5  ;;  %v4067_v59 = vrot.slane %v5573_v22, 6  ;;  %s5591_s29 = scalar_lea.hbm %s5590_s22, 512  ;;  %p5596_p2 = scmp.lt.s32.totalorder %s5590_s22, %s7722_s4 }
 0x479   : > { %5335 = vmatmul.msk.f32.gmra.mxu3 %vm540_vm2, %v3528_v32  ;;  %v7822_v32 = vld [vmem:[#allocation13_spill] sm:$0xff]  ;;  %p5592_p13 = scmp.ne.s32.totalorder %s5590_s22, %s5591_s29  ;;  %p5597_p3 = scmp.lt.s32.totalorder %s5595_s7, %s5591_s29 }
 0x47a   : > { %v4519_v28 = vmul.f32 0.16666667, %v4455_v31  ;;  %5401 = vmatmul.msk.f32.gmra.mxu0 %vm540_vm2, %v4064_v45  ;;  %v2712_v58 = vsel %vm669_vm0, %v2709_v35, %v2711_v34  ;;  %v3532_v49 = vsel %vm3407_vm5, %v3529_v37, %v3531_v3  ;;  %v4068_v8 = vsel %vm3943_vm6, %v4065_v43, %v4067_v59 }
 0x47b   : > { %v3278_v48 = vpop.f32.mrf.mxu2  ;;  %v3122_v16 = vsel %vm669_vm0, %v2711_v34, %v3121_v36  ;;  %v4070_v33 = vsel %vm3943_vm6, %v4067_v59, %v4069_v9  ;;  %v4072_v43 = vsel %vm3943_vm6, %v4069_v9, %v4071_v12  ;;  %v7826_v9 = vld [vmem:[#allocation21_spill] sm:$0xff]  ;;  %p5593_p0 = pnand %p5592_p13, %p5722_p4  ;;  %p5598_p5 = por %p5597_p3, %p5596_p2 }
 0x47c   : > { %v3814_v24 = vpop.f32.mrf.mxu3  ;;  %v4587_v55 = vadd.f32 %v7379_v15, %v4519_v28  ;;  %v3384_v52 = vadd.f32 %v3278_v48, %v3096_v46  ;;  %v2993_v60 = vpop.f32.mrf.mxu1  ;;  %v3124_v46 = vsel %vm669_vm0, %v3121_v36, %v3123_v30  ;;  %v7827_v30 = vld [vmem:[#allocation23_spill] sm:$0xff] }
 0x47d   : > { %v3097_v44 = vadd.f32 %v2993_v60, %v6874_v0  ;;  %p5594_p1 = pneg %p5593_p0 }
 0x47e   : > { %4651 = vst [vmem:[%s7113_s6 + $0x150] sm:$0xff] %v4587_v55  ;;  %v3920_v11 = vadd.f32 %v3814_v24, %v3384_v52  ;;  %v7823_v52 = vld [vmem:[#allocation15_spill] sm:$0xff] }
 0x47f   : > { %5204 = vmatmul.msk.f32.gmra.mxu1 %vm540_vm2, %v2706_v57  ;;  %v4353_v63 = vpop.f32.mrf.mxu0  ;;  %v3533_v57 = vrot.slane %v340_v21, 5  ;;  %v7825_v21 = vld [vmem:[#allocation19_spill] sm:$0xff]  ;;  %p5599_p6 = pnand %p5598_p5, %p5594_p1 }
 0x480   : > { %v4456_v4 = vadd.f32 %v4350_v10, %v3920_v11  ;;  %5270 = vmatmul.msk.f32.gmra.mxu2 %vm540_vm2, %v2710_v56 }
 0x481   : > { %5336 = vmatmul.msk.f32.gmra.mxu3 %vm540_vm2, %v3530_v20  ;;  %v3534_v6 = vsel %vm3407_vm5, %v3531_v3, %v3533_v57 }
 0x482   : > { %v4520_v53 = vmul.f32 0.16666667, %v4456_v4  ;;  %5402 = vmatmul.msk.f32.gmra.mxu0 %vm540_vm2, %v4066_v18 }
 0x483   : > { %v3281_v51 = vpop.f32.mrf.mxu2 }
 0x484   : > { %v3817_v29 = vpop.f32.mrf.mxu3  ;;  %v4588_v50 = vadd.f32 %v7379_v15, %v4520_v53  ;;  %v3385_v14 = vadd.f32 %v3281_v51, %v3097_v44  ;;  %v2996_v42 = vpop.f32.mrf.mxu1  ;;  %v7824_v44 = vld [vmem:[#allocation17_spill] sm:$0xff] }
 0x485   : > { %v3098_v62 = vadd.f32 %v2996_v42, %v7821_v41 }
 0x486   : > { %4652 = vst [vmem:[%s7113_s6 + $0x158] sm:$0xff] %v4588_v50  ;;  %v3921_v25 = vadd.f32 %v3817_v29, %v3385_v14 }
 0x487   : > { %5205 = vmatmul.msk.f32.gmra.mxu1 %vm540_vm2, %v2708_v39  ;;  %v4356_v0 = vpop.f32.mrf.mxu0  ;;  %v3535_v39 = vrot.slane %v341_v19, 5 }
 0x488   : > { %v4457_v54 = vadd.f32 %v4353_v63, %v3921_v25  ;;  %5271 = vmatmul.msk.f32.gmra.mxu2 %vm540_vm2, %v2712_v58 }
 0x489   : > { %5337 = vmatmul.msk.f32.gmra.mxu3 %vm540_vm2, %v3532_v49  ;;  %v3536_v28 = vsel %vm3407_vm5, %v3533_v57, %v3535_v39 }
 0x48a   : > { %v4521_v27 = vmul.f32 0.16666667, %v4457_v54  ;;  %5403 = vmatmul.msk.f32.gmra.mxu0 %vm540_vm2, %v4068_v8 }
 0x48b   : > { %v3284_v5 = vpop.f32.mrf.mxu2 }
 0x48c   : > { %v3820_v13 = vpop.f32.mrf.mxu3  ;;  %v4589_v2 = vadd.f32 %v7379_v15, %v4521_v27  ;;  %v3386_v17 = vadd.f32 %v3284_v5, %v3098_v62  ;;  %v2999_v47 = vpop.f32.mrf.mxu1 }
 0x48d   : > { %v3099_v40 = vadd.f32 %v2999_v47, %v7822_v32 }
 0x48e   : > { %4653 = vst [vmem:[%s7113_s6 + $0x160] sm:$0xff] %v4589_v2  ;;  %v3922_v7 = vadd.f32 %v3820_v13, %v3386_v17 }
 0x48f   : > { %5206 = vmatmul.msk.f32.gmra.mxu1 %vm540_vm2, %v2710_v56  ;;  %v4359_v61 = vpop.f32.mrf.mxu0 }
 0x490   : > { %v4458_v23 = vadd.f32 %v4356_v0, %v3922_v7  ;;  %5272 = vmatmul.msk.f32.gmra.mxu2 %vm540_vm2, %v3122_v16 }
 0x491   : > { %5338 = vmatmul.msk.f32.gmra.mxu3 %vm540_vm2, %v3534_v6 }
 0x492   : > { %v4522_v10 = vmul.f32 0.16666667, %v4458_v23  ;;  %5404 = vmatmul.msk.f32.gmra.mxu0 %vm540_vm2, %v4070_v33 }
 0x493   : > { %v3287_v45 = vpop.f32.mrf.mxu2 }
 0x494   : > { %v3823_v31 = vpop.f32.mrf.mxu3  ;;  %v4590_v35 = vadd.f32 %v7379_v15, %v4522_v10  ;;  %v3387_v37 = vadd.f32 %v3287_v45, %v3099_v40  ;;  %v3002_v26 = vpop.f32.mrf.mxu1 }
 0x495   : > { %v3100_v60 = vadd.f32 %v3002_v26, %v7823_v52 }
 0x496   : > { %4654 = vst [vmem:[%s7113_s6 + $0x168] sm:$0xff] %v4590_v35  ;;  %v3923_v48 = vadd.f32 %v3823_v31, %v3387_v37 }
 0x497   : > { %5207 = vmatmul.msk.f32.gmra.mxu1 %vm540_vm2, %v2712_v58  ;;  %v4362_v24 = vpop.f32.mrf.mxu0 }
 0x498   : > { %v4459_v55 = vadd.f32 %v4359_v61, %v3923_v48  ;;  %5273 = vmatmul.msk.f32.gmra.mxu2 %vm540_vm2, %v3124_v46  ;;  %v7828_v46 = vld [vmem:[#allocation25_spill] sm:$0xff] }
 0x499   : > { %5339 = vmatmul.msk.f32.gmra.mxu3 %vm540_vm2, %v3536_v28 }
 0x49a   : > { %v4523_v56 = vmul.f32 0.16666667, %v4459_v55  ;;  %5405 = vmatmul.msk.f32.gmra.mxu0 %vm540_vm2, %v4072_v43  ;;  %v7640_v55 = vld [vmem:[%s7721_s3] ss:$0 sm:$0xff] }
 0x49b   : > { %v3290_v20 = vpop.f32.mrf.mxu2 }
 0x49c   : > { %v3826_v11 = vpop.f32.mrf.mxu3  ;;  %v4591_v63 = vadd.f32 %v7379_v15, %v4523_v56  ;;  %v3388_v18 = vadd.f32 %v3290_v20, %v3100_v60  ;;  %v3005_v4 = vpop.f32.mrf.mxu1 }
 0x49d   : > { %v3101_v53 = vadd.f32 %v3005_v4, %v7824_v44 }
 0x49e   : > { %4655 = vst [vmem:[%s7113_s6 + $0x170] sm:$0xff] %v4591_v63  ;;  %v3924_v22 = vadd.f32 %v3826_v11, %v3388_v18  ;;  %v7829_v63 = vld [vmem:[#allocation27_spill] sm:$0xff] }
 0x49f   : > { %v4365_v34 = vpop.f32.mrf.mxu0 }
 0x4a0   : > { %v4460_v3 = vadd.f32 %v4362_v24, %v3924_v22 }
 0x4a2   : > { %v4524_v51 = vmul.f32 0.16666667, %v4460_v3 }
 0x4a3   : > { %v3293_v29 = vpop.f32.mrf.mxu2 }
 0x4a4   : > { %v3829_v59 = vpop.f32.mrf.mxu3  ;;  %v4592_v50 = vadd.f32 %v7379_v15, %v4524_v51  ;;  %v3389_v14 = vadd.f32 %v3293_v29, %v3101_v53  ;;  %v3008_v42 = vpop.f32.mrf.mxu1 }
 0x4a5   : > { %v3102_v0 = vadd.f32 %v3008_v42, %v7825_v21 }
 0x4a6   : > { %4656 = vst [vmem:[%s7113_s6 + $0x178] sm:$0xff] %v4592_v50  ;;  %v3925_v58 = vadd.f32 %v3829_v59, %v3389_v14  ;;  %v7830_v50 = vld [vmem:[#allocation29_spill] sm:$0xff] }
 0x4a7   : > { %v4368_v49 = vpop.f32.mrf.mxu0 }
 0x4a8   : > { %v4461_v25 = vadd.f32 %v4365_v34, %v3925_v58 }
 0x4aa   : > { %v4525_v8 = vmul.f32 0.16666667, %v4461_v25 }
 0x4ab   : > { %v3296_v54 = vpop.f32.mrf.mxu2 }
 0x4ac   : > { %v3832_v36 = vpop.f32.mrf.mxu3  ;;  %v4593_v57 = vadd.f32 %v7379_v15, %v4525_v8  ;;  %v3390_v41 = vadd.f32 %v3296_v54, %v3102_v0  ;;  %v3011_v62 = vpop.f32.mrf.mxu1 }
 0x4ad   : > { %v3103_v2 = vadd.f32 %v3011_v62, %v7826_v9 }
 0x4ae   : > { %4657 = vst [vmem:[%s7113_s6 + $0x180] sm:$0xff] %v4593_v57  ;;  %v3926_v27 = vadd.f32 %v3832_v36, %v3390_v41  ;;  %v7831_v57 = vld [vmem:[#allocation31_spill] sm:$0xff] }
 0x4af   : > { %v4371_v5 = vpop.f32.mrf.mxu0 }
 0x4b0   : > { %v4462_v13 = vadd.f32 %v4368_v49, %v3926_v27 }
 0x4b2   : > { %v4526_v17 = vmul.f32 0.16666667, %v4462_v13 }
 0x4b3   : > { %v3299_v47 = vpop.f32.mrf.mxu2 }
 0x4b4   : > { %v3835_v16 = vpop.f32.mrf.mxu3  ;;  %v4594_v6 = vadd.f32 %v7379_v15, %v4526_v17  ;;  %v3391_v7 = vadd.f32 %v3299_v47, %v3103_v2  ;;  %v3014_v19 = vpop.f32.mrf.mxu1 }
 0x4b5   : > { %v3104_v39 = vadd.f32 %v3014_v19, %v7827_v30 }
 0x4b6   : > { %4658 = vst [vmem:[%s7113_s6 + $0x188] sm:$0xff] %v4594_v6  ;;  %v3927_v61 = vadd.f32 %v3835_v16, %v3391_v7  ;;  %v7832_v6 = vld [vmem:[#allocation34_spill] sm:$0xff] }
 0x4b7   : > { %v4374_v33 = vpop.f32.mrf.mxu0 }
 0x4b8   : > { %v4463_v23 = vadd.f32 %v4371_v5, %v3927_v61 }
 0x4ba   : > { %v4527_v32 = vmul.f32 0.16666667, %v4463_v23 }
 0x4bb   : > { %v3302_v40 = vpop.f32.mrf.mxu2 }
 0x4bc   : > { %v3838_v10 = vpop.f32.mrf.mxu3  ;;  %v4595_v45 = vadd.f32 %v7379_v15, %v4527_v32  ;;  %v3392_v31 = vadd.f32 %v3302_v40, %v3104_v39  ;;  %v3017_v12 = vpop.f32.mrf.mxu1 }
 0x4bd   : > { %v3105_v28 = vadd.f32 %v3017_v12, %v7828_v46 }
 0x4be   : > { %4659 = vst [vmem:[%s7113_s6 + $0x190] sm:$0xff] %v4595_v45  ;;  %v3928_v35 = vadd.f32 %v3838_v10, %v3392_v31  ;;  %v7833_v45 = vld [vmem:[#allocation37_spill] sm:$0xff] }
 0x4bf   : > { %v4377_v37 = vpop.f32.mrf.mxu0 }
 0x4c0   : > { %v4464_v26 = vadd.f32 %v4374_v33, %v3928_v35 }
 0x4c2   : > { %v4528_v48 = vmul.f32 0.16666667, %v4464_v26 }
 0x4c3   : > { %v3305_v24 = vpop.f32.mrf.mxu2 }
 0x4c4   : > { %v3841_v43 = vpop.f32.mrf.mxu3  ;;  %v4596_v52 = vadd.f32 %v7640_v55, %v4528_v48  ;;  %v3393_v15 = vadd.f32 %v3305_v24, %v3105_v28  ;;  %v3020_v60 = vpop.f32.mrf.mxu1 }
 0x4c5   : > { %v3106_v18 = vadd.f32 %v3020_v60, %v7829_v63 }
 0x4c6   : > { %4660 = vst [vmem:[%s7113_s6 + $0x198] sm:$0xff] %v4596_v52  ;;  %v3929_v56 = vadd.f32 %v3841_v43, %v3393_v15  ;;  %v7834_v52 = vld [vmem:[#allocation6_spill] sm:$0xff] }
 0x4c7   : > { %v4380_v20 = vpop.f32.mrf.mxu0 }
 0x4c8   : > { %v4465_v11 = vadd.f32 %v4377_v37, %v3929_v56 }
 0x4ca   : > { %v4529_v4 = vmul.f32 0.16666667, %v4465_v11 }
 0x4cb   : > { %v3308_v22 = vpop.f32.mrf.mxu2 }
 0x4cc   : > { %v3844_v34 = vpop.f32.mrf.mxu3  ;;  %v4597_v3 = vadd.f32 %v7640_v55, %v4529_v4  ;;  %v3394_v44 = vadd.f32 %v3308_v22, %v3106_v18  ;;  %v3023_v53 = vpop.f32.mrf.mxu1 }
 0x4cd   : > { %v3107_v14 = vadd.f32 %v3023_v53, %v7830_v50 }
 0x4ce   : > { %4661 = vst [vmem:[%s7113_s6 + $0x1a0] sm:$0xff] %v4597_v3  ;;  %v3930_v51 = vadd.f32 %v3844_v34, %v3394_v44  ;;  %v7835_v3 = vld [vmem:[#allocation8_spill] sm:$0xff] }
 0x4cf   : > { %v4383_v29 = vpop.f32.mrf.mxu0 }
 0x4d0   : > { %v4466_v59 = vadd.f32 %v4380_v20, %v3930_v51 }
 0x4d2   : > { %v4530_v42 = vmul.f32 0.16666667, %v4466_v59 }
 0x4d3   : > { %v3311_v58 = vpop.f32.mrf.mxu2 }
 0x4d4   : > { %v3847_v49 = vpop.f32.mrf.mxu3  ;;  %v4598_v25 = vadd.f32 %v7640_v55, %v4530_v42  ;;  %v3395_v21 = vadd.f32 %v3311_v58, %v3107_v14  ;;  %v3026_v0 = vpop.f32.mrf.mxu1 }
 0x4d5   : > { %v3108_v41 = vadd.f32 %v3026_v0, %v7831_v57 }
 0x4d6   : > { %4662 = vst [vmem:[%s7113_s6 + $0x1a8] sm:$0xff] %v4598_v25  ;;  %v3931_v8 = vadd.f32 %v3847_v49, %v3395_v21  ;;  %v7836_v25 = vld [vmem:[#allocation10_spill] sm:$0xff] }
 0x4d7   : > { %v4386_v54 = vpop.f32.mrf.mxu0 }
 0x4d8   : > { %v4467_v36 = vadd.f32 %v4383_v29, %v3931_v8 }
 0x4da   : > { %v4531_v62 = vmul.f32 0.16666667, %v4467_v36 }
 0x4db   : > { %v3314_v27 = vpop.f32.mrf.mxu2 }
 0x4dc   : > { %v3850_v5 = vpop.f32.mrf.mxu3  ;;  %v4599_v13 = vadd.f32 %v7640_v55, %v4531_v62  ;;  %v3396_v9 = vadd.f32 %v3314_v27, %v3108_v41  ;;  %v3029_v2 = vpop.f32.mrf.mxu1 }
 0x4dd   : > { %v3109_v7 = vadd.f32 %v3029_v2, %v7832_v6 }
 0x4de   : > { %4663 = vst [vmem:[%s7113_s6 + $0x1b0] sm:$0xff] %v4599_v13  ;;  %v3932_v17 = vadd.f32 %v3850_v5, %v3396_v9  ;;  %v7837_v13 = vld [vmem:[#allocation12_spill] sm:$0xff] }
 0x4df   : > { %v4389_v47 = vpop.f32.mrf.mxu0 }
 0x4e0   : > { %v4468_v16 = vadd.f32 %v4386_v54, %v3932_v17 }
 0x4e2   : > { %v4532_v19 = vmul.f32 0.16666667, %v4468_v16 }
 0x4e3   : > { %v3317_v61 = vpop.f32.mrf.mxu2 }
 0x4e4   : > { %v3853_v33 = vpop.f32.mrf.mxu3  ;;  %v4600_v23 = vadd.f32 %v7640_v55, %v4532_v19  ;;  %v3397_v30 = vadd.f32 %v3317_v61, %v3109_v7  ;;  %v3032_v39 = vpop.f32.mrf.mxu1 }
 0x4e5   : > { %v3110_v31 = vadd.f32 %v3032_v39, %v7833_v45 }
 0x4e6   : > { %4664 = vst [vmem:[%s7113_s6 + $0x1b8] sm:$0xff] %v4600_v23  ;;  %v3933_v32 = vadd.f32 %v3853_v33, %v3397_v30 }
 0x4e7   : > { %v4392_v40 = vpop.f32.mrf.mxu0 }
 0x4e8   : > { %v4469_v10 = vadd.f32 %v4389_v47, %v3933_v32 }
 0x4ea   : > { %v4533_v12 = vmul.f32 0.16666667, %v4469_v10 }
 0x4eb   : > { %v3320_v35 = vpop.f32.mrf.mxu2 }
 0x4ec   : > { %v3856_v37 = vpop.f32.mrf.mxu3  ;;  %v4601_v26 = vadd.f32 %v7640_v55, %v4533_v12  ;;  %v3398_v46 = vadd.f32 %v3320_v35, %v3110_v31  ;;  %v3035_v28 = vpop.f32.mrf.mxu1 }
 0x4ed   : > { %v3111_v15 = vadd.f32 %v3035_v28, %v7834_v52 }
 0x4ee   : > { %4665 = vst [vmem:[%s7113_s6 + $0x1c0] sm:$0xff] %v4601_v26  ;;  %v3934_v48 = vadd.f32 %v3856_v37, %v3398_v46 }
 0x4ef   : > { %v4395_v24 = vpop.f32.mrf.mxu0 }
 0x4f0   : > { %v4470_v43 = vadd.f32 %v4392_v40, %v3934_v48 }
 0x4f2   : > { %v4534_v60 = vmul.f32 0.16666667, %v4470_v43 }
 0x4f3   : > { %v3323_v56 = vpop.f32.mrf.mxu2 }
 0x4f4   : > { %v3859_v20 = vpop.f32.mrf.mxu3  ;;  %v4602_v11 = vadd.f32 %v7640_v55, %v4534_v60  ;;  %v3399_v63 = vadd.f32 %v3323_v56, %v3111_v15  ;;  %v3038_v18 = vpop.f32.mrf.mxu1 }
 0x4f5   : > { %v3112_v44 = vadd.f32 %v3038_v18, %v7835_v3 }
 0x4f6   : > { %4666 = vst [vmem:[%s7113_s6 + $0x1c8] sm:$0xff] %v4602_v11  ;;  %v3935_v4 = vadd.f32 %v3859_v20, %v3399_v63 }
 0x4f7   : > { %v4398_v22 = vpop.f32.mrf.mxu0 }
 0x4f8   : > { %v4471_v34 = vadd.f32 %v4395_v24, %v3935_v4 }
 0x4fa   : > { %v4535_v53 = vmul.f32 0.16666667, %v4471_v34 }
 0x4fb   : > { %v3326_v51 = vpop.f32.mrf.mxu2 }
 0x4fc   : > { %v3862_v29 = vpop.f32.mrf.mxu3  ;;  %v4603_v59 = vadd.f32 %v7640_v55, %v4535_v53  ;;  %v3400_v50 = vadd.f32 %v3326_v51, %v3112_v44  ;;  %v3041_v14 = vpop.f32.mrf.mxu1 }
 0x4fd   : > { %v3113_v21 = vadd.f32 %v3041_v14, %v7836_v25 }
 0x4fe   : > { %4667 = vst [vmem:[%s7113_s6 + $0x1d0] sm:$0xff] %v4603_v59  ;;  %v3936_v42 = vadd.f32 %v3862_v29, %v3400_v50 }
 0x4ff   : > { %v4401_v58 = vpop.f32.mrf.mxu0 }
 0x500   : > { %v4472_v49 = vadd.f32 %v4398_v22, %v3936_v42 }
 0x502   : > { %v4536_v0 = vmul.f32 0.16666667, %v4472_v49 }
 0x503   : > { %v3329_v8 = vpop.f32.mrf.mxu2 }
 0x504   : > { %v3865_v54 = vpop.f32.mrf.mxu3  ;;  %v4604_v36 = vadd.f32 %v7640_v55, %v4536_v0  ;;  %v3401_v57 = vadd.f32 %v3329_v8, %v3113_v21  ;;  %v3044_v41 = vpop.f32.mrf.mxu1 }
 0x505   : > { %v3114_v9 = vadd.f32 %v3044_v41, %v7837_v13 }
 0x506   : > { %4668 = vst [vmem:[%s7113_s6 + $0x1d8] sm:$0xff] %v4604_v36  ;;  %v3937_v62 = vadd.f32 %v3865_v54, %v3401_v57 }
 0x507   : > { %v4404_v5 = vpop.f32.mrf.mxu0 }
 0x508   : > { %v4473_v27 = vadd.f32 %v4401_v58, %v3937_v62 }
 0x50a   : > { %v4537_v2 = vmul.f32 0.16666667, %v4473_v27 }
 0x50b   : > { %v3332_v17 = vpop.f32.mrf.mxu2 }
 0x50c   : > { %v3868_v47 = vpop.f32.mrf.mxu3  ;;  %v4605_v16 = vadd.f32 %v7640_v55, %v4537_v2  ;;  %v3402_v6 = vadd.f32 %v3332_v17, %v3114_v9  ;;  %v3047_v7 = vpop.f32.mrf.mxu1 }
 0x50d   : > { %v3115_v33 = vadd.f32 %v3047_v7, %v7075_v1 }
 0x50e   : > { %4669 = vst [vmem:[%s7113_s6 + $0x1e0] sm:$0xff] %v4605_v16  ;;  %v3938_v19 = vadd.f32 %v3868_v47, %v3402_v6 }
 0x50f   : > { %v4407_v30 = vpop.f32.mrf.mxu0 }
 0x510   : > { %v4474_v61 = vadd.f32 %v4404_v5, %v3938_v19 }
 0x512   : > { %v4538_v23 = vmul.f32 0.16666667, %v4474_v61 }
 0x513   : > { %v3335_v39 = vpop.f32.mrf.mxu2 }
 0x514   : > { %v3871_v32 = vpop.f32.mrf.mxu3  ;;  %v4606_v40 = vadd.f32 %v7640_v55, %v4538_v23  ;;  %v3403_v10 = vadd.f32 %v3335_v39, %v3115_v33  ;;  %v3050_v31 = vpop.f32.mrf.mxu1 }
 0x515   : > { %v3116_v35 = vadd.f32 %v3050_v31, %v7086_v38 }
 0x516   : > { %4670 = vst [vmem:[%s7113_s6 + $0x1e8] sm:$0xff] %v4606_v40  ;;  %v3939_v45 = vadd.f32 %v3871_v32, %v3403_v10 }
 0x517   : > { %v4410_v48 = vpop.f32.mrf.mxu0 }
 0x518   : > { %v4475_v12 = vadd.f32 %v4407_v30, %v3939_v45 }
 0x51a   : > { %v4539_v37 = vmul.f32 0.16666667, %v4475_v12 }
 0x51b   : > { %v3338_v26 = vpop.f32.mrf.mxu2 }
 0x51c   : > { %v3874_v1 = vpop.f32.mrf.mxu3  ;;  %v4607_v46 = vadd.f32 %v7640_v55, %v4539_v37  ;;  %v3404_v28 = vadd.f32 %v3338_v26, %v3116_v35 }
 0x51e   : > { %4671 = vst [vmem:[%s7113_s6 + $0x1f0] sm:$0xff] %v4607_v46  ;;  %v3940_v24 = vadd.f32 %v3874_v1, %v3404_v28 }
 0x520   : > { %v4476_v43 = vadd.f32 %v4410_v48, %v3940_v24 }
 0x522   : > { %v4540_v38 = vmul.f32 0.16666667, %v4476_v43 }
 0x524   : > { %v4608_v52 = vadd.f32 %v7640_v55, %v4540_v38 }
 0x526   : > { %4672 = vst [vmem:[%s7113_s6 + $0x1f8] sm:$0xff] %v4608_v52 }
 0x527   : > { %5602 = shalt.err (!%p5599_p6)
}
 0x528   : > { %s5655_s24 = smov 128   ;;  %s5656_s6 = smov 8  }
 0x529   : > { %5417 = dma.vmem_to_hbm [thread:$0]  (%p5722_p4), %s4688_s14, 8192, %s4690_s21, %s4674_s18, %s5655_s24, %s5655_s24, %s5656_s6  }
 0x52a PF: > { %p5423_p7 = scmp.ge.s32.totalorder %s5653_s20, 2  ;;  %s4704_s9 = sand.u32 1, %s5633_s15  }
 0x52b   : > { %s4705_s10 = scalar_lea.sflag [#allocation3], %s4704_s9 }
 0x52c   : > { %p5420_p9 = pnand %p5423_p7, %p5729_p8 }
 0x52e   : > { %p5421_p10 = pneg %p5420_p9 }
 0x530   : > { %5628 = dma.done.wait (%p5421_p10), %s4705_s10, 8192  }
 0x531   : > { %5630 = vsyncadd (%p5421_p10), %s4705_s10, 4294959104  ;;  %s17_s20 = sadd.s32 1, %s5653_s20   ;;  %s7838_s15 = smov %s5637_s16 }
 0x532   : > { %p14_p11 = scmp.ge.s32.totalorder %s17_s20, 4   ;;  %s7839_s16 = smov %s5641_s17 }
 0x533   : > { %s7840_s17 = smov %s5735_s28  ;;  %s7841_s18 = smov %s5649_s19 }
 0x534   : > { %s7842_s19 = smov %s7844_s23  ;;  %16 = sbr.rel (!%p14_p11) target bundleno = 4 (0x4), region = 88 }
 0x539   :  { %4711 = vsyncpa [#allocation3], 1 }
 0x53a   :  { %4713 = vsyncpa [#allocation3 + $0x1], 1 }

</bundles_post_ra>
